<compile_context>
chip_gen: v7x
topology: tpu7x:2x2x1
jax: 0.10.0
libtpu: 0.0.40
codegen_flags: <defaults>
</compile_context>

<pallas_src>
import math
from functools import partial

import jax
import jax.numpy as jnp
from jax.experimental import pallas as pl
from jax.experimental.pallas import tpu as pltpu


# ----------------------------------------------------------------------------
# Fused kernel: all encoder layers + classifier for one batch block per step.
# ----------------------------------------------------------------------------
def fused_transformer_kernel(
        x_ref,
        wqkv_ref, bqkv_ref, wo_ref, bo_ref,
        w1_ref, b1_ref, w2_ref, b2_ref,
        g1_ref, be1_ref, g2_ref, be2_ref,
        wcls_ref, bcls_ref,
        *rest,
        num_layers, nhead, head_dim, mask_mode, eps=1e-5):
    # mask_mode: 0 = none, 1 = (bb,S,S) shared over heads, 2 = (bb,H,S,S) per-head.
    if mask_mode == 0:
        o_ref, ctx_scratch = rest
        mask = None
    else:
        mask_ref, o_ref, ctx_scratch = rest
        mask = mask_ref[...]                       # f32 additive mask

    x3 = x_ref[...]                                # (bb, S, D) f32, pos-emb pre-added
    bb, S, D = x3.shape
    H, Dh = nhead, head_dim
    HD = H * Dh
    BS = bb * S
    xf = x3.reshape(BS, D)                         # leading-dim merge only (free)

    # Post-LN encoder layers, statically unrolled (num_layers is small).
    for l in range(num_layers):
        # ---- fused Q/K/V projection: ONE bf16 matmul (scale folded into Q cols) ----
        qkv = (jnp.dot(xf.astype(jnp.bfloat16), wqkv_ref[l],
                       preferred_element_type=jnp.float32)
               + bqkv_ref[l])                      # (BS, 3*HD) f32
        qkv_b = qkv.astype(jnp.bfloat16)

        # ---- per-head attention (MXU work is per-head regardless); results are
        #      written lane-dense into the (bb, S, HD) scratch, no concatenate ----
        for h in range(H):
            qh = qkv_b[:, h * Dh:(h + 1) * Dh].reshape(bb, S, Dh)
            kh = qkv_b[:, HD + h * Dh:HD + (h + 1) * Dh].reshape(bb, S, Dh)
            vh = qkv_b[:, 2 * HD + h * Dh:2 * HD + (h + 1) * Dh].reshape(bb, S, Dh)

            s = jnp.einsum('bqe,bke->bqk', qh, kh,
                           preferred_element_type=jnp.float32)        # (bb, S, S)
            if mask_mode == 1:
                s = s + mask                                          # broadcast heads
            elif mask_mode == 2:
                s = s + mask[:, h]
            s = s - jnp.max(s, axis=-1, keepdims=True)
            p = jnp.exp(s)
            # approx reciprocal (EUP slot); ~1e-4 rel. error vs exact softmax.
            p = p * pl.reciprocal(jnp.sum(p, axis=-1, keepdims=True), approx=True)

            ctx_scratch[:, :, h * Dh:(h + 1) * Dh] = jnp.einsum(
                'bqk,bke->bqe', p.astype(jnp.bfloat16), vh,
                preferred_element_type=jnp.float32)                   # (bb, S, Dh)

        ctx = ctx_scratch[...].reshape(BS, HD)

        # ---- single fused output projection over (head, head_dim) ----
        attn = (jnp.dot(ctx.astype(jnp.bfloat16), wo_ref[l],
                        preferred_element_type=jnp.float32)
                + bo_ref[l])                                          # (BS, D)

        # ---- residual + LayerNorm1 (f32) ----
        src = xf + attn
        mu = jnp.mean(src, axis=-1, keepdims=True)
        var = jnp.mean((src - mu) ** 2, axis=-1, keepdims=True)
        src = (src - mu) * jax.lax.rsqrt(var + eps) * g1_ref[l] + be1_ref[l]

        # ---- FFN: linear1 -> relu -> linear2 (bf16 matmuls, f32 accumulate) ----
        h1 = (jnp.dot(src.astype(jnp.bfloat16), w1_ref[l],
                      preferred_element_type=jnp.float32) + b1_ref[l])
        h1 = jnp.maximum(h1, 0.0)
        ffn = (jnp.dot(h1.astype(jnp.bfloat16), w2_ref[l],
                       preferred_element_type=jnp.float32) + b2_ref[l])

        # ---- residual + LayerNorm2 ----
        src2 = src + ffn
        mu2 = jnp.mean(src2, axis=-1, keepdims=True)
        var2 = jnp.mean((src2 - mu2) ** 2, axis=-1, keepdims=True)
        xf = (src2 - mu2) * jax.lax.rsqrt(var2 + eps) * g2_ref[l] + be2_ref[l]

    # ---- classifier head into a lane-dense (bb, S, Cpad=128) slab ----
    logits = (jnp.dot(xf.astype(jnp.bfloat16), wcls_ref[...],
                      preferred_element_type=jnp.float32) + bcls_ref[...])
    o_ref[...] = logits.reshape(bb, S, -1).astype(o_ref.dtype)


# ----------------------------------------------------------------------------
# Wrapper
# ----------------------------------------------------------------------------
def transformer_model_forward(params, emb, pos_indices, mask=None, *,
                              nhead, num_classes, batch_block=None):
    B, S, D = emb.shape
    H = nhead
    Dh = D // H
    L = params["wqkv"].shape[0]
    HD = params["wo"].shape[1]
    F = params["w1"].shape[2]
    Cpad = params["wcls_pad"].shape[1]

    # batch_block=None folds the whole batch into one grid step (single-TC
    # v5e/v6e); on v7x pass batch_block=ceil(B/2) or 1 so megacore splits it.
    bb = B if batch_block is None else int(batch_block)
    assert B % bb == 0, "batch_block must divide batch size"
    grid = (B // bb,)

    # Positional embedding gather + add hoisted out of the kernel.
    x0 = emb + params["pos_table"][pos_indices]           # (B, S, D) f32

    def full_spec(arr):
        nd = arr.ndim
        return pl.BlockSpec(arr.shape, lambda b, _n=nd: (0,) * _n)
    # TODO(synk): at real model sizes add pipeline_mode=pl.Buffered(1) to these
    # constant-index weight specs (single-buffered) to halve their VMEM cost.

    weight_names = ["wqkv", "bqkv", "wo", "bo", "w1", "b1", "w2", "b2",
                    "g1", "be1", "g2", "be2", "wcls_pad", "bcls_pad"]
    weights = [params[n] for n in weight_names]

    inputs = [x0] + weights
    in_specs = ([pl.BlockSpec((bb, S, D), lambda b: (b, 0, 0))]
                + [full_spec(w) for w in weights])

    mask_mode = 0
    if mask is not None:
        m = mask
        if m.dtype == jnp.bool_:
            # PyTorch bool attn_mask: True = disallowed -> large negative additive.
            m = jnp.where(m, -1e9, 0.0)
        m = m.astype(jnp.float32)
        if m.shape[0] == B * H and H > 1:
            # Genuinely per-head mask (PyTorch 3-D attn_mask, batch-major then head,
            # matching multiheadify's repeat ordering).
            mask_mode = 2
            inputs.append(m.reshape(B, H, S, S))
            in_specs.append(pl.BlockSpec((bb, H, S, S), lambda b: (b, 0, 0, 0)))
        else:
            # One mask per batch element; broadcast over heads inside the kernel
            # (no H-fold replication in HBM / DMA).
            mask_mode = 1
            inputs.append(m.reshape(B, S, S))
            in_specs.append(pl.BlockSpec((bb, S, S), lambda b: (b, 0, 0)))

    kernel = partial(fused_transformer_kernel, num_layers=L, nhead=H,
                     head_dim=Dh, mask_mode=mask_mode)

    # Advisory cost estimate for XLA's scheduler.
    flops = int(L * (2 * B * S * D * 3 * HD            # fused QKV
                     + 4 * B * H * S * S * Dh          # scores + context
                     + 2 * B * S * HD * D               # output projection
                     + 4 * B * S * D * F)               # FFN
                + 2 * B * S * D * Cpad)                  # classifier
    transcendentals = int(L * (B * H * S * S + B * H * S + 4 * B * S))
    bytes_accessed = int(sum(v.size * v.dtype.itemsize for v in inputs)
                         + B * S * Cpad * 4)

    out = pl.pallas_call(
        kernel,
        grid=grid,
        in_specs=in_specs,
        out_specs=pl.BlockSpec((bb, S, Cpad), lambda b: (b, 0, 0)),
        out_shape=jax.ShapeDtypeStruct((B, S, Cpad), jnp.float32),
        scratch_shapes=[pltpu.VMEM((bb, S, HD), jnp.float32)],
        compiler_params=pltpu.CompilerParams(
            dimension_semantics=("parallel",),
            vmem_limit_bytes=64 * 1024 * 1024),
        cost_estimate=pl.CostEstimate(flops=flops,
                                      transcendentals=transcendentals,
                                      bytes_accessed=bytes_accessed),
    )(*inputs)
    return out[..., :num_classes]


# ----------------------------------------------------------------------------
# Deterministic parameter init: layer-stacked, lane-dense, fused QKV with the
# 1/sqrt(head_dim) score scale folded into the Q columns (exact refactor),
# bf16 matmul weights, classifier padded to 128 output lanes.
# ----------------------------------------------------------------------------
def init_params(key, num_layers, d_model, nhead, dim_feedforward, num_classes):
    L, H = num_layers, nhead
    Dh = d_model // nhead
    HD = H * Dh
    keys = iter(jax.random.split(key, 16))
    nxt = lambda: next(keys)

    def uni(shape, bound):
        return jax.random.uniform(nxt(), shape, jnp.float32, -bound, bound)

    ba = 1.0 / math.sqrt(d_model)
    bf = 1.0 / math.sqrt(dim_feedforward)
    scale = 1.0 / math.sqrt(Dh)

    wq = uni((L, d_model, HD), ba) * scale       # score scale folded into Q
    wk = uni((L, d_model, HD), ba)
    wv = uni((L, d_model, HD), ba)
    wqkv = jnp.concatenate([wq, wk, wv], axis=-1)   # (L, D, 3*HD), lane-dense

    params = {
        "pos_table": jax.random.normal(nxt(), (2, d_model), jnp.float32),
        "wqkv": wqkv.astype(jnp.bfloat16),
        "bqkv": jnp.zeros((L, 1, 3 * HD), jnp.float32),
        "wo": uni((L, HD, d_model), ba).astype(jnp.bfloat16),
        "bo": jnp.zeros((L, 1, d_model), jnp.float32),
        "w1": uni((L, d_model, dim_feedforward), ba).astype(jnp.bfloat16),
        "b1": uni((L, 1, dim_feedforward), ba),
        "w2": uni((L, dim_feedforward, d_model), bf).astype(jnp.bfloat16),
        "b2": uni((L, 1, d_model), bf),
        "g1": jnp.ones((L, 1, d_model), jnp.float32),
        "be1": jnp.zeros((L, 1, d_model), jnp.float32),
        "g2": jnp.ones((L, 1, d_model), jnp.float32),
        "be2": jnp.zeros((L, 1, d_model), jnp.float32),
    }
    cpad = max(128, ((num_classes + 127) // 128) * 128)
    wcls = uni((d_model, num_classes), ba)
    bcls = uni((1, num_classes), ba)
    params["wcls_pad"] = (jnp.zeros((d_model, cpad), jnp.float32)
                          .at[:, :num_classes].set(wcls)).astype(jnp.bfloat16)
    params["bcls_pad"] = (jnp.zeros((1, cpad), jnp.float32)
                          .at[:, :num_classes].set(bcls))
    return params


# ----------------------------------------------------------------------------
if __name__ == "__main__":
    B, S, D = 2, 8, 32                   # batch, seq_len, emb_dim
    nhead, num_layers = 4, 2
    dim_feedforward, num_classes = 64, 10

    key = jax.random.PRNGKey(0)
    k_emb, k_idx, k_mask, k_par = jax.random.split(key, 4)
    emb = jax.random.normal(k_emb, (B, S, D), jnp.float32)
    pos_indices = jax.random.randint(k_idx, (B, S), 0, 2, jnp.int32)
    params = init_params(k_par, num_layers, D, nhead, dim_feedforward, num_classes)

    # Fold the whole batch into one grid step (best on single-TC v5e/v6e).
    fwd_fold = jax.jit(partial(transformer_model_forward,
                               nhead=nhead, num_classes=num_classes))
    # One batch element per grid step (lets v7x's two TensorCores split the batch).
    fwd_split = jax.jit(partial(transformer_model_forward,
                                nhead=nhead, num_classes=num_classes,
                                batch_block=1))

    # No-mask fast path (mask DMA + add compiled out).
    out = jax.block_until_ready(fwd_fold(params, emb, pos_indices))
    assert out.shape == (B, S, num_classes)
    assert bool(jnp.all(jnp.isfinite(out)))

    # Shared (B, S, S) additive mask, broadcast over heads inside the kernel.
    mask = jnp.where(jax.random.uniform(k_mask, (B, S, S)) < 0.25, -1e9, 0.0)
    out_m = jax.block_until_ready(fwd_split(params, emb, pos_indices, mask))
    assert out_m.shape == (B, S, num_classes)
    assert bool(jnp.all(jnp.isfinite(out_m)))

    # Per-head (B*nhead, S, S) mask path (PyTorch 3-D attn_mask convention).
    mask_ph = jnp.repeat(mask, nhead, axis=0)
    out_ph = jax.block_until_ready(fwd_fold(params, emb, pos_indices, mask_ph))
    assert out_ph.shape == (B, S, num_classes)
    assert bool(jnp.all(jnp.isfinite(out_ph)))
    # Shared and per-head masks encode the same thing here -> results must agree.
    assert bool(jnp.allclose(out_m, out_ph, atol=1e-3, rtol=1e-3))

    print("KERNEL_OK")
</pallas_src>

<mosaic_0001>
module attributes {stable_mosaic.version = 11 : i64} {
  func.func @fused_transformer_kernel(%arg0: i32, %arg1: memref<2x8x32xf32, #tpu.memory_space<vmem>>, %arg2: memref<2x32x96xbf16, #tpu.memory_space<vmem>>, %arg3: memref<2x1x96xf32, #tpu.memory_space<vmem>>, %arg4: memref<2x32x32xbf16, #tpu.memory_space<vmem>>, %arg5: memref<2x1x32xf32, #tpu.memory_space<vmem>>, %arg6: memref<2x32x64xbf16, #tpu.memory_space<vmem>>, %arg7: memref<2x1x64xf32, #tpu.memory_space<vmem>>, %arg8: memref<2x64x32xbf16, #tpu.memory_space<vmem>>, %arg9: memref<2x1x32xf32, #tpu.memory_space<vmem>>, %arg10: memref<2x1x32xf32, #tpu.memory_space<vmem>>, %arg11: memref<2x1x32xf32, #tpu.memory_space<vmem>>, %arg12: memref<2x1x32xf32, #tpu.memory_space<vmem>>, %arg13: memref<2x1x32xf32, #tpu.memory_space<vmem>>, %arg14: memref<32x128xbf16, #tpu.memory_space<vmem>>, %arg15: memref<1x128xf32, #tpu.memory_space<vmem>>, %arg16: memref<2x8x128xf32, #tpu.memory_space<vmem>>, %arg17: memref<2x8x32xf32, #tpu.memory_space<vmem>>) attributes {dimension_semantics = [#tpu.dimension_semantics<parallel>], iteration_bounds = array<i64: 1>, scalar_prefetch = 0 : i64, scratch_operands = 1 : i64, tpu.core_type = #tpu.core_type<tc>, window_params = [{transform_indices = @transform_0, window_bounds = array<i64: 2, 8, 32>}, {pipeline_mode = #tpu.pipeline_mode<synchronous>, transform_indices = @transform_1, window_bounds = array<i64: 2, 32, 96>}, {pipeline_mode = #tpu.pipeline_mode<synchronous>, transform_indices = @transform_2, window_bounds = array<i64: 2, 1, 96>}, {pipeline_mode = #tpu.pipeline_mode<synchronous>, transform_indices = @transform_3, window_bounds = array<i64: 2, 32, 32>}, {pipeline_mode = #tpu.pipeline_mode<synchronous>, transform_indices = @transform_4, window_bounds = array<i64: 2, 1, 32>}, {pipeline_mode = #tpu.pipeline_mode<synchronous>, transform_indices = @transform_5, window_bounds = array<i64: 2, 32, 64>}, {pipeline_mode = #tpu.pipeline_mode<synchronous>, transform_indices = @transform_6, window_bounds = array<i64: 2, 1, 64>}, {pipeline_mode = #tpu.pipeline_mode<synchronous>, transform_indices = @transform_7, window_bounds = array<i64: 2, 64, 32>}, {pipeline_mode = #tpu.pipeline_mode<synchronous>, transform_indices = @transform_8, window_bounds = array<i64: 2, 1, 32>}, {pipeline_mode = #tpu.pipeline_mode<synchronous>, transform_indices = @transform_9, window_bounds = array<i64: 2, 1, 32>}, {pipeline_mode = #tpu.pipeline_mode<synchronous>, transform_indices = @transform_10, window_bounds = array<i64: 2, 1, 32>}, {pipeline_mode = #tpu.pipeline_mode<synchronous>, transform_indices = @transform_11, window_bounds = array<i64: 2, 1, 32>}, {pipeline_mode = #tpu.pipeline_mode<synchronous>, transform_indices = @transform_12, window_bounds = array<i64: 2, 1, 32>}, {pipeline_mode = #tpu.pipeline_mode<synchronous>, transform_indices = @transform_13, window_bounds = array<i64: 32, 128>}, {pipeline_mode = #tpu.pipeline_mode<synchronous>, transform_indices = @transform_14, window_bounds = array<i64: 1, 128>}, {transform_indices = @transform_15, window_bounds = array<i64: 2, 8, 128>}]} {
    %c0 = arith.constant 0 : index
    %c0_0 = arith.constant 0 : index
    %c0_1 = arith.constant 0 : index
    %0 = vector.load %arg1[%c0, %c0_0, %c0_1] : memref<2x8x32xf32, #tpu.memory_space<vmem>>, vector<2x8x32xf32>
    %1 = vector.shape_cast %0 : vector<2x8x32xf32> to vector<16x32xf32>
    %2 = arith.truncf %1 : vector<16x32xf32> to vector<16x32xbf16>
    %c0_2 = arith.constant 0 : index
    %c0_3 = arith.constant 0 : index
    %c0_4 = arith.constant 0 : index
    %3 = vector.load %arg2[%c0_2, %c0_3, %c0_4] : memref<2x32x96xbf16, #tpu.memory_space<vmem>>, vector<1x32x96xbf16>
    %4 = vector.shape_cast %3 : vector<1x32x96xbf16> to vector<32x96xbf16>
    %cst = arith.constant dense<0.000000e+00> : vector<16x96xf32>
    %5 = tpu.matmul %2, %4, %cst {dimension_numbers = #tpu.dot_dimension_numbers<[1], [0], [0], [1], [0, 0, 1, 1], [], []>} : vector<16x32xbf16>, vector<32x96xbf16>, vector<16x96xf32> -> vector<16x96xf32>
    %c0_5 = arith.constant 0 : index
    %c0_6 = arith.constant 0 : index
    %c0_7 = arith.constant 0 : index
    %6 = vector.load %arg3[%c0_5, %c0_6, %c0_7] : memref<2x1x96xf32, #tpu.memory_space<vmem>>, vector<1x1x96xf32>
    %7 = vector.shape_cast %6 : vector<1x1x96xf32> to vector<1x96xf32>
    %8 = vector.broadcast %7 : vector<1x96xf32> to vector<16x96xf32>
    %9 = arith.addf %5, %8 : vector<16x96xf32>
    %10 = arith.truncf %9 : vector<16x96xf32> to vector<16x96xbf16>
    %11 = vector.extract_strided_slice %10 {offsets = [0, 0], sizes = [16, 8], strides = [1, 1]} : vector<16x96xbf16> to vector<16x8xbf16>
    %12 = vector.shape_cast %11 : vector<16x8xbf16> to vector<2x8x8xbf16>
    %13 = vector.extract_strided_slice %10 {offsets = [0, 32], sizes = [16, 8], strides = [1, 1]} : vector<16x96xbf16> to vector<16x8xbf16>
    %14 = vector.shape_cast %13 : vector<16x8xbf16> to vector<2x8x8xbf16>
    %15 = vector.extract_strided_slice %10 {offsets = [0, 64], sizes = [16, 8], strides = [1, 1]} : vector<16x96xbf16> to vector<16x8xbf16>
    %16 = vector.shape_cast %15 : vector<16x8xbf16> to vector<2x8x8xbf16>
    "tpu.trace_start"() <{level = 10 : i32, message = "bqe,bke->bqk"}> : () -> ()
    %cst_8 = arith.constant dense<0.000000e+00> : vector<2x8x8xf32>
    %17 = tpu.matmul %12, %14, %cst_8 {dimension_numbers = #tpu.dot_dimension_numbers<[2], [2], [1], [1], [0, 0, 0, 1, 1, 1], [0], [0]>} : vector<2x8x8xbf16>, vector<2x8x8xbf16>, vector<2x8x8xf32> -> vector<2x8x8xf32>
    "tpu.trace_stop"() : () -> ()
    %cst_9 = arith.constant dense<0xFF800000> : vector<2x8xf32>
    %18 = vector.multi_reduction <maximumf>, %17, %cst_9 [2] : vector<2x8x8xf32> to vector<2x8xf32>
    %19 = vector.shape_cast %18 : vector<2x8xf32> to vector<2x8x1xf32>
    %20 = vector.broadcast %19 : vector<2x8x1xf32> to vector<2x8x8xf32>
    %21 = arith.subf %17, %20 : vector<2x8x8xf32>
    %22 = math.exp %21 : vector<2x8x8xf32>
    %cst_10 = arith.constant dense<0.000000e+00> : vector<2x8xf32>
    %23 = vector.multi_reduction <add>, %22, %cst_10 [2] : vector<2x8x8xf32> to vector<2x8xf32>
    %24 = vector.shape_cast %23 : vector<2x8xf32> to vector<2x8x1xf32>
    %25 = tpu.reciprocal %24 {approx = true} : vector<2x8x1xf32> -> vector<2x8x1xf32>
    %26 = vector.broadcast %25 : vector<2x8x1xf32> to vector<2x8x8xf32>
    %27 = arith.mulf %22, %26 : vector<2x8x8xf32>
    %28 = arith.truncf %27 : vector<2x8x8xf32> to vector<2x8x8xbf16>
    "tpu.trace_start"() <{level = 10 : i32, message = "bqk,bke->bqe"}> : () -> ()
    %cst_11 = arith.constant dense<0.000000e+00> : vector<2x8x8xf32>
    %29 = tpu.matmul %28, %16, %cst_11 {dimension_numbers = #tpu.dot_dimension_numbers<[2], [1], [1], [2], [0, 0, 0, 1, 1, 2], [0], [0]>} : vector<2x8x8xbf16>, vector<2x8x8xbf16>, vector<2x8x8xf32> -> vector<2x8x8xf32>
    "tpu.trace_stop"() : () -> ()
    %c0_12 = arith.constant 0 : index
    %c0_13 = arith.constant 0 : index
    %c0_14 = arith.constant 0 : index
    %30 = vector.load %arg17[%c0_12, %c0_13, %c0_14] : memref<2x8x32xf32, #tpu.memory_space<vmem>>, vector<2x8x8xf32>
    tpu.vector_store %arg17[%c0_12, %c0_13, %c0_14], %29 {strides = array<i32>} : memref<2x8x32xf32, #tpu.memory_space<vmem>>, vector<2x8x8xf32>,
    %31 = vector.extract_strided_slice %10 {offsets = [0, 8], sizes = [16, 8], strides = [1, 1]} : vector<16x96xbf16> to vector<16x8xbf16>
    %32 = vector.shape_cast %31 : vector<16x8xbf16> to vector<2x8x8xbf16>
    %33 = vector.extract_strided_slice %10 {offsets = [0, 40], sizes = [16, 8], strides = [1, 1]} : vector<16x96xbf16> to vector<16x8xbf16>
    %34 = vector.shape_cast %33 : vector<16x8xbf16> to vector<2x8x8xbf16>
    %35 = vector.extract_strided_slice %10 {offsets = [0, 72], sizes = [16, 8], strides = [1, 1]} : vector<16x96xbf16> to vector<16x8xbf16>
    %36 = vector.shape_cast %35 : vector<16x8xbf16> to vector<2x8x8xbf16>
    "tpu.trace_start"() <{level = 10 : i32, message = "bqe,bke->bqk"}> : () -> ()
    %cst_15 = arith.constant dense<0.000000e+00> : vector<2x8x8xf32>
    %37 = tpu.matmul %32, %34, %cst_15 {dimension_numbers = #tpu.dot_dimension_numbers<[2], [2], [1], [1], [0, 0, 0, 1, 1, 1], [0], [0]>} : vector<2x8x8xbf16>, vector<2x8x8xbf16>, vector<2x8x8xf32> -> vector<2x8x8xf32>
    "tpu.trace_stop"() : () -> ()
    %cst_16 = arith.constant dense<0xFF800000> : vector<2x8xf32>
    %38 = vector.multi_reduction <maximumf>, %37, %cst_16 [2] : vector<2x8x8xf32> to vector<2x8xf32>
    %39 = vector.shape_cast %38 : vector<2x8xf32> to vector<2x8x1xf32>
    %40 = vector.broadcast %39 : vector<2x8x1xf32> to vector<2x8x8xf32>
    %41 = arith.subf %37, %40 : vector<2x8x8xf32>
    %42 = math.exp %41 : vector<2x8x8xf32>
    %cst_17 = arith.constant dense<0.000000e+00> : vector<2x8xf32>
    %43 = vector.multi_reduction <add>, %42, %cst_17 [2] : vector<2x8x8xf32> to vector<2x8xf32>
    %44 = vector.shape_cast %43 : vector<2x8xf32> to vector<2x8x1xf32>
    %45 = tpu.reciprocal %44 {approx = true} : vector<2x8x1xf32> -> vector<2x8x1xf32>
    %46 = vector.broadcast %45 : vector<2x8x1xf32> to vector<2x8x8xf32>
    %47 = arith.mulf %42, %46 : vector<2x8x8xf32>
    %48 = arith.truncf %47 : vector<2x8x8xf32> to vector<2x8x8xbf16>
    "tpu.trace_start"() <{level = 10 : i32, message = "bqk,bke->bqe"}> : () -> ()
    %cst_18 = arith.constant dense<0.000000e+00> : vector<2x8x8xf32>
    %49 = tpu.matmul %48, %36, %cst_18 {dimension_numbers = #tpu.dot_dimension_numbers<[2], [1], [1], [2], [0, 0, 0, 1, 1, 2], [0], [0]>} : vector<2x8x8xbf16>, vector<2x8x8xbf16>, vector<2x8x8xf32> -> vector<2x8x8xf32>
    "tpu.trace_stop"() : () -> ()
    %c0_19 = arith.constant 0 : index
    %c0_20 = arith.constant 0 : index
    %c8 = arith.constant 8 : index
    %50 = vector.load %arg17[%c0_19, %c0_20, %c8] : memref<2x8x32xf32, #tpu.memory_space<vmem>>, vector<2x8x8xf32>
    tpu.vector_store %arg17[%c0_19, %c0_20, %c8], %49 {strides = array<i32>} : memref<2x8x32xf32, #tpu.memory_space<vmem>>, vector<2x8x8xf32>,
    %51 = vector.extract_strided_slice %10 {offsets = [0, 16], sizes = [16, 8], strides = [1, 1]} : vector<16x96xbf16> to vector<16x8xbf16>
    %52 = vector.shape_cast %51 : vector<16x8xbf16> to vector<2x8x8xbf16>
    %53 = vector.extract_strided_slice %10 {offsets = [0, 48], sizes = [16, 8], strides = [1, 1]} : vector<16x96xbf16> to vector<16x8xbf16>
    %54 = vector.shape_cast %53 : vector<16x8xbf16> to vector<2x8x8xbf16>
    %55 = vector.extract_strided_slice %10 {offsets = [0, 80], sizes = [16, 8], strides = [1, 1]} : vector<16x96xbf16> to vector<16x8xbf16>
    %56 = vector.shape_cast %55 : vector<16x8xbf16> to vector<2x8x8xbf16>
    "tpu.trace_start"() <{level = 10 : i32, message = "bqe,bke->bqk"}> : () -> ()
    %cst_21 = arith.constant dense<0.000000e+00> : vector<2x8x8xf32>
    %57 = tpu.matmul %52, %54, %cst_21 {dimension_numbers = #tpu.dot_dimension_numbers<[2], [2], [1], [1], [0, 0, 0, 1, 1, 1], [0], [0]>} : vector<2x8x8xbf16>, vector<2x8x8xbf16>, vector<2x8x8xf32> -> vector<2x8x8xf32>
    "tpu.trace_stop"() : () -> ()
    %cst_22 = arith.constant dense<0xFF800000> : vector<2x8xf32>
    %58 = vector.multi_reduction <maximumf>, %57, %cst_22 [2] : vector<2x8x8xf32> to vector<2x8xf32>
    %59 = vector.shape_cast %58 : vector<2x8xf32> to vector<2x8x1xf32>
    %60 = vector.broadcast %59 : vector<2x8x1xf32> to vector<2x8x8xf32>
    %61 = arith.subf %57, %60 : vector<2x8x8xf32>
    %62 = math.exp %61 : vector<2x8x8xf32>
    %cst_23 = arith.constant dense<0.000000e+00> : vector<2x8xf32>
    %63 = vector.multi_reduction <add>, %62, %cst_23 [2] : vector<2x8x8xf32> to vector<2x8xf32>
    %64 = vector.shape_cast %63 : vector<2x8xf32> to vector<2x8x1xf32>
    %65 = tpu.reciprocal %64 {approx = true} : vector<2x8x1xf32> -> vector<2x8x1xf32>
    %66 = vector.broadcast %65 : vector<2x8x1xf32> to vector<2x8x8xf32>
    %67 = arith.mulf %62, %66 : vector<2x8x8xf32>
    %68 = arith.truncf %67 : vector<2x8x8xf32> to vector<2x8x8xbf16>
    "tpu.trace_start"() <{level = 10 : i32, message = "bqk,bke->bqe"}> : () -> ()
    %cst_24 = arith.constant dense<0.000000e+00> : vector<2x8x8xf32>
    %69 = tpu.matmul %68, %56, %cst_24 {dimension_numbers = #tpu.dot_dimension_numbers<[2], [1], [1], [2], [0, 0, 0, 1, 1, 2], [0], [0]>} : vector<2x8x8xbf16>, vector<2x8x8xbf16>, vector<2x8x8xf32> -> vector<2x8x8xf32>
    "tpu.trace_stop"() : () -> ()
    %c0_25 = arith.constant 0 : index
    %c0_26 = arith.constant 0 : index
    %c16 = arith.constant 16 : index
    %70 = vector.load %arg17[%c0_25, %c0_26, %c16] : memref<2x8x32xf32, #tpu.memory_space<vmem>>, vector<2x8x8xf32>
    tpu.vector_store %arg17[%c0_25, %c0_26, %c16], %69 {strides = array<i32>} : memref<2x8x32xf32, #tpu.memory_space<vmem>>, vector<2x8x8xf32>,
    %71 = vector.extract_strided_slice %10 {offsets = [0, 24], sizes = [16, 8], strides = [1, 1]} : vector<16x96xbf16> to vector<16x8xbf16>
    %72 = vector.shape_cast %71 : vector<16x8xbf16> to vector<2x8x8xbf16>
    %73 = vector.extract_strided_slice %10 {offsets = [0, 56], sizes = [16, 8], strides = [1, 1]} : vector<16x96xbf16> to vector<16x8xbf16>
    %74 = vector.shape_cast %73 : vector<16x8xbf16> to vector<2x8x8xbf16>
    %75 = vector.extract_strided_slice %10 {offsets = [0, 88], sizes = [16, 8], strides = [1, 1]} : vector<16x96xbf16> to vector<16x8xbf16>
    %76 = vector.shape_cast %75 : vector<16x8xbf16> to vector<2x8x8xbf16>
    "tpu.trace_start"() <{level = 10 : i32, message = "bqe,bke->bqk"}> : () -> ()
    %cst_27 = arith.constant dense<0.000000e+00> : vector<2x8x8xf32>
    %77 = tpu.matmul %72, %74, %cst_27 {dimension_numbers = #tpu.dot_dimension_numbers<[2], [2], [1], [1], [0, 0, 0, 1, 1, 1], [0], [0]>} : vector<2x8x8xbf16>, vector<2x8x8xbf16>, vector<2x8x8xf32> -> vector<2x8x8xf32>
    "tpu.trace_stop"() : () -> ()
    %cst_28 = arith.constant dense<0xFF800000> : vector<2x8xf32>
    %78 = vector.multi_reduction <maximumf>, %77, %cst_28 [2] : vector<2x8x8xf32> to vector<2x8xf32>
    %79 = vector.shape_cast %78 : vector<2x8xf32> to vector<2x8x1xf32>
    %80 = vector.broadcast %79 : vector<2x8x1xf32> to vector<2x8x8xf32>
    %81 = arith.subf %77, %80 : vector<2x8x8xf32>
    %82 = math.exp %81 : vector<2x8x8xf32>
    %cst_29 = arith.constant dense<0.000000e+00> : vector<2x8xf32>
    %83 = vector.multi_reduction <add>, %82, %cst_29 [2] : vector<2x8x8xf32> to vector<2x8xf32>
    %84 = vector.shape_cast %83 : vector<2x8xf32> to vector<2x8x1xf32>
    %85 = tpu.reciprocal %84 {approx = true} : vector<2x8x1xf32> -> vector<2x8x1xf32>
    %86 = vector.broadcast %85 : vector<2x8x1xf32> to vector<2x8x8xf32>
    %87 = arith.mulf %82, %86 : vector<2x8x8xf32>
    %88 = arith.truncf %87 : vector<2x8x8xf32> to vector<2x8x8xbf16>
    "tpu.trace_start"() <{level = 10 : i32, message = "bqk,bke->bqe"}> : () -> ()
    %cst_30 = arith.constant dense<0.000000e+00> : vector<2x8x8xf32>
    %89 = tpu.matmul %88, %76, %cst_30 {dimension_numbers = #tpu.dot_dimension_numbers<[2], [1], [1], [2], [0, 0, 0, 1, 1, 2], [0], [0]>} : vector<2x8x8xbf16>, vector<2x8x8xbf16>, vector<2x8x8xf32> -> vector<2x8x8xf32>
    "tpu.trace_stop"() : () -> ()
    %c0_31 = arith.constant 0 : index
    %c0_32 = arith.constant 0 : index
    %c24 = arith.constant 24 : index
    %90 = vector.load %arg17[%c0_31, %c0_32, %c24] : memref<2x8x32xf32, #tpu.memory_space<vmem>>, vector<2x8x8xf32>
    tpu.vector_store %arg17[%c0_31, %c0_32, %c24], %89 {strides = array<i32>} : memref<2x8x32xf32, #tpu.memory_space<vmem>>, vector<2x8x8xf32>,
    %c0_33 = arith.constant 0 : index
    %c0_34 = arith.constant 0 : index
    %c0_35 = arith.constant 0 : index
    %91 = vector.load %arg17[%c0_33, %c0_34, %c0_35] : memref<2x8x32xf32, #tpu.memory_space<vmem>>, vector<2x8x32xf32>
    %92 = vector.shape_cast %91 : vector<2x8x32xf32> to vector<16x32xf32>
    %93 = arith.truncf %92 : vector<16x32xf32> to vector<16x32xbf16>
    %c0_36 = arith.constant 0 : index
    %c0_37 = arith.constant 0 : index
    %c0_38 = arith.constant 0 : index
    %94 = vector.load %arg4[%c0_36, %c0_37, %c0_38] : memref<2x32x32xbf16, #tpu.memory_space<vmem>>, vector<1x32x32xbf16>
    %95 = vector.shape_cast %94 : vector<1x32x32xbf16> to vector<32x32xbf16>
    %cst_39 = arith.constant dense<0.000000e+00> : vector<16x32xf32>
    %96 = tpu.matmul %93, %95, %cst_39 {dimension_numbers = #tpu.dot_dimension_numbers<[1], [0], [0], [1], [0, 0, 1, 1], [], []>} : vector<16x32xbf16>, vector<32x32xbf16>, vector<16x32xf32> -> vector<16x32xf32>
    %c0_40 = arith.constant 0 : index
    %c0_41 = arith.constant 0 : index
    %c0_42 = arith.constant 0 : index
    %97 = vector.load %arg5[%c0_40, %c0_41, %c0_42] : memref<2x1x32xf32, #tpu.memory_space<vmem>>, vector<1x1x32xf32>
    %98 = vector.shape_cast %97 : vector<1x1x32xf32> to vector<1x32xf32>
    %99 = vector.broadcast %98 : vector<1x32xf32> to vector<16x32xf32>
    %100 = arith.addf %96, %99 : vector<16x32xf32>
    %101 = arith.addf %1, %100 : vector<16x32xf32>
    %cst_43 = arith.constant dense<0.000000e+00> : vector<16xf32>
    %102 = vector.multi_reduction <add>, %101, %cst_43 [1] : vector<16x32xf32> to vector<16xf32>
    %103 = vector.shape_cast %102 : vector<16xf32> to vector<16x1xf32>
    %cst_44 = arith.constant 3.200000e+01 : f32
    %104 = vector.broadcast %cst_44 : f32 to vector<16x1xf32>
    %105 = arith.divf %103, %104 : vector<16x1xf32>
    %106 = vector.broadcast %105 : vector<16x1xf32> to vector<16x32xf32>
    %107 = arith.subf %101, %106 : vector<16x32xf32>
    %108 = arith.mulf %107, %107 : vector<16x32xf32>
    %cst_45 = arith.constant dense<0.000000e+00> : vector<16xf32>
    %109 = vector.multi_reduction <add>, %108, %cst_45 [1] : vector<16x32xf32> to vector<16xf32>
    %110 = vector.shape_cast %109 : vector<16xf32> to vector<16x1xf32>
    %cst_46 = arith.constant 3.200000e+01 : f32
    %111 = vector.broadcast %cst_46 : f32 to vector<16x1xf32>
    %112 = arith.divf %110, %111 : vector<16x1xf32>
    %113 = vector.broadcast %105 : vector<16x1xf32> to vector<16x32xf32>
    %114 = arith.subf %101, %113 : vector<16x32xf32>
    %cst_47 = arith.constant 9.99999974E-6 : f32
    %115 = vector.broadcast %cst_47 : f32 to vector<16x1xf32>
    %116 = arith.addf %112, %115 : vector<16x1xf32>
    %117 = math.rsqrt %116 : vector<16x1xf32>
    %118 = vector.broadcast %117 : vector<16x1xf32> to vector<16x32xf32>
    %119 = arith.mulf %114, %118 : vector<16x32xf32>
    %c0_48 = arith.constant 0 : index
    %c0_49 = arith.constant 0 : index
    %c0_50 = arith.constant 0 : index
    %120 = vector.load %arg10[%c0_48, %c0_49, %c0_50] : memref<2x1x32xf32, #tpu.memory_space<vmem>>, vector<1x1x32xf32>
    %121 = vector.shape_cast %120 : vector<1x1x32xf32> to vector<1x32xf32>
    %122 = vector.broadcast %121 : vector<1x32xf32> to vector<16x32xf32>
    %123 = arith.mulf %119, %122 : vector<16x32xf32>
    %c0_51 = arith.constant 0 : index
    %c0_52 = arith.constant 0 : index
    %c0_53 = arith.constant 0 : index
    %124 = vector.load %arg11[%c0_51, %c0_52, %c0_53] : memref<2x1x32xf32, #tpu.memory_space<vmem>>, vector<1x1x32xf32>
    %125 = vector.shape_cast %124 : vector<1x1x32xf32> to vector<1x32xf32>
    %126 = vector.broadcast %125 : vector<1x32xf32> to vector<16x32xf32>
    %127 = arith.addf %123, %126 : vector<16x32xf32>
    %128 = arith.truncf %127 : vector<16x32xf32> to vector<16x32xbf16>
    %c0_54 = arith.constant 0 : index
    %c0_55 = arith.constant 0 : index
    %c0_56 = arith.constant 0 : index
    %129 = vector.load %arg6[%c0_54, %c0_55, %c0_56] : memref<2x32x64xbf16, #tpu.memory_space<vmem>>, vector<1x32x64xbf16>
    %130 = vector.shape_cast %129 : vector<1x32x64xbf16> to vector<32x64xbf16>
    %cst_57 = arith.constant dense<0.000000e+00> : vector<16x64xf32>
    %131 = tpu.matmul %128, %130, %cst_57 {dimension_numbers = #tpu.dot_dimension_numbers<[1], [0], [0], [1], [0, 0, 1, 1], [], []>} : vector<16x32xbf16>, vector<32x64xbf16>, vector<16x64xf32> -> vector<16x64xf32>
    %c0_58 = arith.constant 0 : index
    %c0_59 = arith.constant 0 : index
    %c0_60 = arith.constant 0 : index
    %132 = vector.load %arg7[%c0_58, %c0_59, %c0_60] : memref<2x1x64xf32, #tpu.memory_space<vmem>>, vector<1x1x64xf32>
    %133 = vector.shape_cast %132 : vector<1x1x64xf32> to vector<1x64xf32>
    %134 = vector.broadcast %133 : vector<1x64xf32> to vector<16x64xf32>
    %135 = arith.addf %131, %134 : vector<16x64xf32>
    %cst_61 = arith.constant 0.000000e+00 : f32
    %136 = vector.broadcast %cst_61 : f32 to vector<16x64xf32>
    %137 = arith.maximumf %135, %136 : vector<16x64xf32>
    %138 = arith.truncf %137 : vector<16x64xf32> to vector<16x64xbf16>
    %c0_62 = arith.constant 0 : index
    %c0_63 = arith.constant 0 : index
    %c0_64 = arith.constant 0 : index
    %139 = vector.load %arg8[%c0_62, %c0_63, %c0_64] : memref<2x64x32xbf16, #tpu.memory_space<vmem>>, vector<1x64x32xbf16>
    %140 = vector.shape_cast %139 : vector<1x64x32xbf16> to vector<64x32xbf16>
    %cst_65 = arith.constant dense<0.000000e+00> : vector<16x32xf32>
    %141 = tpu.matmul %138, %140, %cst_65 {dimension_numbers = #tpu.dot_dimension_numbers<[1], [0], [0], [1], [0, 0, 1, 1], [], []>} : vector<16x64xbf16>, vector<64x32xbf16>, vector<16x32xf32> -> vector<16x32xf32>
    %c0_66 = arith.constant 0 : index
    %c0_67 = arith.constant 0 : index
    %c0_68 = arith.constant 0 : index
    %142 = vector.load %arg9[%c0_66, %c0_67, %c0_68] : memref<2x1x32xf32, #tpu.memory_space<vmem>>, vector<1x1x32xf32>
    %143 = vector.shape_cast %142 : vector<1x1x32xf32> to vector<1x32xf32>
    %144 = vector.broadcast %143 : vector<1x32xf32> to vector<16x32xf32>
    %145 = arith.addf %141, %144 : vector<16x32xf32>
    %146 = arith.addf %127, %145 : vector<16x32xf32>
    %cst_69 = arith.constant dense<0.000000e+00> : vector<16xf32>
    %147 = vector.multi_reduction <add>, %146, %cst_69 [1] : vector<16x32xf32> to vector<16xf32>
    %148 = vector.shape_cast %147 : vector<16xf32> to vector<16x1xf32>
    %cst_70 = arith.constant 3.200000e+01 : f32
    %149 = vector.broadcast %cst_70 : f32 to vector<16x1xf32>
    %150 = arith.divf %148, %149 : vector<16x1xf32>
    %151 = vector.broadcast %150 : vector<16x1xf32> to vector<16x32xf32>
    %152 = arith.subf %146, %151 : vector<16x32xf32>
    %153 = arith.mulf %152, %152 : vector<16x32xf32>
    %cst_71 = arith.constant dense<0.000000e+00> : vector<16xf32>
    %154 = vector.multi_reduction <add>, %153, %cst_71 [1] : vector<16x32xf32> to vector<16xf32>
    %155 = vector.shape_cast %154 : vector<16xf32> to vector<16x1xf32>
    %cst_72 = arith.constant 3.200000e+01 : f32
    %156 = vector.broadcast %cst_72 : f32 to vector<16x1xf32>
    %157 = arith.divf %155, %156 : vector<16x1xf32>
    %158 = vector.broadcast %150 : vector<16x1xf32> to vector<16x32xf32>
    %159 = arith.subf %146, %158 : vector<16x32xf32>
    %cst_73 = arith.constant 9.99999974E-6 : f32
    %160 = vector.broadcast %cst_73 : f32 to vector<16x1xf32>
    %161 = arith.addf %157, %160 : vector<16x1xf32>
    %162 = math.rsqrt %161 : vector<16x1xf32>
    %163 = vector.broadcast %162 : vector<16x1xf32> to vector<16x32xf32>
    %164 = arith.mulf %159, %163 : vector<16x32xf32>
    %c0_74 = arith.constant 0 : index
    %c0_75 = arith.constant 0 : index
    %c0_76 = arith.constant 0 : index
    %165 = vector.load %arg12[%c0_74, %c0_75, %c0_76] : memref<2x1x32xf32, #tpu.memory_space<vmem>>, vector<1x1x32xf32>
    %166 = vector.shape_cast %165 : vector<1x1x32xf32> to vector<1x32xf32>
    %167 = vector.broadcast %166 : vector<1x32xf32> to vector<16x32xf32>
    %168 = arith.mulf %164, %167 : vector<16x32xf32>
    %c0_77 = arith.constant 0 : index
    %c0_78 = arith.constant 0 : index
    %c0_79 = arith.constant 0 : index
    %169 = vector.load %arg13[%c0_77, %c0_78, %c0_79] : memref<2x1x32xf32, #tpu.memory_space<vmem>>, vector<1x1x32xf32>
    %170 = vector.shape_cast %169 : vector<1x1x32xf32> to vector<1x32xf32>
    %171 = vector.broadcast %170 : vector<1x32xf32> to vector<16x32xf32>
    %172 = arith.addf %168, %171 : vector<16x32xf32>
    %173 = arith.truncf %172 : vector<16x32xf32> to vector<16x32xbf16>
    %c1 = arith.constant 1 : index
    %c0_80 = arith.constant 0 : index
    %c0_81 = arith.constant 0 : index
    %174 = vector.load %arg2[%c1, %c0_80, %c0_81] : memref<2x32x96xbf16, #tpu.memory_space<vmem>>, vector<1x32x96xbf16>
    %175 = vector.shape_cast %174 : vector<1x32x96xbf16> to vector<32x96xbf16>
    %cst_82 = arith.constant dense<0.000000e+00> : vector<16x96xf32>
    %176 = tpu.matmul %173, %175, %cst_82 {dimension_numbers = #tpu.dot_dimension_numbers<[1], [0], [0], [1], [0, 0, 1, 1], [], []>} : vector<16x32xbf16>, vector<32x96xbf16>, vector<16x96xf32> -> vector<16x96xf32>
    %c1_83 = arith.constant 1 : index
    %c0_84 = arith.constant 0 : index
    %c0_85 = arith.constant 0 : index
    %177 = vector.load %arg3[%c1_83, %c0_84, %c0_85] : memref<2x1x96xf32, #tpu.memory_space<vmem>>, vector<1x1x96xf32>
    %178 = vector.shape_cast %177 : vector<1x1x96xf32> to vector<1x96xf32>
    %179 = vector.broadcast %178 : vector<1x96xf32> to vector<16x96xf32>
    %180 = arith.addf %176, %179 : vector<16x96xf32>
    %181 = arith.truncf %180 : vector<16x96xf32> to vector<16x96xbf16>
    %182 = vector.extract_strided_slice %181 {offsets = [0, 0], sizes = [16, 8], strides = [1, 1]} : vector<16x96xbf16> to vector<16x8xbf16>
    %183 = vector.shape_cast %182 : vector<16x8xbf16> to vector<2x8x8xbf16>
    %184 = vector.extract_strided_slice %181 {offsets = [0, 32], sizes = [16, 8], strides = [1, 1]} : vector<16x96xbf16> to vector<16x8xbf16>
    %185 = vector.shape_cast %184 : vector<16x8xbf16> to vector<2x8x8xbf16>
    %186 = vector.extract_strided_slice %181 {offsets = [0, 64], sizes = [16, 8], strides = [1, 1]} : vector<16x96xbf16> to vector<16x8xbf16>
    %187 = vector.shape_cast %186 : vector<16x8xbf16> to vector<2x8x8xbf16>
    "tpu.trace_start"() <{level = 10 : i32, message = "bqe,bke->bqk"}> : () -> ()
    %cst_86 = arith.constant dense<0.000000e+00> : vector<2x8x8xf32>
    %188 = tpu.matmul %183, %185, %cst_86 {dimension_numbers = #tpu.dot_dimension_numbers<[2], [2], [1], [1], [0, 0, 0, 1, 1, 1], [0], [0]>} : vector<2x8x8xbf16>, vector<2x8x8xbf16>, vector<2x8x8xf32> -> vector<2x8x8xf32>
    "tpu.trace_stop"() : () -> ()
    %cst_87 = arith.constant dense<0xFF800000> : vector<2x8xf32>
    %189 = vector.multi_reduction <maximumf>, %188, %cst_87 [2] : vector<2x8x8xf32> to vector<2x8xf32>
    %190 = vector.shape_cast %189 : vector<2x8xf32> to vector<2x8x1xf32>
    %191 = vector.broadcast %190 : vector<2x8x1xf32> to vector<2x8x8xf32>
    %192 = arith.subf %188, %191 : vector<2x8x8xf32>
    %193 = math.exp %192 : vector<2x8x8xf32>
    %cst_88 = arith.constant dense<0.000000e+00> : vector<2x8xf32>
    %194 = vector.multi_reduction <add>, %193, %cst_88 [2] : vector<2x8x8xf32> to vector<2x8xf32>
    %195 = vector.shape_cast %194 : vector<2x8xf32> to vector<2x8x1xf32>
    %196 = tpu.reciprocal %195 {approx = true} : vector<2x8x1xf32> -> vector<2x8x1xf32>
    %197 = vector.broadcast %196 : vector<2x8x1xf32> to vector<2x8x8xf32>
    %198 = arith.mulf %193, %197 : vector<2x8x8xf32>
    %199 = arith.truncf %198 : vector<2x8x8xf32> to vector<2x8x8xbf16>
    "tpu.trace_start"() <{level = 10 : i32, message = "bqk,bke->bqe"}> : () -> ()
    %cst_89 = arith.constant dense<0.000000e+00> : vector<2x8x8xf32>
    %200 = tpu.matmul %199, %187, %cst_89 {dimension_numbers = #tpu.dot_dimension_numbers<[2], [1], [1], [2], [0, 0, 0, 1, 1, 2], [0], [0]>} : vector<2x8x8xbf16>, vector<2x8x8xbf16>, vector<2x8x8xf32> -> vector<2x8x8xf32>
    "tpu.trace_stop"() : () -> ()
    %c0_90 = arith.constant 0 : index
    %c0_91 = arith.constant 0 : index
    %c0_92 = arith.constant 0 : index
    %201 = vector.load %arg17[%c0_90, %c0_91, %c0_92] : memref<2x8x32xf32, #tpu.memory_space<vmem>>, vector<2x8x8xf32>
    tpu.vector_store %arg17[%c0_90, %c0_91, %c0_92], %200 {strides = array<i32>} : memref<2x8x32xf32, #tpu.memory_space<vmem>>, vector<2x8x8xf32>,
    %202 = vector.extract_strided_slice %181 {offsets = [0, 8], sizes = [16, 8], strides = [1, 1]} : vector<16x96xbf16> to vector<16x8xbf16>
    %203 = vector.shape_cast %202 : vector<16x8xbf16> to vector<2x8x8xbf16>
    %204 = vector.extract_strided_slice %181 {offsets = [0, 40], sizes = [16, 8], strides = [1, 1]} : vector<16x96xbf16> to vector<16x8xbf16>
    %205 = vector.shape_cast %204 : vector<16x8xbf16> to vector<2x8x8xbf16>
    %206 = vector.extract_strided_slice %181 {offsets = [0, 72], sizes = [16, 8], strides = [1, 1]} : vector<16x96xbf16> to vector<16x8xbf16>
    %207 = vector.shape_cast %206 : vector<16x8xbf16> to vector<2x8x8xbf16>
    "tpu.trace_start"() <{level = 10 : i32, message = "bqe,bke->bqk"}> : () -> ()
    %cst_93 = arith.constant dense<0.000000e+00> : vector<2x8x8xf32>
    %208 = tpu.matmul %203, %205, %cst_93 {dimension_numbers = #tpu.dot_dimension_numbers<[2], [2], [1], [1], [0, 0, 0, 1, 1, 1], [0], [0]>} : vector<2x8x8xbf16>, vector<2x8x8xbf16>, vector<2x8x8xf32> -> vector<2x8x8xf32>
    "tpu.trace_stop"() : () -> ()
    %cst_94 = arith.constant dense<0xFF800000> : vector<2x8xf32>
    %209 = vector.multi_reduction <maximumf>, %208, %cst_94 [2] : vector<2x8x8xf32> to vector<2x8xf32>
    %210 = vector.shape_cast %209 : vector<2x8xf32> to vector<2x8x1xf32>
    %211 = vector.broadcast %210 : vector<2x8x1xf32> to vector<2x8x8xf32>
    %212 = arith.subf %208, %211 : vector<2x8x8xf32>
    %213 = math.exp %212 : vector<2x8x8xf32>
    %cst_95 = arith.constant dense<0.000000e+00> : vector<2x8xf32>
    %214 = vector.multi_reduction <add>, %213, %cst_95 [2] : vector<2x8x8xf32> to vector<2x8xf32>
    %215 = vector.shape_cast %214 : vector<2x8xf32> to vector<2x8x1xf32>
    %216 = tpu.reciprocal %215 {approx = true} : vector<2x8x1xf32> -> vector<2x8x1xf32>
    %217 = vector.broadcast %216 : vector<2x8x1xf32> to vector<2x8x8xf32>
    %218 = arith.mulf %213, %217 : vector<2x8x8xf32>
    %219 = arith.truncf %218 : vector<2x8x8xf32> to vector<2x8x8xbf16>
    "tpu.trace_start"() <{level = 10 : i32, message = "bqk,bke->bqe"}> : () -> ()
    %cst_96 = arith.constant dense<0.000000e+00> : vector<2x8x8xf32>
    %220 = tpu.matmul %219, %207, %cst_96 {dimension_numbers = #tpu.dot_dimension_numbers<[2], [1], [1], [2], [0, 0, 0, 1, 1, 2], [0], [0]>} : vector<2x8x8xbf16>, vector<2x8x8xbf16>, vector<2x8x8xf32> -> vector<2x8x8xf32>
    "tpu.trace_stop"() : () -> ()
    %c0_97 = arith.constant 0 : index
    %c0_98 = arith.constant 0 : index
    %c8_99 = arith.constant 8 : index
    %221 = vector.load %arg17[%c0_97, %c0_98, %c8_99] : memref<2x8x32xf32, #tpu.memory_space<vmem>>, vector<2x8x8xf32>
    tpu.vector_store %arg17[%c0_97, %c0_98, %c8_99], %220 {strides = array<i32>} : memref<2x8x32xf32, #tpu.memory_space<vmem>>, vector<2x8x8xf32>,
    %222 = vector.extract_strided_slice %181 {offsets = [0, 16], sizes = [16, 8], strides = [1, 1]} : vector<16x96xbf16> to vector<16x8xbf16>
    %223 = vector.shape_cast %222 : vector<16x8xbf16> to vector<2x8x8xbf16>
    %224 = vector.extract_strided_slice %181 {offsets = [0, 48], sizes = [16, 8], strides = [1, 1]} : vector<16x96xbf16> to vector<16x8xbf16>
    %225 = vector.shape_cast %224 : vector<16x8xbf16> to vector<2x8x8xbf16>
    %226 = vector.extract_strided_slice %181 {offsets = [0, 80], sizes = [16, 8], strides = [1, 1]} : vector<16x96xbf16> to vector<16x8xbf16>
    %227 = vector.shape_cast %226 : vector<16x8xbf16> to vector<2x8x8xbf16>
    "tpu.trace_start"() <{level = 10 : i32, message = "bqe,bke->bqk"}> : () -> ()
    %cst_100 = arith.constant dense<0.000000e+00> : vector<2x8x8xf32>
    %228 = tpu.matmul %223, %225, %cst_100 {dimension_numbers = #tpu.dot_dimension_numbers<[2], [2], [1], [1], [0, 0, 0, 1, 1, 1], [0], [0]>} : vector<2x8x8xbf16>, vector<2x8x8xbf16>, vector<2x8x8xf32> -> vector<2x8x8xf32>
    "tpu.trace_stop"() : () -> ()
    %cst_101 = arith.constant dense<0xFF800000> : vector<2x8xf32>
    %229 = vector.multi_reduction <maximumf>, %228, %cst_101 [2] : vector<2x8x8xf32> to vector<2x8xf32>
    %230 = vector.shape_cast %229 : vector<2x8xf32> to vector<2x8x1xf32>
    %231 = vector.broadcast %230 : vector<2x8x1xf32> to vector<2x8x8xf32>
    %232 = arith.subf %228, %231 : vector<2x8x8xf32>
    %233 = math.exp %232 : vector<2x8x8xf32>
    %cst_102 = arith.constant dense<0.000000e+00> : vector<2x8xf32>
    %234 = vector.multi_reduction <add>, %233, %cst_102 [2] : vector<2x8x8xf32> to vector<2x8xf32>
    %235 = vector.shape_cast %234 : vector<2x8xf32> to vector<2x8x1xf32>
    %236 = tpu.reciprocal %235 {approx = true} : vector<2x8x1xf32> -> vector<2x8x1xf32>
    %237 = vector.broadcast %236 : vector<2x8x1xf32> to vector<2x8x8xf32>
    %238 = arith.mulf %233, %237 : vector<2x8x8xf32>
    %239 = arith.truncf %238 : vector<2x8x8xf32> to vector<2x8x8xbf16>
    "tpu.trace_start"() <{level = 10 : i32, message = "bqk,bke->bqe"}> : () -> ()
    %cst_103 = arith.constant dense<0.000000e+00> : vector<2x8x8xf32>
    %240 = tpu.matmul %239, %227, %cst_103 {dimension_numbers = #tpu.dot_dimension_numbers<[2], [1], [1], [2], [0, 0, 0, 1, 1, 2], [0], [0]>} : vector<2x8x8xbf16>, vector<2x8x8xbf16>, vector<2x8x8xf32> -> vector<2x8x8xf32>
    "tpu.trace_stop"() : () -> ()
    %c0_104 = arith.constant 0 : index
    %c0_105 = arith.constant 0 : index
    %c16_106 = arith.constant 16 : index
    %241 = vector.load %arg17[%c0_104, %c0_105, %c16_106] : memref<2x8x32xf32, #tpu.memory_space<vmem>>, vector<2x8x8xf32>
    tpu.vector_store %arg17[%c0_104, %c0_105, %c16_106], %240 {strides = array<i32>} : memref<2x8x32xf32, #tpu.memory_space<vmem>>, vector<2x8x8xf32>,
    %242 = vector.extract_strided_slice %181 {offsets = [0, 24], sizes = [16, 8], strides = [1, 1]} : vector<16x96xbf16> to vector<16x8xbf16>
    %243 = vector.shape_cast %242 : vector<16x8xbf16> to vector<2x8x8xbf16>
    %244 = vector.extract_strided_slice %181 {offsets = [0, 56], sizes = [16, 8], strides = [1, 1]} : vector<16x96xbf16> to vector<16x8xbf16>
    %245 = vector.shape_cast %244 : vector<16x8xbf16> to vector<2x8x8xbf16>
    %246 = vector.extract_strided_slice %181 {offsets = [0, 88], sizes = [16, 8], strides = [1, 1]} : vector<16x96xbf16> to vector<16x8xbf16>
    %247 = vector.shape_cast %246 : vector<16x8xbf16> to vector<2x8x8xbf16>
    "tpu.trace_start"() <{level = 10 : i32, message = "bqe,bke->bqk"}> : () -> ()
    %cst_107 = arith.constant dense<0.000000e+00> : vector<2x8x8xf32>
    %248 = tpu.matmul %243, %245, %cst_107 {dimension_numbers = #tpu.dot_dimension_numbers<[2], [2], [1], [1], [0, 0, 0, 1, 1, 1], [0], [0]>} : vector<2x8x8xbf16>, vector<2x8x8xbf16>, vector<2x8x8xf32> -> vector<2x8x8xf32>
    "tpu.trace_stop"() : () -> ()
    %cst_108 = arith.constant dense<0xFF800000> : vector<2x8xf32>
    %249 = vector.multi_reduction <maximumf>, %248, %cst_108 [2] : vector<2x8x8xf32> to vector<2x8xf32>
    %250 = vector.shape_cast %249 : vector<2x8xf32> to vector<2x8x1xf32>
    %251 = vector.broadcast %250 : vector<2x8x1xf32> to vector<2x8x8xf32>
    %252 = arith.subf %248, %251 : vector<2x8x8xf32>
    %253 = math.exp %252 : vector<2x8x8xf32>
    %cst_109 = arith.constant dense<0.000000e+00> : vector<2x8xf32>
    %254 = vector.multi_reduction <add>, %253, %cst_109 [2] : vector<2x8x8xf32> to vector<2x8xf32>
    %255 = vector.shape_cast %254 : vector<2x8xf32> to vector<2x8x1xf32>
    %256 = tpu.reciprocal %255 {approx = true} : vector<2x8x1xf32> -> vector<2x8x1xf32>
    %257 = vector.broadcast %256 : vector<2x8x1xf32> to vector<2x8x8xf32>
    %258 = arith.mulf %253, %257 : vector<2x8x8xf32>
    %259 = arith.truncf %258 : vector<2x8x8xf32> to vector<2x8x8xbf16>
    "tpu.trace_start"() <{level = 10 : i32, message = "bqk,bke->bqe"}> : () -> ()
    %cst_110 = arith.constant dense<0.000000e+00> : vector<2x8x8xf32>
    %260 = tpu.matmul %259, %247, %cst_110 {dimension_numbers = #tpu.dot_dimension_numbers<[2], [1], [1], [2], [0, 0, 0, 1, 1, 2], [0], [0]>} : vector<2x8x8xbf16>, vector<2x8x8xbf16>, vector<2x8x8xf32> -> vector<2x8x8xf32>
    "tpu.trace_stop"() : () -> ()
    %c0_111 = arith.constant 0 : index
    %c0_112 = arith.constant 0 : index
    %c24_113 = arith.constant 24 : index
    %261 = vector.load %arg17[%c0_111, %c0_112, %c24_113] : memref<2x8x32xf32, #tpu.memory_space<vmem>>, vector<2x8x8xf32>
    tpu.vector_store %arg17[%c0_111, %c0_112, %c24_113], %260 {strides = array<i32>} : memref<2x8x32xf32, #tpu.memory_space<vmem>>, vector<2x8x8xf32>,
    %c0_114 = arith.constant 0 : index
    %c0_115 = arith.constant 0 : index
    %c0_116 = arith.constant 0 : index
    %262 = vector.load %arg17[%c0_114, %c0_115, %c0_116] : memref<2x8x32xf32, #tpu.memory_space<vmem>>, vector<2x8x32xf32>
    %263 = vector.shape_cast %262 : vector<2x8x32xf32> to vector<16x32xf32>
    %264 = arith.truncf %263 : vector<16x32xf32> to vector<16x32xbf16>
    %c1_117 = arith.constant 1 : index
    %c0_118 = arith.constant 0 : index
    %c0_119 = arith.constant 0 : index
    %265 = vector.load %arg4[%c1_117, %c0_118, %c0_119] : memref<2x32x32xbf16, #tpu.memory_space<vmem>>, vector<1x32x32xbf16>
    %266 = vector.shape_cast %265 : vector<1x32x32xbf16> to vector<32x32xbf16>
    %cst_120 = arith.constant dense<0.000000e+00> : vector<16x32xf32>
    %267 = tpu.matmul %264, %266, %cst_120 {dimension_numbers = #tpu.dot_dimension_numbers<[1], [0], [0], [1], [0, 0, 1, 1], [], []>} : vector<16x32xbf16>, vector<32x32xbf16>, vector<16x32xf32> -> vector<16x32xf32>
    %c1_121 = arith.constant 1 : index
    %c0_122 = arith.constant 0 : index
    %c0_123 = arith.constant 0 : index
    %268 = vector.load %arg5[%c1_121, %c0_122, %c0_123] : memref<2x1x32xf32, #tpu.memory_space<vmem>>, vector<1x1x32xf32>
    %269 = vector.shape_cast %268 : vector<1x1x32xf32> to vector<1x32xf32>
    %270 = vector.broadcast %269 : vector<1x32xf32> to vector<16x32xf32>
    %271 = arith.addf %267, %270 : vector<16x32xf32>
    %272 = arith.addf %172, %271 : vector<16x32xf32>
    %cst_124 = arith.constant dense<0.000000e+00> : vector<16xf32>
    %273 = vector.multi_reduction <add>, %272, %cst_124 [1] : vector<16x32xf32> to vector<16xf32>
    %274 = vector.shape_cast %273 : vector<16xf32> to vector<16x1xf32>
    %cst_125 = arith.constant 3.200000e+01 : f32
    %275 = vector.broadcast %cst_125 : f32 to vector<16x1xf32>
    %276 = arith.divf %274, %275 : vector<16x1xf32>
    %277 = vector.broadcast %276 : vector<16x1xf32> to vector<16x32xf32>
    %278 = arith.subf %272, %277 : vector<16x32xf32>
    %279 = arith.mulf %278, %278 : vector<16x32xf32>
    %cst_126 = arith.constant dense<0.000000e+00> : vector<16xf32>
    %280 = vector.multi_reduction <add>, %279, %cst_126 [1] : vector<16x32xf32> to vector<16xf32>
    %281 = vector.shape_cast %280 : vector<16xf32> to vector<16x1xf32>
    %cst_127 = arith.constant 3.200000e+01 : f32
    %282 = vector.broadcast %cst_127 : f32 to vector<16x1xf32>
    %283 = arith.divf %281, %282 : vector<16x1xf32>
    %284 = vector.broadcast %276 : vector<16x1xf32> to vector<16x32xf32>
    %285 = arith.subf %272, %284 : vector<16x32xf32>
    %cst_128 = arith.constant 9.99999974E-6 : f32
    %286 = vector.broadcast %cst_128 : f32 to vector<16x1xf32>
    %287 = arith.addf %283, %286 : vector<16x1xf32>
    %288 = math.rsqrt %287 : vector<16x1xf32>
    %289 = vector.broadcast %288 : vector<16x1xf32> to vector<16x32xf32>
    %290 = arith.mulf %285, %289 : vector<16x32xf32>
    %c1_129 = arith.constant 1 : index
    %c0_130 = arith.constant 0 : index
    %c0_131 = arith.constant 0 : index
    %291 = vector.load %arg10[%c1_129, %c0_130, %c0_131] : memref<2x1x32xf32, #tpu.memory_space<vmem>>, vector<1x1x32xf32>
    %292 = vector.shape_cast %291 : vector<1x1x32xf32> to vector<1x32xf32>
    %293 = vector.broadcast %292 : vector<1x32xf32> to vector<16x32xf32>
    %294 = arith.mulf %290, %293 : vector<16x32xf32>
    %c1_132 = arith.constant 1 : index
    %c0_133 = arith.constant 0 : index
    %c0_134 = arith.constant 0 : index
    %295 = vector.load %arg11[%c1_132, %c0_133, %c0_134] : memref<2x1x32xf32, #tpu.memory_space<vmem>>, vector<1x1x32xf32>
    %296 = vector.shape_cast %295 : vector<1x1x32xf32> to vector<1x32xf32>
    %297 = vector.broadcast %296 : vector<1x32xf32> to vector<16x32xf32>
    %298 = arith.addf %294, %297 : vector<16x32xf32>
    %299 = arith.truncf %298 : vector<16x32xf32> to vector<16x32xbf16>
    %c1_135 = arith.constant 1 : index
    %c0_136 = arith.constant 0 : index
    %c0_137 = arith.constant 0 : index
    %300 = vector.load %arg6[%c1_135, %c0_136, %c0_137] : memref<2x32x64xbf16, #tpu.memory_space<vmem>>, vector<1x32x64xbf16>
    %301 = vector.shape_cast %300 : vector<1x32x64xbf16> to vector<32x64xbf16>
    %cst_138 = arith.constant dense<0.000000e+00> : vector<16x64xf32>
    %302 = tpu.matmul %299, %301, %cst_138 {dimension_numbers = #tpu.dot_dimension_numbers<[1], [0], [0], [1], [0, 0, 1, 1], [], []>} : vector<16x32xbf16>, vector<32x64xbf16>, vector<16x64xf32> -> vector<16x64xf32>
    %c1_139 = arith.constant 1 : index
    %c0_140 = arith.constant 0 : index
    %c0_141 = arith.constant 0 : index
    %303 = vector.load %arg7[%c1_139, %c0_140, %c0_141] : memref<2x1x64xf32, #tpu.memory_space<vmem>>, vector<1x1x64xf32>
    %304 = vector.shape_cast %303 : vector<1x1x64xf32> to vector<1x64xf32>
    %305 = vector.broadcast %304 : vector<1x64xf32> to vector<16x64xf32>
    %306 = arith.addf %302, %305 : vector<16x64xf32>
    %cst_142 = arith.constant 0.000000e+00 : f32
    %307 = vector.broadcast %cst_142 : f32 to vector<16x64xf32>
    %308 = arith.maximumf %306, %307 : vector<16x64xf32>
    %309 = arith.truncf %308 : vector<16x64xf32> to vector<16x64xbf16>
    %c1_143 = arith.constant 1 : index
    %c0_144 = arith.constant 0 : index
    %c0_145 = arith.constant 0 : index
    %310 = vector.load %arg8[%c1_143, %c0_144, %c0_145] : memref<2x64x32xbf16, #tpu.memory_space<vmem>>, vector<1x64x32xbf16>
    %311 = vector.shape_cast %310 : vector<1x64x32xbf16> to vector<64x32xbf16>
    %cst_146 = arith.constant dense<0.000000e+00> : vector<16x32xf32>
    %312 = tpu.matmul %309, %311, %cst_146 {dimension_numbers = #tpu.dot_dimension_numbers<[1], [0], [0], [1], [0, 0, 1, 1], [], []>} : vector<16x64xbf16>, vector<64x32xbf16>, vector<16x32xf32> -> vector<16x32xf32>
    %c1_147 = arith.constant 1 : index
    %c0_148 = arith.constant 0 : index
    %c0_149 = arith.constant 0 : index
    %313 = vector.load %arg9[%c1_147, %c0_148, %c0_149] : memref<2x1x32xf32, #tpu.memory_space<vmem>>, vector<1x1x32xf32>
    %314 = vector.shape_cast %313 : vector<1x1x32xf32> to vector<1x32xf32>
    %315 = vector.broadcast %314 : vector<1x32xf32> to vector<16x32xf32>
    %316 = arith.addf %312, %315 : vector<16x32xf32>
    %317 = arith.addf %298, %316 : vector<16x32xf32>
    %cst_150 = arith.constant dense<0.000000e+00> : vector<16xf32>
    %318 = vector.multi_reduction <add>, %317, %cst_150 [1] : vector<16x32xf32> to vector<16xf32>
    %319 = vector.shape_cast %318 : vector<16xf32> to vector<16x1xf32>
    %cst_151 = arith.constant 3.200000e+01 : f32
    %320 = vector.broadcast %cst_151 : f32 to vector<16x1xf32>
    %321 = arith.divf %319, %320 : vector<16x1xf32>
    %322 = vector.broadcast %321 : vector<16x1xf32> to vector<16x32xf32>
    %323 = arith.subf %317, %322 : vector<16x32xf32>
    %324 = arith.mulf %323, %323 : vector<16x32xf32>
    %cst_152 = arith.constant dense<0.000000e+00> : vector<16xf32>
    %325 = vector.multi_reduction <add>, %324, %cst_152 [1] : vector<16x32xf32> to vector<16xf32>
    %326 = vector.shape_cast %325 : vector<16xf32> to vector<16x1xf32>
    %cst_153 = arith.constant 3.200000e+01 : f32
    %327 = vector.broadcast %cst_153 : f32 to vector<16x1xf32>
    %328 = arith.divf %326, %327 : vector<16x1xf32>
    %329 = vector.broadcast %321 : vector<16x1xf32> to vector<16x32xf32>
    %330 = arith.subf %317, %329 : vector<16x32xf32>
    %cst_154 = arith.constant 9.99999974E-6 : f32
    %331 = vector.broadcast %cst_154 : f32 to vector<16x1xf32>
    %332 = arith.addf %328, %331 : vector<16x1xf32>
    %333 = math.rsqrt %332 : vector<16x1xf32>
    %334 = vector.broadcast %333 : vector<16x1xf32> to vector<16x32xf32>
    %335 = arith.mulf %330, %334 : vector<16x32xf32>
    %c1_155 = arith.constant 1 : index
    %c0_156 = arith.constant 0 : index
    %c0_157 = arith.constant 0 : index
    %336 = vector.load %arg12[%c1_155, %c0_156, %c0_157] : memref<2x1x32xf32, #tpu.memory_space<vmem>>, vector<1x1x32xf32>
    %337 = vector.shape_cast %336 : vector<1x1x32xf32> to vector<1x32xf32>
    %338 = vector.broadcast %337 : vector<1x32xf32> to vector<16x32xf32>
    %339 = arith.mulf %335, %338 : vector<16x32xf32>
    %c1_158 = arith.constant 1 : index
    %c0_159 = arith.constant 0 : index
    %c0_160 = arith.constant 0 : index
    %340 = vector.load %arg13[%c1_158, %c0_159, %c0_160] : memref<2x1x32xf32, #tpu.memory_space<vmem>>, vector<1x1x32xf32>
    %341 = vector.shape_cast %340 : vector<1x1x32xf32> to vector<1x32xf32>
    %342 = vector.broadcast %341 : vector<1x32xf32> to vector<16x32xf32>
    %343 = arith.addf %339, %342 : vector<16x32xf32>
    %344 = arith.truncf %343 : vector<16x32xf32> to vector<16x32xbf16>
    %c0_161 = arith.constant 0 : index
    %c0_162 = arith.constant 0 : index
    %345 = vector.load %arg14[%c0_161, %c0_162] : memref<32x128xbf16, #tpu.memory_space<vmem>>, vector<32x128xbf16>
    %cst_163 = arith.constant dense<0.000000e+00> : vector<16x128xf32>
    %346 = tpu.matmul %344, %345, %cst_163 {dimension_numbers = #tpu.dot_dimension_numbers<[1], [0], [0], [1], [0, 0, 1, 1], [], []>} : vector<16x32xbf16>, vector<32x128xbf16>, vector<16x128xf32> -> vector<16x128xf32>
    %c0_164 = arith.constant 0 : index
    %c0_165 = arith.constant 0 : index
    %347 = vector.load %arg15[%c0_164, %c0_165] : memref<1x128xf32, #tpu.memory_space<vmem>>, vector<1x128xf32>
    %348 = vector.broadcast %347 : vector<1x128xf32> to vector<16x128xf32>
    %349 = arith.addf %346, %348 : vector<16x128xf32>
    %350 = vector.shape_cast %349 : vector<16x128xf32> to vector<2x8x128xf32>
    %c0_166 = arith.constant 0 : index
    %c0_167 = arith.constant 0 : index
    %c0_168 = arith.constant 0 : index
    %351 = vector.load %arg16[%c0_166, %c0_167, %c0_168] : memref<2x8x128xf32, #tpu.memory_space<vmem>>, vector<2x8x128xf32>
    tpu.vector_store %arg16[%c0_166, %c0_167, %c0_168], %350 {strides = array<i32>} : memref<2x8x128xf32, #tpu.memory_space<vmem>>, vector<2x8x128xf32>,
    return
  }
  func.func @transform_0(%arg0: i32) -> (i32, i32, i32) {
    %c0_i32 = arith.constant 0 : i32
    %c0_i32_0 = arith.constant 0 : i32
    %c0_i32_1 = arith.constant 0 : i32
    return %arg0, %c0_i32, %c0_i32_0 : i32, i32, i32
  }
  func.func @transform_1(%arg0: i32) -> (i32, i32, i32) {
    %c0_i32 = arith.constant 0 : i32
    %c0_i32_0 = arith.constant 0 : i32
    %c0_i32_1 = arith.constant 0 : i32
    %c0_i32_2 = arith.constant 0 : i32
    return %c0_i32, %c0_i32_0, %c0_i32_1 : i32, i32, i32
  }
  func.func @transform_2(%arg0: i32) -> (i32, i32, i32) {
    %c0_i32 = arith.constant 0 : i32
    %c0_i32_0 = arith.constant 0 : i32
    %c0_i32_1 = arith.constant 0 : i32
    %c0_i32_2 = arith.constant 0 : i32
    return %c0_i32, %c0_i32_0, %c0_i32_1 : i32, i32, i32
  }
  func.func @transform_3(%arg0: i32) -> (i32, i32, i32) {
    %c0_i32 = arith.constant 0 : i32
    %c0_i32_0 = arith.constant 0 : i32
    %c0_i32_1 = arith.constant 0 : i32
    %c0_i32_2 = arith.constant 0 : i32
    return %c0_i32, %c0_i32_0, %c0_i32_1 : i32, i32, i32
  }
  func.func @transform_4(%arg0: i32) -> (i32, i32, i32) {
    %c0_i32 = arith.constant 0 : i32
    %c0_i32_0 = arith.constant 0 : i32
    %c0_i32_1 = arith.constant 0 : i32
    %c0_i32_2 = arith.constant 0 : i32
    return %c0_i32, %c0_i32_0, %c0_i32_1 : i32, i32, i32
  }
  func.func @transform_5(%arg0: i32) -> (i32, i32, i32) {
    %c0_i32 = arith.constant 0 : i32
    %c0_i32_0 = arith.constant 0 : i32
    %c0_i32_1 = arith.constant 0 : i32
    %c0_i32_2 = arith.constant 0 : i32
    return %c0_i32, %c0_i32_0, %c0_i32_1 : i32, i32, i32
  }
  func.func @transform_6(%arg0: i32) -> (i32, i32, i32) {
    %c0_i32 = arith.constant 0 : i32
    %c0_i32_0 = arith.constant 0 : i32
    %c0_i32_1 = arith.constant 0 : i32
    %c0_i32_2 = arith.constant 0 : i32
    return %c0_i32, %c0_i32_0, %c0_i32_1 : i32, i32, i32
  }
  func.func @transform_7(%arg0: i32) -> (i32, i32, i32) {
    %c0_i32 = arith.constant 0 : i32
    %c0_i32_0 = arith.constant 0 : i32
    %c0_i32_1 = arith.constant 0 : i32
    %c0_i32_2 = arith.constant 0 : i32
    return %c0_i32, %c0_i32_0, %c0_i32_1 : i32, i32, i32
  }
  func.func @transform_8(%arg0: i32) -> (i32, i32, i32) {
    %c0_i32 = arith.constant 0 : i32
    %c0_i32_0 = arith.constant 0 : i32
    %c0_i32_1 = arith.constant 0 : i32
    %c0_i32_2 = arith.constant 0 : i32
    return %c0_i32, %c0_i32_0, %c0_i32_1 : i32, i32, i32
  }
  func.func @transform_9(%arg0: i32) -> (i32, i32, i32) {
    %c0_i32 = arith.constant 0 : i32
    %c0_i32_0 = arith.constant 0 : i32
    %c0_i32_1 = arith.constant 0 : i32
    %c0_i32_2 = arith.constant 0 : i32
    return %c0_i32, %c0_i32_0, %c0_i32_1 : i32, i32, i32
  }
  func.func @transform_10(%arg0: i32) -> (i32, i32, i32) {
    %c0_i32 = arith.constant 0 : i32
    %c0_i32_0 = arith.constant 0 : i32
    %c0_i32_1 = arith.constant 0 : i32
    %c0_i32_2 = arith.constant 0 : i32
    return %c0_i32, %c0_i32_0, %c0_i32_1 : i32, i32, i32
  }
  func.func @transform_11(%arg0: i32) -> (i32, i32, i32) {
    %c0_i32 = arith.constant 0 : i32
    %c0_i32_0 = arith.constant 0 : i32
    %c0_i32_1 = arith.constant 0 : i32
    %c0_i32_2 = arith.constant 0 : i32
    return %c0_i32, %c0_i32_0, %c0_i32_1 : i32, i32, i32
  }
  func.func @transform_12(%arg0: i32) -> (i32, i32, i32) {
    %c0_i32 = arith.constant 0 : i32
    %c0_i32_0 = arith.constant 0 : i32
    %c0_i32_1 = arith.constant 0 : i32
    %c0_i32_2 = arith.constant 0 : i32
    return %c0_i32, %c0_i32_0, %c0_i32_1 : i32, i32, i32
  }
  func.func @transform_13(%arg0: i32) -> (i32, i32) {
    %c0_i32 = arith.constant 0 : i32
    %c0_i32_0 = arith.constant 0 : i32
    %c0_i32_1 = arith.constant 0 : i32
    return %c0_i32, %c0_i32_0 : i32, i32
  }
  func.func @transform_14(%arg0: i32) -> (i32, i32) {
    %c0_i32 = arith.constant 0 : i32
    %c0_i32_0 = arith.constant 0 : i32
    %c0_i32_1 = arith.constant 0 : i32
    return %c0_i32, %c0_i32_0 : i32, i32
  }
  func.func @transform_15(%arg0: i32) -> (i32, i32, i32) {
    %c0_i32 = arith.constant 0 : i32
    %c0_i32_0 = arith.constant 0 : i32
    %c0_i32_1 = arith.constant 0 : i32
    return %arg0, %c0_i32, %c0_i32_0 : i32, i32, i32
  }
}

</mosaic_0001>

<bundles_post_ra>
// kernel: transformer_model_forward.1
= control target key start
LH: loop header
LB: loop body
LE: loop exit
PB: predicated region body
PF: predicated region fallthrough
CT: control target
= control target key end

     0   :  { %s4727_s0 = inlined_call_operand.hbm [shape: f32[2,8,32], index: 0, kind: input, shape index: {}]   ;;  %s4728_s1 = inlined_call_operand.hbm [shape: bf16[2,32,96], index: 1, kind: input, shape index: {}]   ;;  %s4729_s2 = inlined_call_operand.hbm [shape: f32[2,1,96], index: 2, kind: input, shape index: {}]   ;;  %s4730_s3 = inlined_call_operand.hbm [shape: bf16[2,32,32], index: 3, kind: input, shape index: {}]   ;;  %s4731_s4 = inlined_call_operand.hbm [shape: f32[2,1,32], index: 4, kind: input, shape index: {}]   ;;  %s4732_s5 = inlined_call_operand.hbm [shape: bf16[2,32,64], index: 5, kind: input, shape index: {}]   ;;  %s4733_s6 = inlined_call_operand.hbm [shape: f32[2,1,64], index: 6, kind: input, shape index: {}]   ;;  %s4734_s7 = inlined_call_operand.hbm [shape: bf16[2,64,32], index: 7, kind: input, shape index: {}]   ;;  %s4735_s8 = inlined_call_operand.hbm [shape: f32[2,1,32], index: 8, kind: input, shape index: {}]   ;;  %s4736_s9 = inlined_call_operand.hbm [shape: f32[2,1,32], index: 9, kind: input, shape index: {}]   ;;  %s4737_s10 = inlined_call_operand.hbm [shape: f32[2,1,32], index: 10, kind: input, shape index: {}]   ;;  %s4738_s11 = inlined_call_operand.hbm [shape: f32[2,1,32], index: 11, kind: input, shape index: {}]   ;;  %s4739_s12 = inlined_call_operand.hbm [shape: f32[2,1,32], index: 12, kind: input, shape index: {}]   ;;  %s4740_s13 = inlined_call_operand.hbm [shape: bf16[32,128], index: 13, kind: input, shape index: {}]   ;;  %s4741_s14 = inlined_call_operand.hbm [shape: f32[1,128], index: 14, kind: input, shape index: {}]   ;;  %s4742_s15 = inlined_call_operand.hbm [shape: f32[2,8,128], index: 15, kind: output, shape index: {}]  }
   0x1   :  { %4744 = sst [smem:[#allocation37_spill]] %s4742_s15 }
   0x2   :  { %20 = vsyncpa [#allocation4], 0 }
   0x3   :  { %21 = vsyncpa [#allocation7], 0 }
   0x4   :  { %22 = vsyncpa [#allocation10], 0 }
   0x5   :  { %23 = vsyncpa [#allocation13], 0 }
   0x6   :  { %24 = vsyncpa [#allocation16], 0 }
   0x7   :  { %25 = vsyncpa [#allocation19], 0 }
   0x8   :  { %26 = vsyncpa [#allocation22], 0 }
   0x9   :  { %27 = vsyncpa [#allocation25], 0 }
   0xa   :  { %28 = vsyncpa [#allocation5], 0  ;;  %s3927_s18 = smov [#allocation6]   ;;  %s3557_s22 = scalar_lea.hbm %s4728_s1, 512 }
   0xb   :  { %s46_s19 = sshll.u32 %s3927_s18, 4  ;;  %p3558_p0 = scmp.ne.s32.totalorder %s4728_s1, %s3557_s22  ;;  %s47_s19 = int_to_ptr.vmem [resolvable:$true] %s46_s19 }
   0xc   :  { %p3561_p1 = scmp.lt.u32.totalorder %s3557_s22, %s4728_s1 }
   0xe   :  { %p3563_p2 = pnand %p3561_p1, %p3558_p0 }
  0x10   :  { %3566 = shalt.err (!%p3563_p2)
}
  0x11   :  { %s3567_s27 = scalar_lea.vmem %s47_s19, 512  ;;  %p3572_p4 = scmp.lt.s32.totalorder %s47_s19, %s47_s19 }
  0x12   :  { %p3568_p3 = scmp.ne.s32.totalorder %s47_s19, %s3567_s27  ;;  %p3573_p5 = scmp.lt.s32.totalorder %s3567_s27, %s3567_s27 }
  0x14   :  { %p3574_p6 = por %p3573_p5, %p3572_p4 }
  0x16   :  { %p3575_p7 = pnand %p3574_p6, %p3568_p3 }
  0x18   :  { %3578 = shalt.err (!%p3575_p7)
}
  0x19   :  { %s3928_s28 = smov 64   ;;  %s3929_s29 = smov 4  }
  0x1a   :  { %52 = dma.hbm_to_vmem [thread:$0]  %s4728_s1, 512, %s47_s19, [#allocation7], %s3928_s28, %s3928_s28, %s3929_s29  }
  0x1b   :  { %s3930_s17 = smov [#allocation9]   ;;  %s3931_s20 = smov [#allocation12]  }
  0x1c   :  { %s70_s18 = sshll.u32 %s3930_s17, 4  ;;  %s94_s21 = sshll.u32 %s3931_s20, 4  ;;  %s71_s18 = int_to_ptr.vmem [resolvable:$true] %s70_s18  ;;  %s95_s21 = int_to_ptr.vmem [resolvable:$true] %s94_s21 }
  0x1d   :  { %s3579_s24 = scalar_lea.hbm %s4730_s3, 512 }
  0x1e   :  { %p3580_p8 = scmp.ne.s32.totalorder %s4730_s3, %s3579_s24  ;;  %p3583_p9 = scmp.lt.u32.totalorder %s3579_s24, %s4730_s3 }
  0x20   :  { %p3585_p10 = pnand %p3583_p9, %p3580_p8 }
  0x22   :  { %3588 = shalt.err (!%p3585_p10)
}
  0x23   :  { %s3589_s1 = scalar_lea.vmem %s71_s18, 512  ;;  %p3594_p12 = scmp.lt.s32.totalorder %s71_s18, %s71_s18 }
  0x24   :  { %p3590_p11 = scmp.ne.s32.totalorder %s71_s18, %s3589_s1  ;;  %p3595_p13 = scmp.lt.s32.totalorder %s3589_s1, %s3589_s1 }
  0x26   :  { %p3596_p0 = por %p3595_p13, %p3594_p12 }
  0x28   :  { %p3597_p1 = pnand %p3596_p0, %p3590_p11 }
  0x2a   :  { %3600 = shalt.err (!%p3597_p1)
}
  0x2b   :  { %76 = dma.hbm_to_vmem [thread:$0]  %s4730_s3, 512, %s71_s18, [#allocation10], %s3928_s28, %s3928_s28, %s3929_s29  }
  0x2c   :  { %s3601_s17 = scalar_lea.hbm %s4732_s5, 512 }
  0x2d   :  { %p3602_p2 = scmp.ne.s32.totalorder %s4732_s5, %s3601_s17  ;;  %p3605_p3 = scmp.lt.u32.totalorder %s3601_s17, %s4732_s5 }
  0x2f   :  { %p3607_p4 = pnand %p3605_p3, %p3602_p2 }
  0x31   :  { %3610 = shalt.err (!%p3607_p4)
}
  0x32   :  { %s3611_s25 = scalar_lea.vmem %s95_s21, 512  ;;  %p3616_p6 = scmp.lt.s32.totalorder %s95_s21, %s95_s21 }
  0x33   :  { %p3612_p5 = scmp.ne.s32.totalorder %s95_s21, %s3611_s25  ;;  %p3617_p7 = scmp.lt.s32.totalorder %s3611_s25, %s3611_s25 }
  0x35   :  { %p3618_p8 = por %p3617_p7, %p3616_p6 }
  0x37   :  { %p3619_p9 = pnand %p3618_p8, %p3612_p5 }
  0x39   :  { %3622 = shalt.err (!%p3619_p9)
}
  0x3a   :  { %100 = dma.hbm_to_vmem [thread:$0]  %s4732_s5, 512, %s95_s21, [#allocation13], %s3928_s28, %s3928_s28, %s3929_s29  }
  0x3b   :  { %s3932_s26 = smov [#allocation15]   ;;  %s3623_s30 = scalar_lea.hbm %s4734_s7, 1024 }
  0x3c   :  { %s118_s27 = sshll.u32 %s3932_s26, 4  ;;  %p3624_p10 = scmp.ne.s32.totalorder %s4734_s7, %s3623_s30  ;;  %s119_s27 = int_to_ptr.vmem [resolvable:$true] %s118_s27 }
  0x3d   :  { %p3627_p11 = scmp.lt.u32.totalorder %s3623_s30, %s4734_s7 }
  0x3f   :  { %p3629_p12 = pnand %p3627_p11, %p3624_p10 }
  0x41   :  { %3632 = shalt.err (!%p3629_p12)
}
  0x42   :  { %s3633_s22 = scalar_lea.vmem %s119_s27, 1024  ;;  %p3638_p0 = scmp.lt.s32.totalorder %s119_s27, %s119_s27 }
  0x43   :  { %p3634_p13 = scmp.ne.s32.totalorder %s119_s27, %s3633_s22  ;;  %p3639_p1 = scmp.lt.s32.totalorder %s3633_s22, %s3633_s22 }
  0x45   :  { %p3640_p2 = por %p3639_p1, %p3638_p0 }
  0x47   :  { %p3641_p3 = pnand %p3640_p2, %p3634_p13 }
  0x49   :  { %3644 = shalt.err (!%p3641_p3)
}
  0x4a   :  { %124 = dma.hbm_to_vmem [thread:$0]  %s4734_s7, 1024, %s119_s27, [#allocation16], %s3928_s28, %s3928_s28, %s3929_s29  }
  0x4b   :  { %s3933_s23 = smov [#allocation18]   ;;  %s3934_s25 = smov [#allocation21]  }
  0x4c   :  { %s142_s24 = sshll.u32 %s3933_s23, 4  ;;  %s166_s3 = sshll.u32 %s3934_s25, 4  ;;  %s143_s24 = int_to_ptr.vmem [resolvable:$true] %s142_s24  ;;  %s4102_s3 = int_to_ptr.vmem [resolvable:$true] %s166_s3 }
  0x4d   :  { %s3645_s1 = scalar_lea.hbm %s4736_s9, 32 }
  0x4e   :  { %p3646_p4 = scmp.ne.s32.totalorder %s4736_s9, %s3645_s1  ;;  %p3649_p5 = scmp.lt.u32.totalorder %s3645_s1, %s4736_s9 }
  0x50   :  { %p3651_p6 = pnand %p3649_p5, %p3646_p4 }
  0x52   :  { %3654 = shalt.err (!%p3651_p6)
}
  0x53   :  { %s3655_s7 = scalar_lea.vmem %s143_s24, 32  ;;  %p3660_p8 = scmp.lt.s32.totalorder %s143_s24, %s143_s24 }
  0x54   :  { %p3656_p7 = scmp.ne.s32.totalorder %s143_s24, %s3655_s7  ;;  %p3661_p9 = scmp.lt.s32.totalorder %s3655_s7, %s3655_s7 }
  0x56   :  { %p3662_p10 = por %p3661_p9, %p3660_p8 }
  0x58   :  { %p3663_p11 = pnand %p3662_p10, %p3656_p7 }
  0x5a   :  { %3666 = shalt.err (!%p3663_p11)
}
  0x5b   :  { %s3935_s27 = smov 16   ;;  %s3936_s17 = smov 1  }
  0x5c   :  { %148 = dma.hbm_to_vmem [thread:$0]  %s4736_s9, 32, %s143_s24, [#allocation19], %s3935_s27, %s3935_s27, %s3936_s17  }
  0x5d   :  { %s3667_s23 = scalar_lea.hbm %s4738_s11, 32 }
  0x5e   :  { %p3668_p12 = scmp.ne.s32.totalorder %s4738_s11, %s3667_s23  ;;  %p3671_p13 = scmp.lt.u32.totalorder %s3667_s23, %s4738_s11 }
  0x60   :  { %p3673_p0 = pnand %p3671_p13, %p3668_p12 }
  0x62   :  { %3676 = shalt.err (!%p3673_p0)
}
  0x63   :  { %s3677_s19 = scalar_lea.vmem %s4102_s3, 32  ;;  %p3682_p2 = scmp.lt.s32.totalorder %s4102_s3, %s4102_s3 }
  0x64   :  { %p3678_p1 = scmp.ne.s32.totalorder %s4102_s3, %s3677_s19  ;;  %p3683_p3 = scmp.lt.s32.totalorder %s3677_s19, %s3677_s19 }
  0x66   :  { %p3684_p4 = por %p3683_p3, %p3682_p2 }
  0x68   :  { %p3685_p5 = pnand %p3684_p4, %p3678_p1 }
  0x6a   :  { %3688 = shalt.err (!%p3685_p5)
}
  0x6b   :  { %172 = dma.hbm_to_vmem [thread:$0]  %s4738_s11, 32, %s4102_s3, [#allocation22], %s3935_s27, %s3935_s27, %s3936_s17  }
  0x6c   :  { %s3937_s30 = smov [#allocation24]   ;;  %s3938_s15 = smov [#allocation3]  }
  0x6d   :  { %s190_s16 = sshll.u32 %s3937_s30, 4  ;;  %s34_s7 = sshll.u32 %s3938_s15, 4  ;;  %s191_s16 = int_to_ptr.vmem [resolvable:$true] %s190_s16  ;;  %s4139_s7 = int_to_ptr.vmem [resolvable:$true] %s34_s7 }
  0x6e   :  { %s3689_s5 = scalar_lea.hbm %s4740_s13, 256 }
  0x6f   :  { %p3690_p6 = scmp.ne.s32.totalorder %s4740_s13, %s3689_s5  ;;  %p3693_p7 = scmp.lt.u32.totalorder %s3689_s5, %s4740_s13 }
  0x71   :  { %p3695_p8 = pnand %p3693_p7, %p3690_p6 }
  0x73   :  { %3698 = shalt.err (!%p3695_p8)
}
  0x74   :  { %s3699_s11 = scalar_lea.vmem %s191_s16, 256  ;;  %p3704_p10 = scmp.lt.s32.totalorder %s191_s16, %s191_s16 }
  0x75   :  { %p3700_p9 = scmp.ne.s32.totalorder %s191_s16, %s3699_s11  ;;  %p3705_p11 = scmp.lt.s32.totalorder %s3699_s11, %s3699_s11 }
  0x77   :  { %p3706_p12 = por %p3705_p11, %p3704_p10 }
  0x79   :  { %p3707_p13 = pnand %p3706_p12, %p3700_p9 }
  0x7b   :  { %3710 = shalt.err (!%p3707_p13)
}
  0x7c   :  { %196 = dma.hbm_to_vmem [thread:$0]  %s4740_s13, 256, %s191_s16, [#allocation25], %s3928_s28, %s3928_s28, %s3929_s29  }
  0x7d   :  { %s3711_s9 = scalar_lea.hbm %s4727_s0, 256 }
  0x7e   :  { %p3712_p0 = scmp.ne.s32.totalorder %s4727_s0, %s3711_s9  ;;  %p3715_p1 = scmp.lt.u32.totalorder %s3711_s9, %s4727_s0 }
  0x80   :  { %p3717_p2 = pnand %p3715_p1, %p3712_p0 }
  0x82   :  { %3720 = shalt.err (!%p3717_p2)
}
  0x83   :  { %s3721_s22 = scalar_lea.vmem %s4139_s7, 256  ;;  %p3726_p4 = scmp.lt.s32.totalorder %s4139_s7, %s4139_s7 }
  0x84   :  { %p3722_p3 = scmp.ne.s32.totalorder %s4139_s7, %s3721_s22  ;;  %p3727_p5 = scmp.lt.s32.totalorder %s3721_s22, %s3721_s22 }
  0x86   :  { %p3728_p6 = por %p3727_p5, %p3726_p4 }
  0x88   :  { %p3729_p7 = pnand %p3728_p6, %p3722_p3 }
  0x8a   :  { %3732 = shalt.err (!%p3729_p7)
}
  0x8b   :  { %s3939_s13 = smov 128   ;;  %s3940_s29 = smov 8  }
  0x8c   :  { %40 = dma.hbm_to_vmem [thread:$0]  %s4727_s0, 256, %s4139_s7, [#allocation4], %s3939_s13, %s3939_s13, %s3940_s29  }
  0x8d   :  { %s3941_s21 = smov [#allocation8]   ;;  %s3942_s25 = smov [#allocation11]  }
  0x8e   :  { %s58_s23 = sshll.u32 %s3941_s21, 4  ;;  %s82_s18 = sshll.u32 %s3942_s25, 4  ;;  %s59_s23 = int_to_ptr.vmem [resolvable:$true] %s58_s23  ;;  %s4176_s18 = int_to_ptr.vmem [resolvable:$true] %s82_s18 }
  0x8f   :  { %s3733_s26 = scalar_lea.hbm %s4729_s2, 32 }
  0x90   :  { %p3734_p8 = scmp.ne.s32.totalorder %s4729_s2, %s3733_s26  ;;  %p3737_p9 = scmp.lt.u32.totalorder %s3733_s26, %s4729_s2 }
  0x92   :  { %p3739_p10 = pnand %p3737_p9, %p3734_p8 }
  0x94   :  { %3742 = shalt.err (!%p3739_p10)
}
  0x95   :  { %s3743_s0 = scalar_lea.vmem %s59_s23, 32  ;;  %p3748_p12 = scmp.lt.s32.totalorder %s59_s23, %s59_s23 }
  0x96   :  { %p3744_p11 = scmp.ne.s32.totalorder %s59_s23, %s3743_s0  ;;  %p3749_p13 = scmp.lt.s32.totalorder %s3743_s0, %s3743_s0 }
  0x98   :  { %p3750_p0 = por %p3749_p13, %p3748_p12 }
  0x9a   :  { %p3751_p1 = pnand %p3750_p0, %p3744_p11 }
  0x9c   :  { %3754 = shalt.err (!%p3751_p1)
}
  0x9d   :  { %64 = dma.hbm_to_vmem [thread:$0]  %s4729_s2, 32, %s59_s23, [#allocation7], %s3935_s27, %s3935_s27, %s3936_s17  }
  0x9e   :  { %s3755_s22 = scalar_lea.hbm %s4731_s4, 32 }
  0x9f   :  { %p3756_p2 = scmp.ne.s32.totalorder %s4731_s4, %s3755_s22  ;;  %p3759_p3 = scmp.lt.u32.totalorder %s3755_s22, %s4731_s4 }
  0xa1   :  { %p3761_p4 = pnand %p3759_p3, %p3756_p2 }
  0xa3   :  { %3764 = shalt.err (!%p3761_p4)
}
  0xa4   :  { %s3765_s11 = scalar_lea.vmem %s4176_s18, 32  ;;  %p3770_p6 = scmp.lt.s32.totalorder %s4176_s18, %s4176_s18 }
  0xa5   :  { %p3766_p5 = scmp.ne.s32.totalorder %s4176_s18, %s3765_s11  ;;  %p3771_p7 = scmp.lt.s32.totalorder %s3765_s11, %s3765_s11 }
  0xa7   :  { %p3772_p8 = por %p3771_p7, %p3770_p6 }
  0xa9   :  { %p3773_p9 = pnand %p3772_p8, %p3766_p5 }
  0xab   :  { %3776 = shalt.err (!%p3773_p9)
}
  0xac   :  { %88 = dma.hbm_to_vmem [thread:$0]  %s4731_s4, 32, %s4176_s18, [#allocation10], %s3935_s27, %s3935_s27, %s3936_s17  }
  0xad   :  { %s3943_s3 = smov [#allocation14]   ;;  %s3944_s1 = smov [#allocation17]  }
  0xae   :  { %s106_s26 = sshll.u32 %s3943_s3, 4  ;;  %s130_s19 = sshll.u32 %s3944_s1, 4  ;;  %s107_s26 = int_to_ptr.vmem [resolvable:$true] %s106_s26  ;;  %s4213_s19 = int_to_ptr.vmem [resolvable:$true] %s130_s19 }
  0xaf   :  { %s3777_s0 = scalar_lea.hbm %s4733_s6, 32 }
  0xb0   :  { %p3778_p10 = scmp.ne.s32.totalorder %s4733_s6, %s3777_s0  ;;  %p3781_p11 = scmp.lt.u32.totalorder %s3777_s0, %s4733_s6 }
  0xb2   :  { %p3783_p12 = pnand %p3781_p11, %p3778_p10 }
  0xb4   :  { %3786 = shalt.err (!%p3783_p12)
}
  0xb5   :  { %s3787_s4 = scalar_lea.vmem %s107_s26, 32  ;;  %p3792_p0 = scmp.lt.s32.totalorder %s107_s26, %s107_s26 }
  0xb6   :  { %p3788_p13 = scmp.ne.s32.totalorder %s107_s26, %s3787_s4  ;;  %p3793_p1 = scmp.lt.s32.totalorder %s3787_s4, %s3787_s4 }
  0xb8   :  { %p3794_p2 = por %p3793_p1, %p3792_p0 }
  0xba   :  { %p3795_p3 = pnand %p3794_p2, %p3788_p13 }
  0xbc   :  { %3798 = shalt.err (!%p3795_p3)
}
  0xbd   :  { %112 = dma.hbm_to_vmem [thread:$0]  %s4733_s6, 32, %s107_s26, [#allocation13], %s3935_s27, %s3935_s27, %s3936_s17  }
  0xbe   :  { %s3799_s21 = scalar_lea.hbm %s4735_s8, 32 }
  0xbf   :  { %p3800_p4 = scmp.ne.s32.totalorder %s4735_s8, %s3799_s21  ;;  %p3803_p5 = scmp.lt.u32.totalorder %s3799_s21, %s4735_s8 }
  0xc1   :  { %p3805_p6 = pnand %p3803_p5, %p3800_p4 }
  0xc3   :  { %3808 = shalt.err (!%p3805_p6)
}
  0xc4   :  { %s3809_s3 = scalar_lea.vmem %s4213_s19, 32  ;;  %p3814_p8 = scmp.lt.s32.totalorder %s4213_s19, %s4213_s19 }
  0xc5   :  { %p3810_p7 = scmp.ne.s32.totalorder %s4213_s19, %s3809_s3  ;;  %p3815_p9 = scmp.lt.s32.totalorder %s3809_s3, %s3809_s3 }
  0xc7   :  { %p3816_p10 = por %p3815_p9, %p3814_p8 }
  0xc9   :  { %p3817_p11 = pnand %p3816_p10, %p3810_p7 }
  0xcb   :  { %3820 = shalt.err (!%p3817_p11)
}
  0xcc   :  { %136 = dma.hbm_to_vmem [thread:$0]  %s4735_s8, 32, %s4213_s19, [#allocation16], %s3935_s27, %s3935_s27, %s3936_s17  }
  0xcd   :  { %s3945_s1 = smov [#allocation20]   ;;  %s3946_s24 = smov [#allocation23]  }
  0xce   :  { %s154_s9 = sshll.u32 %s3945_s1, 4  ;;  %s178_s0 = sshll.u32 %s3946_s24, 4  ;;  %s155_s9 = int_to_ptr.vmem [resolvable:$true] %s154_s9  ;;  %s4250_s0 = int_to_ptr.vmem [resolvable:$true] %s178_s0 }
  0xcf   :  { %s3821_s15 = scalar_lea.hbm %s4737_s10, 32 }
  0xd0   :  { %p3822_p12 = scmp.ne.s32.totalorder %s4737_s10, %s3821_s15  ;;  %p3825_p13 = scmp.lt.u32.totalorder %s3821_s15, %s4737_s10 }
  0xd2   :  { %p3827_p0 = pnand %p3825_p13, %p3822_p12 }
  0xd4   :  { %3830 = shalt.err (!%p3827_p0)
}
  0xd5   :  { %s3831_s8 = scalar_lea.vmem %s155_s9, 32  ;;  %p3836_p2 = scmp.lt.s32.totalorder %s155_s9, %s155_s9 }
  0xd6   :  { %p3832_p1 = scmp.ne.s32.totalorder %s155_s9, %s3831_s8  ;;  %p3837_p3 = scmp.lt.s32.totalorder %s3831_s8, %s3831_s8 }
  0xd8   :  { %p3838_p4 = por %p3837_p3, %p3836_p2 }
  0xda   :  { %p3839_p5 = pnand %p3838_p4, %p3832_p1 }
  0xdc   :  { %3842 = shalt.err (!%p3839_p5)
}
  0xdd   :  { %160 = dma.hbm_to_vmem [thread:$0]  %s4737_s10, 32, %s155_s9, [#allocation19], %s3935_s27, %s3935_s27, %s3936_s17  }
  0xde   :  { %s3843_s25 = scalar_lea.hbm %s4739_s12, 32 }
  0xdf   :  { %p3844_p6 = scmp.ne.s32.totalorder %s4739_s12, %s3843_s25  ;;  %p3847_p7 = scmp.lt.u32.totalorder %s3843_s25, %s4739_s12 }
  0xe1   :  { %p3849_p8 = pnand %p3847_p7, %p3844_p6 }
  0xe3   :  { %3852 = shalt.err (!%p3849_p8)
}
  0xe4   :  { %s3853_s6 = scalar_lea.vmem %s4250_s0, 32  ;;  %p3858_p10 = scmp.lt.s32.totalorder %s4250_s0, %s4250_s0 }
  0xe5   :  { %p3854_p9 = scmp.ne.s32.totalorder %s4250_s0, %s3853_s6  ;;  %p3859_p11 = scmp.lt.s32.totalorder %s3853_s6, %s3853_s6 }
  0xe7   :  { %p3860_p12 = por %p3859_p11, %p3858_p10 }
  0xe9   :  { %p3861_p13 = pnand %p3860_p12, %p3854_p9 }
  0xeb   :  { %3864 = shalt.err (!%p3861_p13)
}
  0xec   :  { %184 = dma.hbm_to_vmem [thread:$0]  %s4739_s12, 32, %s4250_s0, [#allocation22], %s3935_s27, %s3935_s27, %s3936_s17  }
  0xed   :  { %s3947_s1 = smov [#allocation26]   ;;  %s3865_s30 = scalar_lea.hbm %s4741_s14, 16 }
  0xee   :  { %s203_s9 = sshll.u32 %s3947_s1, 4  ;;  %p3866_p0 = scmp.ne.s32.totalorder %s4741_s14, %s3865_s30  ;;  %s204_s9 = int_to_ptr.vmem [resolvable:$true] %s203_s9 }
  0xef   :  { %p3869_p1 = scmp.lt.u32.totalorder %s3865_s30, %s4741_s14 }
  0xf1   :  { %p3871_p2 = pnand %p3869_p1, %p3866_p0 }
  0xf3   :  { %3874 = shalt.err (!%p3871_p2)
}
  0xf4   :  { %s3875_s22 = scalar_lea.vmem %s204_s9, 16  ;;  %s3879_s12 = scalar_lea.vmem %s204_s9, 32 }
  0xf5   :  { %p3876_p3 = scmp.ne.s32.totalorder %s204_s9, %s3875_s22  ;;  %p3880_p4 = scmp.lt.s32.totalorder %s204_s9, %s204_s9 }
  0xf6   :  { %p3881_p5 = scmp.lt.s32.totalorder %s3879_s12, %s3875_s22 }
  0xf8   :  { %p3882_p6 = por %p3881_p5, %p3880_p4 }
  0xfa   :  { %p3883_p7 = pnand %p3882_p6, %p3876_p3 }
  0xfc   :  { %3886 = shalt.err (!%p3883_p7)
}
  0xfd   :  { %206 = dma.hbm_to_vmem [thread:$0]  %s4741_s14, 16, %s204_s9, [#allocation25]  }
  0xfe   :  { %3909 = dma.done.wait [#allocation4], 256  }
  0xff   :  { %3910 = vsyncadd [#allocation4], 4294967040 }
 0x100   :  { %3911 = dma.done.wait [#allocation7], 544  }
 0x101   :  { %3912 = vsyncadd [#allocation7], 4294966752 }
 0x102   :  { %3913 = dma.done.wait [#allocation10], 544  }
 0x103   :  { %3914 = vsyncadd [#allocation10], 4294966752 }
 0x104   :  { %3915 = dma.done.wait [#allocation13], 544  }
 0x105   :  { %3916 = vsyncadd [#allocation13], 4294966752 }
 0x106   :  { %3917 = dma.done.wait [#allocation16], 1056  }
 0x107   :  { %3918 = vsyncadd [#allocation16], 4294966240 }
 0x108   :  { %3919 = dma.done.wait [#allocation19], 64  }
 0x109   :  { %3920 = vsyncadd [#allocation19], 4294967232 }
 0x10a   :  { %3921 = dma.done.wait [#allocation22], 64  }
 0x10b   :  { %3922 = vsyncadd [#allocation22], 4294967232 }
 0x10c   :  { %3923 = dma.done.wait [#allocation25], 272  }
 0x10d   :  { %3924 = vsyncadd [#allocation25], 4294967024  ;;  %v3948_v0 = vmov 0.0   ;;  %vm3949_vm0 = vmmov 0   ;;  %v3455_v1 = vld [vmem:[#allocation6] sm:$0xff]   ;;  %v3456_v2 = vld [vmem:[#allocation6 + $0x8] sm:$0xff]  }
 0x10e   :  { %3148 = vmatprep.subr.bf16.mxu0 %v3948_v0  ;;  %3152 = vmatprep.mubr.msk.bf16.mxu0 %vm3949_vm0, %v3948_v0  ;;  %v4305_v3 = vld [vmem:[#allocation3] sm:$0xff]  ;;  %v4307_v4 = vld [vmem:[#allocation3 + $0x8] sm:$0xff]  ;;  %vm279_vm1 = vcmask 261120   ;;  %v2965_v6 = vld [vmem:[#allocation8] ss:$0 sm:$0xff]  ;;  %s3950_s14 = smov 96  }
 0x10f   :  { %3156 = vmatprep.subr.bf16.mxu1 %v3948_v0  ;;  %3158 = vmatprep.mubr.msk.bf16.mxu1 %vm3949_vm0, %v3948_v0  ;;  %v255_v5 = vpack.c.bf16 %v4307_v4, %v4305_v3  ;;  %vm332_vm2 = vcmask 64512   ;;  %s3951_s8 = smov 88   ;;  %vm456_vm3 = vcmask 1043456   ;;  %s3952_s19 = smov 120   ;;  %vm778_vm4 = vcmask 130112  }
 0x110   :  { %3149 = vmatpush3.bf16.msra.mxu0 %v3455_v1  ;;  %s3953_s16 = smov 56   ;;  %s3954_s5 = smov 80   ;;  %vm1009_vm5 = vcmask 195712   ;;  %vm1240_vm6 = vcmask 261312   ;;  %vm1470_vm7 = vcmask 523264  }
 0x111   :  { %3150 = vmatprep.subr.bf16.mxu0 %v3948_v0  ;;  %s3955_s21 = smov 112   ;;  %s3956_s25 = smov 48  }
 0x112   :  { %s3957_s11 = smov 72   ;;  %s3958_s2 = smov 104  }
 0x113   :  { %s3959_s23 = smov 40   ;;  %s3960_s3 = smov 24  }
 0x114   :  { %3151 = vmatpush3.bf16.msra.mxu0 %v3456_v2 }
 0x115   :  { %3162 = vmatprep.subr.bf16.mxu0 %v3948_v0 }
 0x117   :  { %3153 = vmatmul.mubr.msk.bf16.vlgmr.msra.gmra.mrb[0].mxu0 %vm279_vm1, %v255_v5 }
 0x118   :  { %3164 = vmatprep.mubr.msk.bf16.mxu0 %vm3949_vm0, %v3948_v0 }
 0x1ea   :  { %v317_v7 = vpop.f32.mrb[0].mxu0 }
 0x1eb   :  { %v318_v8 = vadd.f32 %v2965_v6, %v317_v7  ;;  %v3154_v9 = vpop.f32.mrb[1].mxu0 }
 0x1ec   :  { %v320_v10 = vpop.f32.mrb[2].mxu0 }
 0x1ed   :  { %v4316_v11 = vpack.c.bf16 %v318_v8, %v318_v8  ;;  %v321_v12 = vadd.f32 %v2965_v6, %v320_v10  ;;  %v3155_v13 = vpop.f32.mrb[3].mxu0 }
 0x1ef   :  { %330 = vrot.lane.b32.xlu0 %v4316_v11, %s3950_s14  ;;  %v4320_v14 = vpack.c.bf16 %v321_v12, %v321_v12 }
 0x1f3   :  { %379 = vrot.lane.b32.xlu0 %v4320_v14, %s3950_s14 }
 0x261   :  { %v331_v15 = vpop.permute.xlu0 %330 }
 0x262   :  { %v337_v16 = vsel %vm332_vm2, %v331_v15, 0 }
 0x263   :  { %3157 = vmatpush3.bf16.xpose.msra.mxu1 %v337_v16 }
 0x264   :  { %3168 = vmatprep.subr.bf16.mxu1 %v3948_v0 }
 0x265   :  { %v380_v17 = vpop.permute.xlu0 %379 }
 0x266   :  { %v385_v18 = vsel %vm332_vm2, %v380_v17, 0 }
 0x267   :  { %3163 = vmatpush3.bf16.xpose.msra.mxu0 %v385_v18 }
 0x268   :  { %3174 = vmatprep.subr.bf16.mxu0 %v3948_v0 }
 0x26a   :  { %3159 = vmatmul.mubr.msk.bf16.vlgmr.msra.gmra.mrb[0].mxu1 %vm332_vm2, %v4316_v11 }
 0x26b   :  { %3170 = vmatprep.mubr.msk.bf16.mxu1 %vm3949_vm0, %v3948_v0 }
 0x26e   :  { %3165 = vmatmul.mubr.msk.bf16.vlgmr.msra.gmra.mrb[4].mxu0 %vm332_vm2, %v4320_v14 }
 0x26f   :  { %3176 = vmatprep.mubr.msk.bf16.mxu0 %vm3949_vm0, %v3948_v0 }
 0x33d   :  { %v373_v19 = vpop.f32.mrb[0].mxu1 }
 0x33e   :  { %v3160_v20 = vpop.f32.mrb[1].mxu1  ;;  %v427_v21 = vsel %vm332_vm2, %v373_v19, -inf }
 0x33f   :  { %428 = vmax.xlane.f32.xlu1 %v427_v21  ;;  %v376_v22 = vpop.f32.mrb[2].mxu1 }
 0x340   :  { %v3161_v23 = vpop.f32.mrb[3].mxu1 }
 0x341   :  { %v421_v24 = vpop.f32.mrb[4].mxu0 }
 0x342   :  { %v3166_v25 = vpop.f32.mrb[5].mxu0  ;;  %v430_v26 = vsel %vm332_vm2, %v421_v24, -inf }
 0x343   :  { %431 = vmax.xlane.f32.xlu1 %v430_v26  ;;  %v424_v27 = vpop.f32.mrb[6].mxu0 }
 0x344   :  { %v3167_v28 = vpop.f32.mrb[7].mxu0 }
 0x354   :  { %451 = vrot.lane.b32.xlu1 %v4316_v11, %s3928_s28 }
 0x358   :  { %500 = vrot.lane.b32.xlu1 %v4320_v14, %s3928_s28 }
 0x35c   :  { %552 = vrot.lane.b32.xlu1 %v4316_v11, %s3951_s8 }
 0x3cc   :  { %v429_v29 = vpop.xlane.xlu1 %428 }
 0x3cd   :  { %v433_v30 = vsub.f32 %v373_v19, %v429_v29 }
 0x3cf   :  { %v435_v31 = vmul.f32 1.442695, %v433_v30 }
 0x3d0   :  { %v432_v32 = vpop.xlane.xlu1 %431 }
 0x3d1   :  { %3477 = vpow2.f32 %v435_v31  ;;  %v434_v33 = vsub.f32 %v421_v24, %v432_v32 }
 0x3d3   :  { %v437_v34 = vmul.f32 1.442695, %v434_v33 }
 0x3d4   :  { %v452_v35 = vpop.permute.xlu1 %451 }
 0x3d5   :  { %3479 = vpow2.f32 %v437_v34  ;;  %v458_v36 = vsel %vm456_vm3, %v452_v35, 0 }
 0x3d6   :  { %3169 = vmatpush3.bf16.msra.mxu1 %v458_v36 }
 0x3d7   :  { %3180 = vmatprep.subr.bf16.mxu1 %v3948_v0 }
 0x3d8   :  { %v501_v37 = vpop.permute.xlu1 %500 }
 0x3d9   :  { %v506_v38 = vsel %vm456_vm3, %v501_v37, 0 }
 0x3da   :  { %3175 = vmatpush3.bf16.msra.mxu0 %v506_v38 }
 0x3db   :  { %v3478_v39 = vpop.eup %3477  ;;  %3186 = vmatprep.subr.bf16.mxu0 %v3948_v0 }
 0x3dc   :  { %v439_v40 = vsel %vm332_vm2, %v3478_v39, 0.0  ;;  %v553_v43 = vpop.permute.xlu1 %552 }
 0x3dd   :  { %440 = vadd.xlane.f32.xlu0 %v439_v40  ;;  %v558_v50 = vsel %vm332_vm2, %v553_v43, 0 }
 0x3df   :  { %v3480_v41 = vpop.eup %3479 }
 0x3e0   :  { %v442_v42 = vsel %vm332_vm2, %v3480_v41, 0.0 }
 0x3e1   :  { %443 = vadd.xlane.f32.xlu1 %v442_v42 }
 0x3f2   :  { %602 = vrot.lane.b32.xlu1 %v4320_v14, %s3951_s8 }
 0x3f3   :  { %550 = vrot.lane.b32.xlu0 %v4316_v11, %s3952_s19 }
 0x3f6   :  { %600 = vrot.lane.b32.xlu1 %v4320_v14, %s3952_s19 }
 0x46a   :  { %v441_v44 = vpop.xlane.xlu0 %440 }
 0x46b   :  { %3481 = vrcp.f32 %v441_v44 }
 0x46e   :  { %v444_v45 = vpop.xlane.xlu1 %443  ;;  %v551_v55 = vpop.permute.xlu0 %550 }
 0x46f   :  { %3483 = vrcp.f32 %v444_v45 }
 0x472   :  { %v603_v52 = vpop.permute.xlu1 %602 }
 0x473   :  { %v608_v54 = vsel %vm332_vm2, %v603_v52, 0 }
 0x475   :  { %v3482_v46 = vpop.eup %3481 }
 0x476   :  { %v447_v47 = vmul.f32 %v3482_v46, %v3478_v39  ;;  %v601_v56 = vpop.permute.xlu1 %600 }
 0x478   :  { %v449_v48 = vpack.c.bf16 %v447_v47, %v447_v47 }
 0x479   :  { %v3484_v49 = vpop.eup %3483 }
 0x47a   :  { %3171 = vmatmul.mubr.msk.bf16.vlgmr.msra.gmra.mrb[4].mxu1 %vm332_vm2, %v449_v48  ;;  %v448_v51 = vmul.f32 %v3484_v49, %v3480_v41 }
 0x47b   :  { %3181 = vmatpush3.bf16.xpose.msra.mxu1 %v558_v50  ;;  %3182 = vmatprep.mubr.msk.bf16.mxu1 %vm3949_vm0, %v3948_v0 }
 0x47c   :  { %v450_v53 = vpack.c.bf16 %v448_v51, %v448_v51  ;;  %3192 = vmatprep.subr.bf16.mxu1 %v3948_v0 }
 0x47e   :  { %3177 = vmatmul.mubr.msk.bf16.vlgmr.msra.gmra.mrb[8].mxu0 %vm332_vm2, %v450_v53 }
 0x47f   :  { %3187 = vmatpush3.bf16.xpose.msra.mxu0 %v608_v54  ;;  %3188 = vmatprep.mubr.msk.bf16.mxu0 %vm3949_vm0, %v3948_v0 }
 0x480   :  { %3198 = vmatprep.subr.bf16.mxu0 %v3948_v0 }
 0x482   :  { %3183 = vmatmul.mubr.msk.bf16.vlgmr.msra.gmra.mrb[8].mxu1 %vm332_vm2, %v551_v55 }
 0x483   :  { %3194 = vmatprep.mubr.msk.bf16.mxu1 %vm3949_vm0, %v3948_v0 }
 0x486   :  { %3189 = vmatmul.mubr.msk.bf16.vlgmr.msra.gmra.mrb[12].mxu0 %vm332_vm2, %v601_v56 }
 0x487   :  { %3200 = vmatprep.mubr.msk.bf16.mxu0 %vm3949_vm0, %v3948_v0 }
 0x54d   :  { %v494_v57 = vpop.f32.mrb[4].mxu1 }
 0x54e   :  { %548 = vst.msk [vmem:[#allocation2] sm:$0xff] %vm332_vm2, %v494_v57  ;;  %v3172_v58 = vpop.f32.mrb[5].mxu1 }
 0x54f   :  { %v497_v59 = vpop.f32.mrb[6].mxu1 }
 0x550   :  { %v3173_v60 = vpop.f32.mrb[7].mxu1 }
 0x551   :  { %v542_v61 = vpop.f32.mrb[8].mxu0 }
 0x552   :  { %549 = vst.msk [vmem:[#allocation2 + $0x8] sm:$0xff] %vm332_vm2, %v542_v61  ;;  %v3178_v62 = vpop.f32.mrb[9].mxu0 }
 0x553   :  { %v545_v63 = vpop.f32.mrb[10].mxu0 }
 0x554   :  { %v3179_v1 = vpop.f32.mrb[11].mxu0 }
 0x555   :  { %v594_v2 = vpop.f32.mrb[8].mxu1 }
 0x556   :  { %v3184_v5 = vpop.f32.mrb[9].mxu1  ;;  %v650_v6 = vsel %vm332_vm2, %v594_v2, -inf }
 0x557   :  { %651 = vmax.xlane.f32.xlu1 %v650_v6  ;;  %v597_v7 = vpop.f32.mrb[10].mxu1 }
 0x558   :  { %v3185_v8 = vpop.f32.mrb[11].mxu1 }
 0x559   :  { %v644_v9 = vpop.f32.mrb[12].mxu0 }
 0x55a   :  { %v3190_v10 = vpop.f32.mrb[13].mxu0  ;;  %v653_v12 = vsel %vm332_vm2, %v644_v9, -inf }
 0x55b   :  { %654 = vmax.xlane.f32.xlu0 %v653_v12  ;;  %v647_v13 = vpop.f32.mrb[14].mxu0 }
 0x55c   :  { %v3191_v15 = vpop.f32.mrb[15].mxu0 }
 0x568   :  { %674 = vrot.lane.b32.xlu1 %v4316_v11, %s3953_s16 }
 0x56c   :  { %783 = vrot.lane.b32.xlu1 %v4316_v11, %s3954_s5 }
 0x571   :  { %722 = vrot.lane.b32.xlu0 %v4320_v14, %s3953_s16 }
 0x575   :  { %781 = vrot.lane.b32.xlu0 %v4316_v11, %s3955_s21 }
 0x5e4   :  { %v652_v16 = vpop.xlane.xlu1 %651 }
 0x5e5   :  { %v656_v17 = vsub.f32 %v594_v2, %v652_v16 }
 0x5e7   :  { %v658_v18 = vmul.f32 1.442695, %v656_v17 }
 0x5e8   :  { %v675_v19 = vpop.permute.xlu1 %674  ;;  %v655_v20 = vpop.xlane.xlu0 %654 }
 0x5e9   :  { %3485 = vpow2.f32 %v658_v18  ;;  %v680_v21 = vsel %vm456_vm3, %v675_v19, 0  ;;  %v657_v22 = vsub.f32 %v644_v9, %v655_v20 }
 0x5ea   :  { %3193 = vmatpush3.bf16.msra.mxu1 %v680_v21 }
 0x5eb   :  { %v660_v23 = vmul.f32 1.442695, %v657_v22  ;;  %3204 = vmatprep.subr.bf16.mxu1 %v3948_v0 }
 0x5ec   :  { %v723_v24 = vpop.permute.xlu0 %722  ;;  %v784_v30 = vpop.permute.xlu1 %783 }
 0x5ed   :  { %3487 = vpow2.f32 %v660_v23  ;;  %v728_v25 = vsel %vm456_vm3, %v723_v24, 0  ;;  %v789_v37 = vsel %vm332_vm2, %v784_v30, 0 }
 0x5ee   :  { %3199 = vmatpush3.bf16.msra.mxu0 %v728_v25 }
 0x5ef   :  { %3210 = vmatprep.subr.bf16.mxu0 %v3948_v0 }
 0x5f0   :  { %v782_v42 = vpop.permute.xlu0 %781 }
 0x5f3   :  { %v3486_v26 = vpop.eup %3485 }
 0x5f4   :  { %v662_v27 = vsel %vm332_vm2, %v3486_v26, 0.0 }
 0x5f5   :  { %663 = vadd.xlane.f32.xlu1 %v662_v27 }
 0x5f7   :  { %v3488_v28 = vpop.eup %3487 }
 0x5f8   :  { %v665_v29 = vsel %vm332_vm2, %v3488_v28, 0.0 }
 0x5f9   :  { %666 = vadd.xlane.f32.xlu1 %v665_v29 }
 0x60a   :  { %833 = vrot.lane.b32.xlu1 %v4320_v14, %s3954_s5 }
 0x60e   :  { %831 = vrot.lane.b32.xlu1 %v4320_v14, %s3955_s21 }
 0x682   :  { %v664_v31 = vpop.xlane.xlu1 %663 }
 0x683   :  { %3489 = vrcp.f32 %v664_v31 }
 0x686   :  { %v667_v32 = vpop.xlane.xlu1 %666 }
 0x687   :  { %3491 = vrcp.f32 %v667_v32 }
 0x68a   :  { %v834_v39 = vpop.permute.xlu1 %833 }
 0x68b   :  { %v839_v41 = vsel %vm332_vm2, %v834_v39, 0 }
 0x68d   :  { %v3490_v33 = vpop.eup %3489 }
 0x68e   :  { %v670_v34 = vmul.f32 %v3490_v33, %v3486_v26  ;;  %v832_v43 = vpop.permute.xlu1 %831 }
 0x690   :  { %v672_v35 = vpack.c.bf16 %v670_v34, %v670_v34 }
 0x691   :  { %v3492_v36 = vpop.eup %3491 }
 0x692   :  { %v671_v38 = vmul.f32 %v3492_v36, %v3488_v28  ;;  %3195 = vmatmul.mubr.msk.bf16.vlgmr.msra.gmra.mrb[12].mxu1 %vm332_vm2, %v672_v35 }
 0x693   :  { %3205 = vmatpush3.bf16.xpose.msra.mxu1 %v789_v37  ;;  %3206 = vmatprep.mubr.msk.bf16.mxu1 %vm3949_vm0, %v3948_v0 }
 0x694   :  { %v673_v40 = vpack.c.bf16 %v671_v38, %v671_v38  ;;  %3216 = vmatprep.subr.bf16.mxu1 %v3948_v0 }
 0x696   :  { %3201 = vmatmul.mubr.msk.bf16.vlgmr.msra.gmra.mrb[16].mxu0 %vm332_vm2, %v673_v40 }
 0x697   :  { %3211 = vmatpush3.bf16.xpose.msra.mxu0 %v839_v41  ;;  %3212 = vmatprep.mubr.msk.bf16.mxu0 %vm3949_vm0, %v3948_v0 }
 0x698   :  { %3222 = vmatprep.subr.bf16.mxu0 %v3948_v0 }
 0x69a   :  { %3207 = vmatmul.mubr.msk.bf16.vlgmr.msra.gmra.mrb[16].mxu1 %vm332_vm2, %v782_v42 }
 0x69b   :  { %3218 = vmatprep.mubr.msk.bf16.mxu1 %vm3949_vm0, %v3948_v0 }
 0x69e   :  { %3213 = vmatmul.mubr.msk.bf16.vlgmr.msra.gmra.mrb[20].mxu0 %vm332_vm2, %v832_v43 }
 0x69f   :  { %3224 = vmatprep.mubr.msk.bf16.mxu0 %vm3949_vm0, %v3948_v0 }
 0x765   :  { %v4410_v44 = vpop.f32.mrb[12].mxu1 }
 0x766   :  { %v3196_v45 = vpop.f32.mrb[13].mxu1 }
 0x767   :  { %v719_v46 = vpop.f32.mrb[14].mxu1 }
 0x768   :  { %v3197_v47 = vpop.f32.mrb[15].mxu1 }
 0x769   :  { %v4412_v48 = vpop.f32.mrb[16].mxu0 }
 0x76a   :  { %v3202_v49 = vpop.f32.mrb[17].mxu0 }
 0x76b   :  { %v767_v50 = vpop.f32.mrb[18].mxu0 }
 0x76c   :  { %v3203_v51 = vpop.f32.mrb[19].mxu0 }
 0x76d   :  { %v825_v52 = vpop.f32.mrb[16].mxu1 }
 0x76e   :  { %v3208_v53 = vpop.f32.mrb[17].mxu1  ;;  %v881_v54 = vsel %vm332_vm2, %v825_v52, -inf }
 0x76f   :  { %882 = vmax.xlane.f32.xlu0 %v881_v54  ;;  %v828_v55 = vpop.f32.mrb[18].mxu1 }
 0x770   :  { %v3209_v56 = vpop.f32.mrb[19].mxu1 }
 0x771   :  { %v875_v57 = vpop.f32.mrb[20].mxu0 }
 0x772   :  { %v3214_v58 = vpop.f32.mrb[21].mxu0  ;;  %v884_v59 = vsel %vm332_vm2, %v875_v57, -inf }
 0x773   :  { %885 = vmax.xlane.f32.xlu1 %v884_v59  ;;  %v878_v60 = vpop.f32.mrb[22].mxu0 }
 0x774   :  { %v3215_v61 = vpop.f32.mrb[23].mxu0 }
 0x784   :  { %905 = vrot.lane.b32.xlu1 %v4316_v11, %s3956_s25 }
 0x788   :  { %1014 = vrot.lane.b32.xlu1 %v4316_v11, %s3957_s11 }
 0x78c   :  { %1064 = vrot.lane.b32.xlu1 %v4320_v14, %s3957_s11 }
 0x790   :  { %1062 = vrot.lane.b32.xlu1 %v4320_v14, %s3958_s2 }
 0x7fc   :  { %v883_v62 = vpop.xlane.xlu0 %882 }
 0x7fd   :  { %v887_v63 = vsub.f32 %v825_v52, %v883_v62 }
 0x7ff   :  { %v889_v1 = vmul.f32 1.442695, %v887_v63 }
 0x800   :  { %v886_v2 = vpop.xlane.xlu1 %885 }
 0x801   :  { %3493 = vpow2.f32 %v889_v1  ;;  %v888_v5 = vsub.f32 %v875_v57, %v886_v2 }
 0x803   :  { %v891_v6 = vmul.f32 1.442695, %v888_v5 }
 0x804   :  { %v906_v7 = vpop.permute.xlu1 %905 }
 0x805   :  { %3495 = vpow2.f32 %v891_v6  ;;  %v911_v8 = vsel %vm456_vm3, %v906_v7, 0 }
 0x806   :  { %3217 = vmatpush3.bf16.msra.mxu1 %v911_v8 }
 0x807   :  { %3228 = vmatprep.subr.bf16.mxu1 %v3948_v0 }
 0x808   :  { %v1015_v20 = vpop.permute.xlu1 %1014 }
 0x809   :  { %v1020_v24 = vsel %vm332_vm2, %v1015_v20, 0 }
 0x80b   :  { %v3494_v9 = vpop.eup %3493 }
 0x80c   :  { %v893_v10 = vsel %vm332_vm2, %v3494_v9, 0.0  ;;  %v1065_v26 = vpop.permute.xlu1 %1064 }
 0x80d   :  { %894 = vadd.xlane.f32.xlu0 %v893_v10  ;;  %v1070_v28 = vsel %vm332_vm2, %v1065_v26, 0 }
 0x80f   :  { %v3496_v12 = vpop.eup %3495 }
 0x810   :  { %v896_v13 = vsel %vm332_vm2, %v3496_v12, 0.0  ;;  %v1063_v30 = vpop.permute.xlu1 %1062 }
 0x811   :  { %897 = vadd.xlane.f32.xlu0 %v896_v13  ;;  %v3457_v13 = vld [vmem:[#allocation9] sm:$0xff]  }
 0x827   :  { %953 = vrot.lane.b32.xlu0 %v4320_v14, %s3956_s25 }
 0x82b   :  { %1012 = vrot.lane.b32.xlu0 %v4316_v11, %s3958_s2 }
 0x89a   :  { %v895_v15 = vpop.xlane.xlu0 %894 }
 0x89b   :  { %3497 = vrcp.f32 %v895_v15  ;;  %v3458_v15 = vld [vmem:[#allocation9 + $0x8] sm:$0xff]  }
 0x89e   :  { %v898_v16 = vpop.xlane.xlu0 %897 }
 0x89f   :  { %3499 = vrcp.f32 %v898_v16 }
 0x8a2   :  { %v954_v17 = vpop.permute.xlu0 %953 }
 0x8a3   :  { %v959_v18 = vsel %vm456_vm3, %v954_v17, 0 }
 0x8a4   :  { %3223 = vmatpush3.bf16.msra.mxu0 %v959_v18 }
 0x8a5   :  { %v3498_v19 = vpop.eup %3497  ;;  %3234 = vmatprep.subr.bf16.mxu0 %v3948_v0 }
 0x8a6   :  { %v901_v21 = vmul.f32 %v3498_v19, %v3494_v9  ;;  %v1013_v29 = vpop.permute.xlu0 %1012 }
 0x8a8   :  { %v903_v22 = vpack.c.bf16 %v901_v21, %v901_v21 }
 0x8a9   :  { %v3500_v23 = vpop.eup %3499 }
 0x8aa   :  { %v902_v25 = vmul.f32 %v3500_v23, %v3496_v12  ;;  %3219 = vmatmul.mubr.msk.bf16.vlgmr.msra.gmra.mrb[20].mxu1 %vm332_vm2, %v903_v22 }
 0x8ab   :  { %3229 = vmatpush3.bf16.xpose.msra.mxu1 %v1020_v24  ;;  %3230 = vmatprep.mubr.msk.bf16.mxu1 %vm3949_vm0, %v3948_v0 }
 0x8ac   :  { %v904_v27 = vpack.c.bf16 %v902_v25, %v902_v25  ;;  %3240 = vmatprep.subr.bf16.mxu1 %v3948_v0 }
 0x8ae   :  { %3225 = vmatmul.mubr.msk.bf16.vlgmr.msra.gmra.mrb[24].mxu0 %vm332_vm2, %v904_v27 }
 0x8af   :  { %3235 = vmatpush3.bf16.xpose.msra.mxu0 %v1070_v28  ;;  %3236 = vmatprep.mubr.msk.bf16.mxu0 %vm3949_vm0, %v3948_v0 }
 0x8b0   :  { %3246 = vmatprep.subr.bf16.mxu0 %v3948_v0 }
 0x8b2   :  { %3231 = vmatmul.mubr.msk.bf16.vlgmr.msra.gmra.mrb[24].mxu1 %vm332_vm2, %v1013_v29  ;;  %v2987_v29 = vld [vmem:[#allocation11] ss:$0 sm:$0xff] }
 0x8b3   :  { %3242 = vmatprep.mubr.msk.bf16.mxu1 %vm3949_vm0, %v3948_v0 }
 0x8b6   :  { %3237 = vmatmul.mubr.msk.bf16.vlgmr.msra.gmra.mrb[28].mxu0 %vm332_vm2, %v1063_v30 }
 0x8b7   :  { %3248 = vmatprep.mubr.msk.bf16.mxu0 %vm3949_vm0, %v3948_v0 }
 0x97d   :  { %v947_v31 = vpop.f32.mrb[20].mxu1 }
 0x97e   :  { %v3220_v32 = vpop.f32.mrb[21].mxu1 }
 0x97f   :  { %v950_v33 = vpop.f32.mrb[22].mxu1 }
 0x980   :  { %v3221_v34 = vpop.f32.mrb[23].mxu1 }
 0x981   :  { %v995_v35 = vpop.f32.mrb[24].mxu0 }
 0x982   :  { %v3226_v36 = vpop.f32.mrb[25].mxu0 }
 0x983   :  { %v998_v37 = vpop.f32.mrb[26].mxu0 }
 0x984   :  { %v3227_v38 = vpop.f32.mrb[27].mxu0 }
 0x985   :  { %v1056_v39 = vpop.f32.mrb[24].mxu1 }
 0x986   :  { %v3232_v40 = vpop.f32.mrb[25].mxu1  ;;  %v1112_v41 = vsel %vm332_vm2, %v1056_v39, -inf }
 0x987   :  { %1113 = vmax.xlane.f32.xlu0 %v1112_v41  ;;  %v1059_v42 = vpop.f32.mrb[26].mxu1 }
 0x988   :  { %v3233_v43 = vpop.f32.mrb[27].mxu1 }
 0x989   :  { %v1106_v45 = vpop.f32.mrb[28].mxu0 }
 0x98a   :  { %v3238_v46 = vpop.f32.mrb[29].mxu0  ;;  %v1115_v47 = vsel %vm332_vm2, %v1106_v45, -inf }
 0x98b   :  { %1116 = vmax.xlane.f32.xlu1 %v1115_v47  ;;  %v1109_v49 = vpop.f32.mrb[30].mxu0 }
 0x98c   :  { %v3239_v50 = vpop.f32.mrb[31].mxu0 }
 0x99c   :  { %1136 = vrot.lane.b32.xlu1 %v4316_v11, %s3959_s23 }
 0x9a0   :  { %772 = vrot.lane.b32.xlu1 %v4410_v44, %s3940_s29 }
 0x9a4   :  { %774 = vrot.lane.b32.xlu1 %v4412_v48, %s3940_s29 }
 0x9a8   :  { %1005 = vrot.lane.b32.xlu1 %v995_v35, %s3935_s27 }
 0xa14   :  { %v1114_v51 = vpop.xlane.xlu0 %1113 }
 0xa15   :  { %v1118_v52 = vsub.f32 %v1056_v39, %v1114_v51  ;;  %v3459_v51 = vld [vmem:[#allocation12] sm:$0xff]  }
 0xa17   :  { %v1120_v53 = vmul.f32 1.442695, %v1118_v52  ;;  %v3461_v52 = vld [vmem:[#allocation15] sm:$0xff]  }
 0xa18   :  { %v1117_v54 = vpop.xlane.xlu1 %1116 }
 0xa19   :  { %3501 = vpow2.f32 %v1120_v53  ;;  %v1119_v55 = vsub.f32 %v1106_v45, %v1117_v54  ;;  %v3462_v53 = vld [vmem:[#allocation15 + $0x8] sm:$0xff]  }
 0xa1b   :  { %v1122_v56 = vmul.f32 1.442695, %v1119_v55 }
 0xa1c   :  { %v1137_v57 = vpop.permute.xlu1 %1136 }
 0xa1d   :  { %3503 = vpow2.f32 %v1122_v56  ;;  %v1142_v58 = vsel %vm456_vm3, %v1137_v57, 0 }
 0xa1e   :  { %3241 = vmatpush3.bf16.msra.mxu1 %v1142_v58 }
 0xa1f   :  { %3252 = vmatprep.subr.bf16.mxu1 %v3948_v0 }
 0xa20   :  { %v773_v11 = vpop.permute.xlu1 %772 }
 0xa21   :  { %779 = vst.msk [vmem:[#allocation2] sm:$0xff] %vm778_vm4, %v773_v11 }
 0xa23   :  { %v3502_v44 = vpop.eup %3501 }
 0xa24   :  { %v775_v48 = vpop.permute.xlu1 %774  ;;  %v1124_v59 = vsel %vm332_vm2, %v3502_v44, 0.0 }
 0xa25   :  { %780 = vst.msk [vmem:[#allocation2 + $0x8] sm:$0xff] %vm778_vm4, %v775_v48  ;;  %1125 = vadd.xlane.f32.xlu0 %v1124_v59  ;;  %v2991_v59 = vld [vmem:[#allocation18] ss:$0 sm:$0xff] }
 0xa27   :  { %v3504_v60 = vpop.eup %3503 }
 0xa28   :  { %v1006_v61 = vpop.permute.xlu1 %1005  ;;  %v1127_v62 = vsel %vm332_vm2, %v3504_v60, 0.0 }
 0xa29   :  { %1011 = vst.msk [vmem:[#allocation2 + $0x8] sm:$0xff] %vm1009_vm5, %v1006_v61  ;;  %1128 = vadd.xlane.f32.xlu0 %v1127_v62 }
 0xa3f   :  { %1184 = vrot.lane.b32.xlu0 %v4320_v14, %s3959_s23 }
 0xa43   :  { %1003 = vrot.lane.b32.xlu0 %v947_v31, %s3935_s27 }
 0xab2   :  { %v1126_v63 = vpop.xlane.xlu0 %1125 }
 0xab3   :  { %3505 = vrcp.f32 %v1126_v63  ;;  %v2992_v63 = vld [vmem:[#allocation20] ss:$0 sm:$0xff] }
 0xab6   :  { %v1129_v1 = vpop.xlane.xlu0 %1128 }
 0xab7   :  { %3507 = vrcp.f32 %v1129_v1 }
 0xaba   :  { %v1185_v2 = vpop.permute.xlu0 %1184 }
 0xabb   :  { %v1190_v5 = vsel %vm456_vm3, %v1185_v2, 0 }
 0xabc   :  { %3247 = vmatpush3.bf16.msra.mxu0 %v1190_v5 }
 0xabd   :  { %v3506_v6 = vpop.eup %3505  ;;  %3260 = vmatprep.subr.bf16.mxu0 %v3948_v0 }
 0xabe   :  { %v1132_v7 = vmul.f32 %v3506_v6, %v3502_v44  ;;  %v1004_v8 = vpop.permute.xlu0 %1003 }
 0xabf   :  { %1010 = vst.msk [vmem:[#allocation2] sm:$0xff] %vm1009_vm5, %v1004_v8  ;;  %v3464_v8 = vld [vmem:[#allocation15 + $0x18] sm:$0xff]  }
 0xac0   :  { %v1134_v9 = vpack.c.bf16 %v1132_v7, %v1132_v7  ;;  %v3463_v7 = vld [vmem:[#allocation15 + $0x10] sm:$0xff]  }
 0xac1   :  { %v3508_v10 = vpop.eup %3507 }
 0xac2   :  { %v1133_v14 = vmul.f32 %v3508_v10, %v3504_v60  ;;  %3243 = vmatmul.mubr.msk.bf16.vlgmr.msra.gmra.mrb[28].mxu1 %vm332_vm2, %v1134_v9  ;;  %v2993_v9 = vld [vmem:[#allocation14] ss:$0 sm:$0xff] }
 0xac3   :  { %3256 = vmatprep.mubr.msk.bf16.mxu1 %vm3949_vm0, %v3948_v0  ;;  %3253 = vmatpush3.bf16.msra.mxu1 %v3457_v13 }
 0xac4   :  { %v1135_v12 = vpack.c.bf16 %v1133_v14, %v1133_v14  ;;  %3254 = vmatprep.subr.bf16.mxu1 %v3948_v0 }
 0xac6   :  { %3249 = vmatmul.mubr.msk.bf16.vlgmr.msra.gmra.mrb[32].mxu0 %vm332_vm2, %v1135_v12 }
 0xac7   :  { %3264 = vmatprep.mubr.msk.bf16.mxu0 %vm3949_vm0, %v3948_v0  ;;  %3255 = vmatpush3.bf16.msra.mxu1 %v3458_v15 }
 0xac8   :  { %3268 = vmatprep.subr.bf16.mxu1 %v3948_v0  ;;  %3261 = vmatpush3.bf16.msra.mxu0 %v3459_v51  ;;  %v3003_v51 = vld [vmem:[#allocation21] ss:$0 sm:$0xff] }
 0xac9   :  { %3262 = vmatprep.subr.bf16.mxu0 %v3948_v0 }
 0xb95   :  { %v1178_v16 = vpop.f32.mrb[28].mxu1 }
 0xb96   :  { %1234 = vrot.lane.b32.xlu0 %v1178_v16, %s3960_s3  ;;  %v3244_v17 = vpop.f32.mrb[29].mxu1 }
 0xb97   :  { %v1181_v18 = vpop.f32.mrb[30].mxu1 }
 0xb98   :  { %v3245_v19 = vpop.f32.mrb[31].mxu1 }
 0xb99   :  { %v1226_v20 = vpop.f32.mrb[32].mxu0 }
 0xb9a   :  { %1236 = vrot.lane.b32.xlu1 %v1226_v20, %s3960_s3  ;;  %v3250_v21 = vpop.f32.mrb[33].mxu0  ;;  %v2997_v20 = vld [vmem:[#allocation17] ss:$0 sm:$0xff] }
 0xb9b   :  { %v1229_v22 = vpop.f32.mrb[34].mxu0 }
 0xb9c   :  { %v3251_v23 = vpop.f32.mrb[35].mxu0 }
 0xc08   :  { %v1235_v24 = vpop.permute.xlu0 %1234 }
 0xc09   :  { %1241 = vst.msk [vmem:[#allocation2] sm:$0xff] %vm1240_vm6, %v1235_v24 }
 0xc0c   :  { %v1237_v25 = vpop.permute.xlu1 %1236 }
 0xc0d   :  { %1242 = vst.msk [vmem:[#allocation2 + $0x8] sm:$0xff] %vm1240_vm6, %v1237_v25 }
 0xc10   :  { %v1243_v26 = vld [vmem:[#allocation2] sm:$0xff] }
 0xc14   :  { %v1244_v27 = vld [vmem:[#allocation2 + $0x8] sm:$0xff] }
 0xc15   :  { %v1245_v28 = vpack.c.bf16 %v1244_v27, %v1243_v26 }
 0xc17   :  { %3257 = vmatmul.mubr.msk.bf16.vlgmr.msra.gmra.mrb[32].mxu1 %vm279_vm1, %v1245_v28 }
 0xc18   :  { %3276 = vmatprep.mubr.msk.bf16.mxu1 %vm3949_vm0, %v3948_v0  ;;  %3269 = vmatpush3.bf16.msra.mxu1 %v3461_v52 }
 0xc19   :  { %3270 = vmatprep.subr.bf16.mxu1 %v3948_v0 }
 0xc1c   :  { %3271 = vmatpush3.bf16.msra.mxu1 %v3462_v53 }
 0xc1d   :  { %3272 = vmatprep.subr.bf16.mxu1 %v3948_v0 }
 0xc20   :  { %3273 = vmatpush3.bf16.msra.mxu1 %v3463_v7 }
 0xc21   :  { %3274 = vmatprep.subr.bf16.mxu1 %v3948_v0 }
 0xc24   :  { %3275 = vmatpush3.bf16.msra.mxu1 %v3464_v8 }
 0xc25   :  { %3294 = vmatprep.subr.bf16.mxu1 %v3948_v0 }
 0xcea   :  { %v1306_v30 = vpop.f32.mrb[32].mxu1 }
 0xceb   :  { %v1307_v31 = vadd.f32 %v2987_v29, %v1306_v30  ;;  %v3258_v32 = vpop.f32.mrb[33].mxu1 }
 0xcec   :  { %v1309_v33 = vpop.f32.mrb[34].mxu1 }
 0xced   :  { %v1310_v34 = vadd.f32 %v2987_v29, %v1309_v33  ;;  %v3259_v35 = vpop.f32.mrb[35].mxu1  ;;  %v1313_v36 = vadd.f32 %v1307_v31, %v4305_v3 }
 0xcef   :  { %v1315_v37 = vsel %vm279_vm1, %v1313_v36, 0.0  ;;  %v1314_v38 = vadd.f32 %v1310_v34, %v4307_v4  ;;  %v3460_v4 = vld [vmem:[#allocation12 + $0x8] sm:$0xff]  }
 0xcf0   :  { %1316 = vadd.xlane.f32.xlu0 %v1315_v37  ;;  %3263 = vmatpush3.bf16.msra.mxu0 %v3460_v4 }
 0xcf1   :  { %v1318_v39 = vsel %vm279_vm1, %v1314_v38, 0.0  ;;  %3280 = vmatprep.subr.bf16.mxu0 %v3948_v0 }
 0xcf2   :  { %1319 = vadd.xlane.f32.xlu1 %v1318_v39 }
 0xd7d   :  { %v1317_v40 = vpop.xlane.xlu0 %1316 }
 0xd7e   :  { %v1322_v41 = vmul.f32 0.03125, %v1317_v40 }
 0xd7f   :  { %v1320_v42 = vpop.xlane.xlu1 %1319 }
 0xd80   :  { %v1324_v43 = vsub.f32 %v1313_v36, %v1322_v41  ;;  %v1323_v45 = vmul.f32 0.03125, %v1320_v42  ;;  %v3465_v41 = vld [vmem:[#allocation6 + $0x10] sm:$0xff]   ;;  %v3466_v42 = vld [vmem:[#allocation6 + $0x18] sm:$0xff]  }
 0xd82   :  { %v1325_v46 = vsub.f32 %v1314_v38, %v1323_v45  ;;  %v1326_v47 = vmul.f32 %v1324_v43, %v1324_v43 }
 0xd84   :  { %v1328_v49 = vsel %vm279_vm1, %v1326_v47, 0.0  ;;  %v1327_v50 = vmul.f32 %v1325_v46, %v1325_v46 }
 0xd85   :  { %1329 = vadd.xlane.f32.xlu0 %v1328_v49 }
 0xd86   :  { %v1331_v3 = vsel %vm279_vm1, %v1327_v50, 0.0 }
 0xd89   :  { %1332 = vadd.xlane.f32.xlu0 %v1331_v3 }
 0xe12   :  { %v1330_v54 = vpop.xlane.xlu0 %1329 }
 0xe13   :  { %v1334_v55 = vmul.f32 0.03125, %v1330_v54 }
 0xe15   :  { %v1336_v56 = vadd.f32 1e-05, %v1334_v55  ;;  %v3004_v55 = vld [vmem:[#allocation23] ss:$0 sm:$0xff] }
 0xe16   :  { %v1333_v57 = vpop.xlane.xlu0 %1332 }
 0xe17   :  { %3509 = vrsqrt.f32 %v1336_v56  ;;  %v1335_v58 = vmul.f32 0.03125, %v1333_v57 }
 0xe19   :  { %v1337_v11 = vadd.f32 1e-05, %v1335_v58 }
 0xe1b   :  { %3511 = vrsqrt.f32 %v1337_v11 }
 0xe21   :  { %v3510_v44 = vpop.eup %3509 }
 0xe22   :  { %v1340_v48 = vmul.f32 %v3510_v44, %v1324_v43  ;;  %v3005_v44 = vld [vmem:[#allocation8 + $0x1] ss:$0 sm:$0xff] }
 0xe24   :  { %v1349_v61 = vmul.f32 %v2991_v59, %v1340_v48 }
 0xe25   :  { %v3512_v60 = vpop.eup %3511 }
 0xe26   :  { %v1341_v62 = vmul.f32 %v3512_v60, %v1325_v46  ;;  %v1358_v2 = vadd.f32 %v2992_v63, %v1349_v61 }
 0xe28   :  { %v1350_v1 = vmul.f32 %v2991_v59, %v1341_v62 }
 0xe2a   :  { %v1359_v5 = vadd.f32 %v2992_v63, %v1350_v1 }
 0xe2c   :  { %v1360_v6 = vpack.c.bf16 %v1359_v5, %v1358_v2 }
 0xe2e   :  { %3265 = vmatmul.mubr.msk.bf16.vlgmr.msra.gmra.mrb[36].mxu0 %vm279_vm1, %v1360_v6 }
 0xe2f   :  { %3284 = vmatprep.mubr.msk.bf16.mxu0 %vm3949_vm0, %v3948_v0  ;;  %3281 = vmatpush3.bf16.msra.mxu0 %v3465_v41 }
 0xe30   :  { %3282 = vmatprep.subr.bf16.mxu0 %v3948_v0 }
 0xe33   :  { %3283 = vmatpush3.bf16.msra.mxu0 %v3466_v42 }
 0xe34   :  { %3288 = vmatprep.subr.bf16.mxu0 %v3948_v0 }
 0xf01   :  { %v1421_v10 = vpop.f32.mrb[36].mxu0 }
 0xf02   :  { %v1422_v14 = vadd.f32 %v2993_v9, %v1421_v10  ;;  %v3266_v12 = vpop.f32.mrb[37].mxu0 }
 0xf03   :  { %v1424_v13 = vpop.f32.mrb[38].mxu0 }
 0xf04   :  { %v1425_v15 = vadd.f32 %v2993_v9, %v1424_v13  ;;  %v3267_v16 = vpop.f32.mrb[39].mxu0  ;;  %v1428_v17 = vmax.f32 %v1422_v14, 0.0 }
 0xf06   :  { %v1429_v18 = vmax.f32 %v1425_v15, 0.0 }
 0xf08   :  { %v1430_v19 = vpack.c.bf16 %v1429_v18, %v1428_v17 }
 0xf0a   :  { %3277 = vmatmul.mubr.msk.bf16.vlgmr.msra.gmra.mrb[36].mxu1 %vm1470_vm7, %v1430_v19 }
 0xf0b   :  { %3296 = vmatprep.mubr.msk.bf16.mxu1 %vm3949_vm0, %v3948_v0 }
 0xfdd   :  { %v1508_v21 = vpop.f32.mrb[36].mxu1 }
 0xfde   :  { %v1509_v22 = vadd.f32 %v2997_v20, %v1508_v21  ;;  %v3278_v23 = vpop.f32.mrb[37].mxu1 }
 0xfdf   :  { %v1511_v24 = vpop.f32.mrb[38].mxu1 }
 0xfe0   :  { %v1512_v25 = vadd.f32 %v2997_v20, %v1511_v24  ;;  %v3279_v26 = vpop.f32.mrb[39].mxu1  ;;  %v1515_v27 = vadd.f32 %v1509_v22, %v1358_v2 }
 0xfe2   :  { %v1517_v28 = vsel %vm279_vm1, %v1515_v27, 0.0  ;;  %v1516_v29 = vadd.f32 %v1512_v25, %v1359_v5 }
 0xfe3   :  { %1518 = vadd.xlane.f32.xlu1 %v1517_v28 }
 0xfe4   :  { %v1520_v30 = vsel %vm279_vm1, %v1516_v29, 0.0 }
 0xfe5   :  { %1521 = vadd.xlane.f32.xlu0 %v1520_v30 }
0x1070   :  { %v1519_v31 = vpop.xlane.xlu1 %1518 }
0x1071   :  { %v1523_v32 = vmul.f32 0.03125, %v1519_v31 }
0x1072   :  { %v1522_v33 = vpop.xlane.xlu0 %1521 }
0x1073   :  { %v1525_v34 = vsub.f32 %v1515_v27, %v1523_v32  ;;  %v1524_v35 = vmul.f32 0.03125, %v1522_v33 }
0x1075   :  { %v1526_v36 = vsub.f32 %v1516_v29, %v1524_v35  ;;  %v1527_v37 = vmul.f32 %v1525_v34, %v1525_v34 }
0x1077   :  { %v1529_v38 = vsel %vm279_vm1, %v1527_v37, 0.0  ;;  %v1528_v39 = vmul.f32 %v1526_v36, %v1526_v36 }
0x1078   :  { %1530 = vadd.xlane.f32.xlu1 %v1529_v38 }
0x1079   :  { %v1532_v40 = vsel %vm279_vm1, %v1528_v39, 0.0 }
0x107a   :  { %1533 = vadd.xlane.f32.xlu0 %v1532_v40 }
0x1105   :  { %v1531_v43 = vpop.xlane.xlu1 %1530 }
0x1106   :  { %v1535_v45 = vmul.f32 0.03125, %v1531_v43 }
0x1107   :  { %v1534_v46 = vpop.xlane.xlu0 %1533 }
0x1108   :  { %v1537_v47 = vadd.f32 1e-05, %v1535_v45  ;;  %v1536_v49 = vmul.f32 0.03125, %v1534_v46 }
0x110a   :  { %3513 = vrsqrt.f32 %v1537_v47  ;;  %v1538_v50 = vadd.f32 1e-05, %v1536_v49 }
0x110c   :  { %3515 = vrsqrt.f32 %v1538_v50 }
0x1114   :  { %v3514_v3 = vpop.eup %3513 }
0x1115   :  { %v1541_v4 = vmul.f32 %v3514_v3, %v1525_v34 }
0x1116   :  { %v3516_v52 = vpop.eup %3515 }
0x1117   :  { %v1550_v53 = vmul.f32 %v3003_v51, %v1541_v4  ;;  %v1542_v54 = vmul.f32 %v3516_v52, %v1526_v36 }
0x1119   :  { %v1551_v56 = vmul.f32 %v3003_v51, %v1542_v54  ;;  %v4511_v57 = vadd.f32 %v3004_v55, %v1550_v53 }
0x111b   :  { %v4513_v58 = vadd.f32 %v3004_v55, %v1551_v56 }
0x111d   :  { %v1561_v11 = vpack.c.bf16 %v4513_v58, %v4511_v57 }
0x111f   :  { %3285 = vmatmul.mubr.msk.bf16.vlgmr.msra.gmra.mrb[40].mxu0 %vm279_vm1, %v1561_v11 }
0x1120   :  { %3290 = vmatprep.mubr.msk.bf16.mxu0 %vm3949_vm0, %v3948_v0 }
0x11f2   :  { %v1624_v48 = vpop.f32.mrb[40].mxu0 }
0x11f3   :  { %v1625_v59 = vadd.f32 %v3005_v44, %v1624_v48  ;;  %v3286_v60 = vpop.f32.mrb[41].mxu0 }
0x11f4   :  { %v1627_v61 = vpop.f32.mrb[42].mxu0 }
0x11f5   :  { %v4520_v62 = vpack.c.bf16 %v1625_v59, %v1625_v59  ;;  %v1628_v63 = vadd.f32 %v3005_v44, %v1627_v61  ;;  %v3287_v1 = vpop.f32.mrb[43].mxu0 }
0x11f7   :  { %v4522_v2 = vpack.c.bf16 %v1628_v63, %v1628_v63  ;;  %1637 = vrot.lane.b32.xlu1 %v4520_v62, %s3950_s14 }
0x11f9   :  { %1685 = vrot.lane.b32.xlu0 %v4522_v2, %s3950_s14 }
0x1269   :  { %v1638_v5 = vpop.permute.xlu1 %1637 }
0x126a   :  { %v1643_v6 = vsel %vm332_vm2, %v1638_v5, 0 }
0x126b   :  { %3289 = vmatpush3.bf16.xpose.msra.mxu0 %v1643_v6  ;;  %v1686_v7 = vpop.permute.xlu0 %1685 }
0x126c   :  { %v1691_v8 = vsel %vm332_vm2, %v1686_v7, 0  ;;  %3300 = vmatprep.subr.bf16.mxu0 %v3948_v0 }
0x126d   :  { %3295 = vmatpush3.bf16.xpose.msra.mxu1 %v1691_v8 }
0x126e   :  { %3306 = vmatprep.subr.bf16.mxu1 %v3948_v0 }
0x1272   :  { %3291 = vmatmul.mubr.msk.bf16.vlgmr.msra.gmra.mrb[44].mxu0 %vm332_vm2, %v4520_v62 }
0x1273   :  { %3302 = vmatprep.mubr.msk.bf16.mxu0 %vm3949_vm0, %v3948_v0 }
0x1274   :  { %3297 = vmatmul.mubr.msk.bf16.vlgmr.msra.gmra.mrb[40].mxu1 %vm332_vm2, %v4522_v2 }
0x1275   :  { %3308 = vmatprep.mubr.msk.bf16.mxu1 %vm3949_vm0, %v3948_v0 }
0x1345   :  { %v1679_v9 = vpop.f32.mrb[44].mxu0 }
0x1346   :  { %v3292_v10 = vpop.f32.mrb[45].mxu0  ;;  %v1733_v14 = vsel %vm332_vm2, %v1679_v9, -inf }
0x1347   :  { %v1727_v12 = vpop.f32.mrb[40].mxu1  ;;  %1734 = vmax.xlane.f32.xlu1 %v1733_v14  ;;  %v1682_v13 = vpop.f32.mrb[46].mxu0 }
0x1348   :  { %v3293_v15 = vpop.f32.mrb[47].mxu0  ;;  %v3298_v16 = vpop.f32.mrb[41].mxu1  ;;  %v1736_v17 = vsel %vm332_vm2, %v1727_v12, -inf }
0x1349   :  { %1737 = vmax.xlane.f32.xlu0 %v1736_v17  ;;  %v1730_v18 = vpop.f32.mrb[42].mxu1 }
0x134a   :  { %v3299_v19 = vpop.f32.mrb[43].mxu1 }
0x1358   :  { %1757 = vrot.lane.b32.xlu1 %v4520_v62, %s3928_s28 }
0x13d4   :  { %v1735_v20 = vpop.xlane.xlu1 %1734 }
0x13d5   :  { %v1739_v21 = vsub.f32 %v1679_v9, %v1735_v20 }
0x13d6   :  { %v1738_v22 = vpop.xlane.xlu0 %1737 }
0x13d7   :  { %v1741_v23 = vmul.f32 1.442695, %v1739_v21  ;;  %v1740_v24 = vsub.f32 %v1727_v12, %v1738_v22 }
0x13d8   :  { %v1758_v25 = vpop.permute.xlu1 %1757 }
0x13d9   :  { %3517 = vpow2.f32 %v1741_v23  ;;  %v1743_v26 = vmul.f32 1.442695, %v1740_v24  ;;  %v1763_v27 = vsel %vm456_vm3, %v1758_v25, 0 }
0x13da   :  { %3301 = vmatpush3.bf16.msra.mxu0 %v1763_v27 }
0x13db   :  { %3519 = vpow2.f32 %v1743_v26  ;;  %3312 = vmatprep.subr.bf16.mxu0 %v3948_v0 }
0x13e3   :  { %v3518_v28 = vpop.eup %3517 }
0x13e4   :  { %v1745_v29 = vsel %vm332_vm2, %v3518_v28, 0.0 }
0x13e5   :  { %v3520_v30 = vpop.eup %3519  ;;  %1746 = vadd.xlane.f32.xlu1 %v1745_v29 }
0x13e6   :  { %v1748_v31 = vsel %vm332_vm2, %v3520_v30, 0.0 }
0x13e7   :  { %1749 = vadd.xlane.f32.xlu0 %v1748_v31 }
0x13f6   :  { %1857 = vrot.lane.b32.xlu1 %v4520_v62, %s3951_s8 }
0x13fa   :  { %1907 = vrot.lane.b32.xlu1 %v4522_v2, %s3951_s8 }
0x13fd   :  { %1805 = vrot.lane.b32.xlu0 %v4522_v2, %s3928_s28  ;;  %s3961_s28 = smov [#allocation27]  }
0x13fe   :  { %1905 = vrot.lane.b32.xlu1 %v4522_v2, %s3952_s19 }
0x1401   :  { %1855 = vrot.lane.b32.xlu0 %v4520_v62, %s3952_s19 }
0x1472   :  { %v1747_v32 = vpop.xlane.xlu1 %1746 }
0x1473   :  { %3521 = vrcp.f32 %v1747_v32 }
0x1474   :  { %v1750_v33 = vpop.xlane.xlu0 %1749 }
0x1475   :  { %3523 = vrcp.f32 %v1750_v33 }
0x1476   :  { %v1858_v36 = vpop.permute.xlu1 %1857 }
0x1477   :  { %v1863_v43 = vsel %vm332_vm2, %v1858_v36, 0 }
0x1478   :  { %v1806_v34 = vpop.permute.xlu0 %1805 }
0x1479   :  { %v1811_v35 = vsel %vm456_vm3, %v1806_v34, 0 }
0x147a   :  { %3307 = vmatpush3.bf16.msra.mxu1 %v1811_v35  ;;  %v1908_v42 = vpop.permute.xlu1 %1907 }
0x147b   :  { %3318 = vmatprep.subr.bf16.mxu1 %v3948_v0  ;;  %v1913_v46 = vsel %vm332_vm2, %v1908_v42, 0 }
0x147c   :  { %v1856_v47 = vpop.permute.xlu0 %1855 }
0x147d   :  { %v3522_v37 = vpop.eup %3521 }
0x147e   :  { %v1753_v38 = vmul.f32 %v3522_v37, %v3518_v28  ;;  %v1906_v49 = vpop.permute.xlu1 %1905 }
0x147f   :  { %v3524_v39 = vpop.eup %3523 }
0x1480   :  { %v1754_v40 = vmul.f32 %v3524_v39, %v3520_v30  ;;  %v1755_v41 = vpack.c.bf16 %v1753_v38, %v1753_v38 }
0x1482   :  { %3303 = vmatmul.mubr.msk.bf16.vlgmr.msra.gmra.mrb[48].mxu0 %vm332_vm2, %v1755_v41  ;;  %v1756_v45 = vpack.c.bf16 %v1754_v40, %v1754_v40 }
0x1483   :  { %3313 = vmatpush3.bf16.xpose.msra.mxu0 %v1863_v43  ;;  %3314 = vmatprep.mubr.msk.bf16.mxu0 %vm3949_vm0, %v3948_v0 }
0x1484   :  { %3309 = vmatmul.mubr.msk.bf16.vlgmr.msra.gmra.mrb[44].mxu1 %vm332_vm2, %v1756_v45  ;;  %3324 = vmatprep.subr.bf16.mxu0 %v3948_v0 }
0x1485   :  { %3319 = vmatpush3.bf16.xpose.msra.mxu1 %v1913_v46  ;;  %3320 = vmatprep.mubr.msk.bf16.mxu1 %vm3949_vm0, %v3948_v0 }
0x1486   :  { %3330 = vmatprep.subr.bf16.mxu1 %v3948_v0 }
0x148a   :  { %3315 = vmatmul.mubr.msk.bf16.vlgmr.msra.gmra.mrb[52].mxu0 %vm332_vm2, %v1856_v47 }
0x148b   :  { %3326 = vmatprep.mubr.msk.bf16.mxu0 %vm3949_vm0, %v3948_v0 }
0x148c   :  { %3321 = vmatmul.mubr.msk.bf16.vlgmr.msra.gmra.mrb[48].mxu1 %vm332_vm2, %v1906_v49 }
0x148d   :  { %3332 = vmatprep.mubr.msk.bf16.mxu1 %vm3949_vm0, %v3948_v0 }
0x1555   :  { %v1799_v50 = vpop.f32.mrb[48].mxu0 }
0x1556   :  { %1853 = vst.msk [vmem:[#allocation2] sm:$0xff] %vm332_vm2, %v1799_v50  ;;  %v3304_v3 = vpop.f32.mrb[49].mxu0 }
0x1557   :  { %v1802_v51 = vpop.f32.mrb[50].mxu0  ;;  %v1847_v4 = vpop.f32.mrb[44].mxu1 }
0x1558   :  { %1854 = vst.msk [vmem:[#allocation2 + $0x8] sm:$0xff] %vm332_vm2, %v1847_v4  ;;  %v3305_v52 = vpop.f32.mrb[51].mxu0  ;;  %v3310_v53 = vpop.f32.mrb[45].mxu1 }
0x1559   :  { %v1850_v54 = vpop.f32.mrb[46].mxu1 }
0x155a   :  { %v3311_v55 = vpop.f32.mrb[47].mxu1 }
0x155d   :  { %v1899_v56 = vpop.f32.mrb[52].mxu0 }
0x155e   :  { %v3316_v11 = vpop.f32.mrb[53].mxu0  ;;  %v1955_v44 = vsel %vm332_vm2, %v1899_v56, -inf }
0x155f   :  { %v1949_v48 = vpop.f32.mrb[48].mxu1  ;;  %1956 = vmax.xlane.f32.xlu0 %v1955_v44  ;;  %v1902_v59 = vpop.f32.mrb[54].mxu0 }
0x1560   :  { %v3317_v60 = vpop.f32.mrb[55].mxu0  ;;  %v3322_v61 = vpop.f32.mrb[49].mxu1  ;;  %v1958_v63 = vsel %vm332_vm2, %v1949_v48, -inf }
0x1561   :  { %1959 = vmax.xlane.f32.xlu1 %v1958_v63  ;;  %v1952_v1 = vpop.f32.mrb[50].mxu1 }
0x1562   :  { %v3323_v5 = vpop.f32.mrb[51].mxu1 }
0x1572   :  { %1979 = vrot.lane.b32.xlu1 %v4520_v62, %s3953_s16 }
0x1576   :  { %2087 = vrot.lane.b32.xlu1 %v4520_v62, %s3954_s5 }
0x157a   :  { %2137 = vrot.lane.b32.xlu1 %v4522_v2, %s3954_s5 }
0x157e   :  { %2135 = vrot.lane.b32.xlu1 %v4522_v2, %s3955_s21 }
0x15ec   :  { %v1957_v6 = vpop.xlane.xlu0 %1956 }
0x15ed   :  { %v1961_v7 = vsub.f32 %v1899_v56, %v1957_v6 }
0x15ee   :  { %v1960_v8 = vpop.xlane.xlu1 %1959 }
0x15ef   :  { %v1963_v9 = vmul.f32 1.442695, %v1961_v7  ;;  %v1962_v10 = vsub.f32 %v1949_v48, %v1960_v8 }
0x15f1   :  { %3525 = vpow2.f32 %v1963_v9  ;;  %v1965_v14 = vmul.f32 1.442695, %v1962_v10 }
0x15f2   :  { %v1980_v12 = vpop.permute.xlu1 %1979 }
0x15f3   :  { %3527 = vpow2.f32 %v1965_v14  ;;  %v1985_v13 = vsel %vm456_vm3, %v1980_v12, 0 }
0x15f4   :  { %3325 = vmatpush3.bf16.msra.mxu0 %v1985_v13 }
0x15f5   :  { %3336 = vmatprep.subr.bf16.mxu0 %v3948_v0 }
0x15f6   :  { %v2088_v24 = vpop.permute.xlu1 %2087 }
0x15f7   :  { %v2093_v28 = vsel %vm332_vm2, %v2088_v24, 0 }
0x15fa   :  { %v2138_v30 = vpop.permute.xlu1 %2137 }
0x15fb   :  { %v3526_v15 = vpop.eup %3525  ;;  %v2143_v32 = vsel %vm332_vm2, %v2138_v30, 0 }
0x15fc   :  { %v1967_v16 = vsel %vm332_vm2, %v3526_v15, 0.0 }
0x15fd   :  { %v3528_v17 = vpop.eup %3527  ;;  %1968 = vadd.xlane.f32.xlu0 %v1967_v16 }
0x15fe   :  { %v1970_v18 = vsel %vm332_vm2, %v3528_v17, 0.0  ;;  %v2136_v34 = vpop.permute.xlu1 %2135 }
0x1601   :  { %1971 = vadd.xlane.f32.xlu0 %v1970_v18 }
0x1617   :  { %2027 = vrot.lane.b32.xlu0 %v4522_v2, %s3953_s16 }
0x161b   :  { %2085 = vrot.lane.b32.xlu0 %v4520_v62, %s3955_s21 }
0x168a   :  { %v1969_v19 = vpop.xlane.xlu0 %1968 }
0x168b   :  { %3529 = vrcp.f32 %v1969_v19 }
0x168e   :  { %v1972_v20 = vpop.xlane.xlu0 %1971 }
0x168f   :  { %3531 = vrcp.f32 %v1972_v20 }
0x1692   :  { %v2028_v21 = vpop.permute.xlu0 %2027 }
0x1693   :  { %v2033_v22 = vsel %vm456_vm3, %v2028_v21, 0 }
0x1694   :  { %3331 = vmatpush3.bf16.msra.mxu1 %v2033_v22 }
0x1695   :  { %v3530_v23 = vpop.eup %3529  ;;  %3342 = vmatprep.subr.bf16.mxu1 %v3948_v0 }
0x1696   :  { %v1975_v25 = vmul.f32 %v3530_v23, %v3526_v15  ;;  %v2086_v33 = vpop.permute.xlu0 %2085 }
0x1698   :  { %v1977_v26 = vpack.c.bf16 %v1975_v25, %v1975_v25 }
0x1699   :  { %v3532_v27 = vpop.eup %3531 }
0x169a   :  { %v1976_v29 = vmul.f32 %v3532_v27, %v3528_v17  ;;  %3327 = vmatmul.mubr.msk.bf16.vlgmr.msra.gmra.mrb[56].mxu0 %vm332_vm2, %v1977_v26 }
0x169b   :  { %3337 = vmatpush3.bf16.xpose.msra.mxu0 %v2093_v28  ;;  %3338 = vmatprep.mubr.msk.bf16.mxu0 %vm3949_vm0, %v3948_v0 }
0x169c   :  { %v1978_v31 = vpack.c.bf16 %v1976_v29, %v1976_v29  ;;  %3348 = vmatprep.subr.bf16.mxu0 %v3948_v0 }
0x169e   :  { %3333 = vmatmul.mubr.msk.bf16.vlgmr.msra.gmra.mrb[52].mxu1 %vm332_vm2, %v1978_v31 }
0x169f   :  { %3343 = vmatpush3.bf16.xpose.msra.mxu1 %v2143_v32  ;;  %3344 = vmatprep.mubr.msk.bf16.mxu1 %vm3949_vm0, %v3948_v0 }
0x16a0   :  { %3354 = vmatprep.subr.bf16.mxu1 %v3948_v0 }
0x16a2   :  { %3339 = vmatmul.mubr.msk.bf16.vlgmr.msra.gmra.mrb[60].mxu0 %vm332_vm2, %v2086_v33 }
0x16a3   :  { %3350 = vmatprep.mubr.msk.bf16.mxu0 %vm3949_vm0, %v3948_v0 }
0x16a6   :  { %3345 = vmatmul.mubr.msk.bf16.vlgmr.msra.gmra.mrb[56].mxu1 %vm332_vm2, %v2136_v34 }
0x16a7   :  { %3356 = vmatprep.mubr.msk.bf16.mxu1 %vm3949_vm0, %v3948_v0 }
0x176d   :  { %v4614_v35 = vpop.f32.mrb[56].mxu0 }
0x176e   :  { %v3328_v36 = vpop.f32.mrb[57].mxu0 }
0x176f   :  { %v2024_v37 = vpop.f32.mrb[58].mxu0 }
0x1770   :  { %v3329_v38 = vpop.f32.mrb[59].mxu0 }
0x1771   :  { %v4616_v39 = vpop.f32.mrb[52].mxu1 }
0x1772   :  { %v3334_v40 = vpop.f32.mrb[53].mxu1 }
0x1773   :  { %v2072_v41 = vpop.f32.mrb[54].mxu1 }
0x1774   :  { %v3335_v42 = vpop.f32.mrb[55].mxu1 }
0x1775   :  { %v2129_v43 = vpop.f32.mrb[60].mxu0 }
0x1776   :  { %v3340_v45 = vpop.f32.mrb[61].mxu0  ;;  %v2185_v46 = vsel %vm332_vm2, %v2129_v43, -inf }
0x1777   :  { %2186 = vmax.xlane.f32.xlu0 %v2185_v46  ;;  %v2132_v47 = vpop.f32.mrb[62].mxu0 }
0x1778   :  { %v3341_v49 = vpop.f32.mrb[63].mxu0 }
0x1779   :  { %v2179_v50 = vpop.f32.mrb[56].mxu1 }
0x177a   :  { %v3346_v3 = vpop.f32.mrb[57].mxu1  ;;  %v2188_v51 = vsel %vm332_vm2, %v2179_v50, -inf }
0x177b   :  { %2189 = vmax.xlane.f32.xlu1 %v2188_v51  ;;  %v2182_v4 = vpop.f32.mrb[58].mxu1 }
0x177c   :  { %v3347_v52 = vpop.f32.mrb[59].mxu1 }
0x178c   :  { %2209 = vrot.lane.b32.xlu1 %v4520_v62, %s3956_s25 }
0x1790   :  { %2317 = vrot.lane.b32.xlu1 %v4520_v62, %s3957_s11 }
0x1794   :  { %2367 = vrot.lane.b32.xlu1 %v4522_v2, %s3957_s11 }
0x1798   :  { %2365 = vrot.lane.b32.xlu1 %v4522_v2, %s3958_s2 }
0x1804   :  { %v2187_v53 = vpop.xlane.xlu0 %2186 }
0x1805   :  { %v2191_v54 = vsub.f32 %v2129_v43, %v2187_v53 }
0x1807   :  { %v2193_v55 = vmul.f32 1.442695, %v2191_v54 }
0x1808   :  { %v2190_v56 = vpop.xlane.xlu1 %2189 }
0x1809   :  { %3533 = vpow2.f32 %v2193_v55  ;;  %v2192_v11 = vsub.f32 %v2179_v50, %v2190_v56 }
0x180b   :  { %v2195_v44 = vmul.f32 1.442695, %v2192_v11 }
0x180c   :  { %v2210_v48 = vpop.permute.xlu1 %2209 }
0x180d   :  { %3535 = vpow2.f32 %v2195_v44  ;;  %v2215_v59 = vsel %vm456_vm3, %v2210_v48, 0 }
0x180e   :  { %3349 = vmatpush3.bf16.msra.mxu0 %v2215_v59 }
0x180f   :  { %3360 = vmatprep.subr.bf16.mxu0 %v3948_v0 }
0x1810   :  { %v2318_v10 = vpop.permute.xlu1 %2317 }
0x1811   :  { %v2323_v15 = vsel %vm332_vm2, %v2318_v10, 0 }
0x1813   :  { %v3534_v60 = vpop.eup %3533 }
0x1814   :  { %v2197_v61 = vsel %vm332_vm2, %v3534_v60, 0.0  ;;  %v2368_v17 = vpop.permute.xlu1 %2367 }
0x1815   :  { %2198 = vadd.xlane.f32.xlu0 %v2197_v61  ;;  %v2373_v19 = vsel %vm332_vm2, %v2368_v17, 0 }
0x1817   :  { %v3536_v63 = vpop.eup %3535 }
0x1818   :  { %v2200_v1 = vsel %vm332_vm2, %v3536_v63, 0.0  ;;  %v2366_v21 = vpop.permute.xlu1 %2365 }
0x1819   :  { %2201 = vadd.xlane.f32.xlu0 %v2200_v1  ;;  %v3467_v1 = vld [vmem:[#allocation9 + $0x10] sm:$0xff]  }
0x182f   :  { %2257 = vrot.lane.b32.xlu0 %v4522_v2, %s3956_s25 }
0x1833   :  { %2315 = vrot.lane.b32.xlu0 %v4520_v62, %s3958_s2 }
0x18a2   :  { %v2199_v5 = vpop.xlane.xlu0 %2198 }
0x18a3   :  { %3537 = vrcp.f32 %v2199_v5  ;;  %v3468_v5 = vld [vmem:[#allocation9 + $0x18] sm:$0xff]  }
0x18a6   :  { %v2202_v6 = vpop.xlane.xlu0 %2201 }
0x18a7   :  { %3539 = vrcp.f32 %v2202_v6 }
0x18aa   :  { %v2258_v7 = vpop.permute.xlu0 %2257 }
0x18ab   :  { %v2263_v8 = vsel %vm456_vm3, %v2258_v7, 0 }
0x18ac   :  { %3355 = vmatpush3.bf16.msra.mxu1 %v2263_v8 }
0x18ad   :  { %v3538_v9 = vpop.eup %3537  ;;  %3366 = vmatprep.subr.bf16.mxu1 %v3948_v0 }
0x18ae   :  { %v2205_v14 = vmul.f32 %v3538_v9, %v3534_v60  ;;  %v2316_v20 = vpop.permute.xlu0 %2315 }
0x18b0   :  { %v2207_v12 = vpack.c.bf16 %v2205_v14, %v2205_v14 }
0x18b1   :  { %v3540_v13 = vpop.eup %3539 }
0x18b2   :  { %v2206_v16 = vmul.f32 %v3540_v13, %v3536_v63  ;;  %3351 = vmatmul.mubr.msk.bf16.vlgmr.msra.gmra.mrb[64].mxu0 %vm332_vm2, %v2207_v12 }
0x18b3   :  { %3361 = vmatpush3.bf16.xpose.msra.mxu0 %v2323_v15  ;;  %3362 = vmatprep.mubr.msk.bf16.mxu0 %vm3949_vm0, %v3948_v0 }
0x18b4   :  { %v2208_v18 = vpack.c.bf16 %v2206_v16, %v2206_v16  ;;  %3372 = vmatprep.subr.bf16.mxu0 %v3948_v0 }
0x18b6   :  { %3357 = vmatmul.mubr.msk.bf16.vlgmr.msra.gmra.mrb[60].mxu1 %vm332_vm2, %v2208_v18 }
0x18b7   :  { %3367 = vmatpush3.bf16.xpose.msra.mxu1 %v2373_v19  ;;  %3368 = vmatprep.mubr.msk.bf16.mxu1 %vm3949_vm0, %v3948_v0 }
0x18b8   :  { %3378 = vmatprep.subr.bf16.mxu1 %v3948_v0 }
0x18ba   :  { %3363 = vmatmul.mubr.msk.bf16.vlgmr.msra.gmra.mrb[68].mxu0 %vm332_vm2, %v2316_v20  ;;  %v3027_v20 = vld [vmem:[#allocation11 + $0x1] ss:$0 sm:$0xff] }
0x18bb   :  { %3374 = vmatprep.mubr.msk.bf16.mxu0 %vm3949_vm0, %v3948_v0 }
0x18be   :  { %3369 = vmatmul.mubr.msk.bf16.vlgmr.msra.gmra.mrb[64].mxu1 %vm332_vm2, %v2366_v21 }
0x18bf   :  { %3380 = vmatprep.mubr.msk.bf16.mxu1 %vm3949_vm0, %v3948_v0 }
0x1985   :  { %v2251_v22 = vpop.f32.mrb[64].mxu0 }
0x1986   :  { %v3352_v23 = vpop.f32.mrb[65].mxu0 }
0x1987   :  { %v2254_v24 = vpop.f32.mrb[66].mxu0 }
0x1988   :  { %v3353_v25 = vpop.f32.mrb[67].mxu0 }
0x1989   :  { %v2299_v26 = vpop.f32.mrb[60].mxu1 }
0x198a   :  { %v3358_v27 = vpop.f32.mrb[61].mxu1 }
0x198b   :  { %v2302_v28 = vpop.f32.mrb[62].mxu1 }
0x198c   :  { %v3359_v29 = vpop.f32.mrb[63].mxu1 }
0x198d   :  { %v2359_v30 = vpop.f32.mrb[68].mxu0 }
0x198e   :  { %v3364_v31 = vpop.f32.mrb[69].mxu0  ;;  %v2415_v32 = vsel %vm332_vm2, %v2359_v30, -inf }
0x198f   :  { %2416 = vmax.xlane.f32.xlu0 %v2415_v32  ;;  %v2362_v33 = vpop.f32.mrb[70].mxu0 }
0x1990   :  { %v3365_v34 = vpop.f32.mrb[71].mxu0 }
0x1991   :  { %v2409_v36 = vpop.f32.mrb[64].mxu1 }
0x1992   :  { %v3370_v37 = vpop.f32.mrb[65].mxu1  ;;  %v2418_v38 = vsel %vm332_vm2, %v2409_v36, -inf }
0x1993   :  { %2419 = vmax.xlane.f32.xlu1 %v2418_v38  ;;  %v2412_v40 = vpop.f32.mrb[66].mxu1 }
0x1994   :  { %v3371_v41 = vpop.f32.mrb[67].mxu1 }
0x19a4   :  { %2439 = vrot.lane.b32.xlu1 %v4520_v62, %s3959_s23 }
0x19a8   :  { %2077 = vrot.lane.b32.xlu1 %v4614_v35, %s3940_s29 }
0x19ac   :  { %2079 = vrot.lane.b32.xlu1 %v4616_v39, %s3940_s29 }
0x19b0   :  { %2309 = vrot.lane.b32.xlu1 %v2299_v26, %s3935_s27 }
0x1a1c   :  { %v2417_v42 = vpop.xlane.xlu0 %2416 }
0x1a1d   :  { %v2421_v43 = vsub.f32 %v2359_v30, %v2417_v42  ;;  %v3470_v42 = vld [vmem:[#allocation12 + $0x18] sm:$0xff]  }
0x1a1f   :  { %v2423_v45 = vmul.f32 1.442695, %v2421_v43  ;;  %v3471_v43 = vld [vmem:[#allocation15 + $0x20] sm:$0xff]  }
0x1a20   :  { %v2420_v46 = vpop.xlane.xlu1 %2419 }
0x1a21   :  { %3541 = vpow2.f32 %v2423_v45  ;;  %v2422_v47 = vsub.f32 %v2409_v36, %v2420_v46  ;;  %v3472_v45 = vld [vmem:[#allocation15 + $0x28] sm:$0xff]  }
0x1a23   :  { %v2425_v49 = vmul.f32 1.442695, %v2422_v47 }
0x1a24   :  { %v2440_v50 = vpop.permute.xlu1 %2439 }
0x1a25   :  { %3543 = vpow2.f32 %v2425_v49  ;;  %v2445_v3 = vsel %vm456_vm3, %v2440_v50, 0 }
0x1a26   :  { %3373 = vmatpush3.bf16.msra.mxu0 %v2445_v3 }
0x1a27   :  { %3384 = vmatprep.subr.bf16.mxu0 %v3948_v0 }
0x1a28   :  { %v2078_v62 = vpop.permute.xlu1 %2077 }
0x1a29   :  { %2083 = vst.msk [vmem:[#allocation2] sm:$0xff] %vm778_vm4, %v2078_v62 }
0x1a2b   :  { %v3542_v35 = vpop.eup %3541 }
0x1a2c   :  { %v2080_v39 = vpop.permute.xlu1 %2079  ;;  %v2427_v51 = vsel %vm332_vm2, %v3542_v35, 0.0 }
0x1a2d   :  { %2084 = vst.msk [vmem:[#allocation2 + $0x8] sm:$0xff] %vm778_vm4, %v2080_v39  ;;  %2428 = vadd.xlane.f32.xlu0 %v2427_v51  ;;  %v3031_v51 = vld [vmem:[#allocation18 + $0x1] ss:$0 sm:$0xff] }
0x1a2f   :  { %v3544_v4 = vpop.eup %3543 }
0x1a30   :  { %v2310_v52 = vpop.permute.xlu1 %2309  ;;  %v2430_v53 = vsel %vm332_vm2, %v3544_v4, 0.0 }
0x1a31   :  { %2314 = vst.msk [vmem:[#allocation2 + $0x8] sm:$0xff] %vm1009_vm5, %v2310_v52  ;;  %2431 = vadd.xlane.f32.xlu0 %v2430_v53 }
0x1a47   :  { %2487 = vrot.lane.b32.xlu0 %v4522_v2, %s3959_s23 }
0x1a4b   :  { %2307 = vrot.lane.b32.xlu0 %v2251_v22, %s3935_s27  ;;  %s2946_s27 = sshll.u32 %s3961_s28, 4  ;;  %s2947_s27 = int_to_ptr.vmem [resolvable:$true] %s2946_s27 }
0x1a4c   :  { %s3887_s6 = scalar_lea.vmem %s2947_s27, 256  ;;  %p3892_p9 = scmp.lt.s32.totalorder %s2947_s27, %s2947_s27 }
0x1a4d   :  { %p3888_p8 = scmp.ne.s32.totalorder %s2947_s27, %s3887_s6  ;;  %p3893_p10 = scmp.lt.s32.totalorder %s3887_s6, %s3887_s6 }
0x1a4f   :  { %p3894_p11 = por %p3893_p10, %p3892_p9 }
0x1a51   :  { %p3895_p12 = pnand %p3894_p11, %p3888_p8 }
0x1aba   :  { %v2429_v54 = vpop.xlane.xlu0 %2428 }
0x1abb   :  { %3545 = vrcp.f32 %v2429_v54  ;;  %v3032_v54 = vld [vmem:[#allocation20 + $0x1] ss:$0 sm:$0xff] }
0x1abe   :  { %v2432_v55 = vpop.xlane.xlu0 %2431 }
0x1abf   :  { %3547 = vrcp.f32 %v2432_v55 }
0x1ac2   :  { %v2488_v56 = vpop.permute.xlu0 %2487 }
0x1ac3   :  { %v2493_v11 = vsel %vm456_vm3, %v2488_v56, 0 }
0x1ac4   :  { %3379 = vmatpush3.bf16.msra.mxu1 %v2493_v11 }
0x1ac5   :  { %v3546_v44 = vpop.eup %3545  ;;  %3392 = vmatprep.subr.bf16.mxu1 %v3948_v0 }
0x1ac6   :  { %v2435_v48 = vmul.f32 %v3546_v44, %v3542_v35  ;;  %v2308_v59 = vpop.permute.xlu0 %2307 }
0x1ac7   :  { %2313 = vst.msk [vmem:[#allocation2] sm:$0xff] %vm1009_vm5, %v2308_v59  ;;  %v3474_v59 = vld [vmem:[#allocation15 + $0x38] sm:$0xff]  }
0x1ac8   :  { %v2437_v60 = vpack.c.bf16 %v2435_v48, %v2435_v48  ;;  %v3473_v48 = vld [vmem:[#allocation15 + $0x30] sm:$0xff]  }
0x1ac9   :  { %v3548_v61 = vpop.eup %3547 }
0x1aca   :  { %v2436_v2 = vmul.f32 %v3548_v61, %v3544_v4  ;;  %3375 = vmatmul.mubr.msk.bf16.vlgmr.msra.gmra.mrb[72].mxu0 %vm332_vm2, %v2437_v60  ;;  %v3033_v60 = vld [vmem:[#allocation14 + $0x1] ss:$0 sm:$0xff] }
0x1acb   :  { %3388 = vmatprep.mubr.msk.bf16.mxu0 %vm3949_vm0, %v3948_v0  ;;  %3385 = vmatpush3.bf16.msra.mxu0 %v3467_v1 }
0x1acc   :  { %v2438_v63 = vpack.c.bf16 %v2436_v2, %v2436_v2  ;;  %3386 = vmatprep.subr.bf16.mxu0 %v3948_v0 }
0x1ace   :  { %3381 = vmatmul.mubr.msk.bf16.vlgmr.msra.gmra.mrb[68].mxu1 %vm332_vm2, %v2438_v63 }
0x1acf   :  { %3396 = vmatprep.mubr.msk.bf16.mxu1 %vm3949_vm0, %v3948_v0  ;;  %3387 = vmatpush3.bf16.msra.mxu0 %v3468_v5 }
0x1ad0   :  { %3400 = vmatprep.subr.bf16.mxu0 %v3948_v0 }
0x1b9d   :  { %v2481_v6 = vpop.f32.mrb[72].mxu0 }
0x1b9e   :  { %2537 = vrot.lane.b32.xlu0 %v2481_v6, %s3960_s3  ;;  %v3376_v7 = vpop.f32.mrb[73].mxu0 }
0x1b9f   :  { %v2484_v8 = vpop.f32.mrb[74].mxu0 }
0x1ba0   :  { %v3377_v9 = vpop.f32.mrb[75].mxu0 }
0x1ba1   :  { %v2529_v10 = vpop.f32.mrb[68].mxu1 }
0x1ba2   :  { %2539 = vrot.lane.b32.xlu1 %v2529_v10, %s3960_s3  ;;  %v3382_v14 = vpop.f32.mrb[69].mxu1  ;;  %v3037_v10 = vld [vmem:[#allocation17 + $0x1] ss:$0 sm:$0xff] }
0x1ba3   :  { %v2532_v12 = vpop.f32.mrb[70].mxu1 }
0x1ba4   :  { %v3383_v13 = vpop.f32.mrb[71].mxu1 }
0x1c10   :  { %v2538_v15 = vpop.permute.xlu0 %2537 }
0x1c11   :  { %2543 = vst.msk [vmem:[#allocation2] sm:$0xff] %vm1240_vm6, %v2538_v15 }
0x1c14   :  { %v2540_v16 = vpop.permute.xlu1 %2539 }
0x1c15   :  { %2544 = vst.msk [vmem:[#allocation2 + $0x8] sm:$0xff] %vm1240_vm6, %v2540_v16 }
0x1c18   :  { %v2545_v17 = vld [vmem:[#allocation2] sm:$0xff] }
0x1c1c   :  { %v2546_v18 = vld [vmem:[#allocation2 + $0x8] sm:$0xff] }
0x1c1d   :  { %v2547_v19 = vpack.c.bf16 %v2546_v18, %v2545_v17 }
0x1c1f   :  { %3389 = vmatmul.mubr.msk.bf16.vlgmr.msra.gmra.mrb[76].mxu0 %vm279_vm1, %v2547_v19 }
0x1c20   :  { %3408 = vmatprep.mubr.msk.bf16.mxu0 %vm3949_vm0, %v3948_v0  ;;  %3401 = vmatpush3.bf16.msra.mxu0 %v3471_v43 }
0x1c21   :  { %3402 = vmatprep.subr.bf16.mxu0 %v3948_v0 }
0x1c24   :  { %3403 = vmatpush3.bf16.msra.mxu0 %v3472_v45 }
0x1c25   :  { %3404 = vmatprep.subr.bf16.mxu0 %v3948_v0 }
0x1c28   :  { %3405 = vmatpush3.bf16.msra.mxu0 %v3473_v48 }
0x1c29   :  { %3406 = vmatprep.subr.bf16.mxu0 %v3948_v0 }
0x1c2c   :  { %3407 = vmatpush3.bf16.msra.mxu0 %v3474_v59 }
0x1cf2   :  { %v2610_v21 = vpop.f32.mrb[76].mxu0 }
0x1cf3   :  { %v2611_v22 = vadd.f32 %v3027_v20, %v2610_v21  ;;  %v3390_v23 = vpop.f32.mrb[77].mxu0 }
0x1cf4   :  { %v2613_v24 = vpop.f32.mrb[78].mxu0 }
0x1cf5   :  { %v2614_v25 = vadd.f32 %v3027_v20, %v2613_v24  ;;  %v3391_v26 = vpop.f32.mrb[79].mxu0  ;;  %v2617_v27 = vadd.f32 %v2611_v22, %v4511_v57 }
0x1cf7   :  { %v2618_v28 = vadd.f32 %v2614_v25, %v4513_v58  ;;  %v2619_v29 = vsel %vm279_vm1, %v2617_v27, 0.0  ;;  %v3469_v58 = vld [vmem:[#allocation12 + $0x10] sm:$0xff]  }
0x1cf8   :  { %2620 = vadd.xlane.f32.xlu0 %v2619_v29  ;;  %3393 = vmatpush3.bf16.msra.mxu1 %v3469_v58  ;;  %v3043_v58 = vld [vmem:[#allocation21 + $0x1] ss:$0 sm:$0xff] }
0x1cf9   :  { %v2622_v30 = vsel %vm279_vm1, %v2618_v28, 0.0  ;;  %3394 = vmatprep.subr.bf16.mxu1 %v3948_v0 }
0x1cfa   :  { %2623 = vadd.xlane.f32.xlu1 %v2622_v30 }
0x1cfc   :  { %3395 = vmatpush3.bf16.msra.mxu1 %v3470_v42 }
0x1cfd   :  { %3412 = vmatprep.subr.bf16.mxu1 %v3948_v0 }
0x1d85   :  { %v2621_v31 = vpop.xlane.xlu0 %2620 }
0x1d86   :  { %v2625_v32 = vmul.f32 0.03125, %v2621_v31 }
0x1d87   :  { %v2624_v33 = vpop.xlane.xlu1 %2623 }
0x1d88   :  { %v2627_v34 = vsub.f32 %v2617_v27, %v2625_v32  ;;  %v2626_v36 = vmul.f32 0.03125, %v2624_v33  ;;  %v3475_v32 = vld [vmem:[#allocation24] sm:$0xff]   ;;  %v3476_v33 = vld [vmem:[#allocation24 + $0x8] sm:$0xff]  }
0x1d8a   :  { %v2628_v37 = vsub.f32 %v2618_v28, %v2626_v36  ;;  %v2629_v38 = vmul.f32 %v2627_v34, %v2627_v34 }
0x1d8c   :  { %v2631_v40 = vsel %vm279_vm1, %v2629_v38, 0.0  ;;  %v2630_v41 = vmul.f32 %v2628_v37, %v2628_v37 }
0x1d8d   :  { %2632 = vadd.xlane.f32.xlu0 %v2631_v40 }
0x1d8e   :  { %v2634_v57 = vsel %vm279_vm1, %v2630_v41, 0.0 }
0x1d91   :  { %2635 = vadd.xlane.f32.xlu0 %v2634_v57 }
0x1e1a   :  { %v2633_v46 = vpop.xlane.xlu0 %2632 }
0x1e1b   :  { %v2637_v47 = vmul.f32 0.03125, %v2633_v46 }
0x1e1d   :  { %v2639_v49 = vadd.f32 1e-05, %v2637_v47  ;;  %v3044_v47 = vld [vmem:[#allocation23 + $0x1] ss:$0 sm:$0xff] }
0x1e1e   :  { %v2636_v50 = vpop.xlane.xlu0 %2635 }
0x1e1f   :  { %3549 = vrsqrt.f32 %v2639_v49  ;;  %v2638_v3 = vmul.f32 0.03125, %v2636_v50 }
0x1e21   :  { %v2640_v62 = vadd.f32 1e-05, %v2638_v3 }
0x1e23   :  { %3551 = vrsqrt.f32 %v2640_v62  ;;  %v3045_v62 = vld [vmem:[#allocation26] ss:$0 sm:$0xff] }
0x1e29   :  { %v3550_v35 = vpop.eup %3549 }
0x1e2a   :  { %v2643_v39 = vmul.f32 %v3550_v35, %v2627_v34 }
0x1e2c   :  { %v2653_v52 = vmul.f32 %v3031_v51, %v2643_v39 }
0x1e2d   :  { %v3552_v4 = vpop.eup %3551 }
0x1e2e   :  { %v2644_v53 = vmul.f32 %v3552_v4, %v2628_v37  ;;  %v2663_v56 = vadd.f32 %v3032_v54, %v2653_v52 }
0x1e30   :  { %v2654_v55 = vmul.f32 %v3031_v51, %v2644_v53 }
0x1e32   :  { %v2664_v11 = vadd.f32 %v3032_v54, %v2654_v55 }
0x1e34   :  { %v2665_v44 = vpack.c.bf16 %v2664_v11, %v2663_v56 }
0x1e36   :  { %3397 = vmatmul.mubr.msk.bf16.vlgmr.msra.gmra.mrb[72].mxu1 %vm279_vm1, %v2665_v44 }
0x1e37   :  { %3416 = vmatprep.mubr.msk.bf16.mxu1 %vm3949_vm0, %v3948_v0  ;;  %3413 = vmatpush3.bf16.msra.mxu1 %v3475_v32 }
0x1e38   :  { %3414 = vmatprep.subr.bf16.mxu1 %v3948_v0 }
0x1e3b   :  { %3415 = vmatpush3.bf16.msra.mxu1 %v3476_v33 }
0x1f09   :  { %v2728_v61 = vpop.f32.mrb[72].mxu1 }
0x1f0a   :  { %v2729_v2 = vadd.f32 %v3033_v60, %v2728_v61  ;;  %v3398_v63 = vpop.f32.mrb[73].mxu1 }
0x1f0b   :  { %v2731_v1 = vpop.f32.mrb[74].mxu1 }
0x1f0c   :  { %v2732_v5 = vadd.f32 %v3033_v60, %v2731_v1  ;;  %v3399_v6 = vpop.f32.mrb[75].mxu1  ;;  %v2735_v7 = vmax.f32 %v2729_v2, 0.0 }
0x1f0e   :  { %v2736_v8 = vmax.f32 %v2732_v5, 0.0 }
0x1f10   :  { %v2737_v9 = vpack.c.bf16 %v2736_v8, %v2735_v7 }
0x1f12   :  { %3409 = vmatmul.mubr.msk.bf16.vlgmr.msra.gmra.mrb[80].mxu0 %vm1470_vm7, %v2737_v9 }
0x1fe5   :  { %v2816_v14 = vpop.f32.mrb[80].mxu0 }
0x1fe6   :  { %v2817_v12 = vadd.f32 %v3037_v10, %v2816_v14  ;;  %v3410_v13 = vpop.f32.mrb[81].mxu0 }
0x1fe7   :  { %v2819_v15 = vpop.f32.mrb[82].mxu0 }
0x1fe8   :  { %v2823_v16 = vadd.f32 %v2817_v12, %v2663_v56  ;;  %v2820_v17 = vadd.f32 %v3037_v10, %v2819_v15  ;;  %v3411_v18 = vpop.f32.mrb[83].mxu0 }
0x1fea   :  { %v2825_v19 = vsel %vm279_vm1, %v2823_v16, 0.0  ;;  %v2824_v20 = vadd.f32 %v2820_v17, %v2664_v11 }
0x1feb   :  { %2826 = vadd.xlane.f32.xlu1 %v2825_v19 }
0x1fec   :  { %v2828_v21 = vsel %vm279_vm1, %v2824_v20, 0.0 }
0x1fed   :  { %2829 = vadd.xlane.f32.xlu0 %v2828_v21 }
0x2078   :  { %v2827_v22 = vpop.xlane.xlu1 %2826 }
0x2079   :  { %v2831_v23 = vmul.f32 0.03125, %v2827_v22 }
0x207a   :  { %v2830_v24 = vpop.xlane.xlu0 %2829 }
0x207b   :  { %v2833_v25 = vsub.f32 %v2823_v16, %v2831_v23  ;;  %v2832_v26 = vmul.f32 0.03125, %v2830_v24 }
0x207d   :  { %v2834_v27 = vsub.f32 %v2824_v20, %v2832_v26  ;;  %v2835_v28 = vmul.f32 %v2833_v25, %v2833_v25 }
0x207f   :  { %v2837_v29 = vsel %vm279_vm1, %v2835_v28, 0.0  ;;  %v2836_v30 = vmul.f32 %v2834_v27, %v2834_v27 }
0x2080   :  { %2838 = vadd.xlane.f32.xlu1 %v2837_v29 }
0x2081   :  { %v2840_v31 = vsel %vm279_vm1, %v2836_v30, 0.0 }
0x2082   :  { %2841 = vadd.xlane.f32.xlu0 %v2840_v31 }
0x210d   :  { %v2839_v34 = vpop.xlane.xlu1 %2838 }
0x210e   :  { %v2843_v36 = vmul.f32 0.03125, %v2839_v34 }
0x210f   :  { %v2842_v37 = vpop.xlane.xlu0 %2841 }
0x2110   :  { %v2845_v38 = vadd.f32 1e-05, %v2843_v36  ;;  %v2844_v40 = vmul.f32 0.03125, %v2842_v37 }
0x2112   :  { %3553 = vrsqrt.f32 %v2845_v38  ;;  %v2846_v41 = vadd.f32 1e-05, %v2844_v40 }
0x2114   :  { %3555 = vrsqrt.f32 %v2846_v41 }
0x211c   :  { %v3554_v57 = vpop.eup %3553 }
0x211d   :  { %v2849_v42 = vmul.f32 %v3554_v57, %v2833_v25 }
0x211e   :  { %v3556_v43 = vpop.eup %3555 }
0x211f   :  { %v2859_v45 = vmul.f32 %v3043_v58, %v2849_v42  ;;  %v2850_v46 = vmul.f32 %v3556_v43, %v2834_v27 }
0x2121   :  { %v2860_v49 = vmul.f32 %v3043_v58, %v2850_v46  ;;  %v2869_v50 = vadd.f32 %v3044_v47, %v2859_v45 }
0x2123   :  { %v2870_v3 = vadd.f32 %v3044_v47, %v2860_v49 }
0x2125   :  { %v2871_v0 = vpack.c.bf16 %v2870_v3, %v2869_v50 }
0x2127   :  { %3417 = vmatmul.mubr.msk.bf16.vlgmr.msra.gmra.mrb[76].mxu1 %vm279_vm1, %v2871_v0 }
0x21fa   :  { %v2932_v35 = vpop.f32.mrb[76].mxu1 }
0x21fb   :  { %v2933_v39 = vadd.f32 %v3045_v62, %v2932_v35  ;;  %v3418_v51 = vpop.f32.mrb[77].mxu1 }
0x21fc   :  { %v2935_v4 = vpop.f32.mrb[78].mxu1 }
0x21fd   :  { %2939 = vst [vmem:[#allocation27] sm:$0xff] %v2933_v39  ;;  %v2936_v52 = vadd.f32 %v3045_v62, %v2935_v4  ;;  %v3419_v53 = vpop.f32.mrb[79].mxu1 }
0x21ff   :  { %2940 = vst [vmem:[#allocation27 + $0x8] sm:$0xff] %v2936_v52 }
0x2200   :  { %3898 = shalt.err (!%p3895_p12)
}
0x2201   :  { %s4745_s1 = sld [smem:[#allocation37_spill]] }
0x2207   :  { %s3899_s9 = scalar_lea.hbm %s4745_s1, 256 }
0x2208   :  { %p3900_p13 = scmp.ne.s32.totalorder %s4745_s1, %s3899_s9  ;;  %p3903_p0 = scmp.lt.u32.totalorder %s3899_s9, %s4745_s1 }
0x220a   :  { %p3905_p1 = pnand %p3903_p0, %p3900_p13 }
0x220c   :  { %3908 = shalt.err (!%p3905_p1)
}
0x220d   :  { %2952 = dma.vmem_to_hbm [thread:$0]  %s2947_s27, 256, %s4745_s1, [#allocation5], %s3939_s13, %s3939_s13, %s3940_s29  }
0x220e   :  { %3925 = dma.done.wait [#allocation5], 256  }
0x220f   :  { %3926 = vsyncadd [#allocation5], 4294967040 }
0x2210   :  { %2956 = vsyncpa [#allocation4], 1 }
0x2211   :  { %2957 = vsyncpa [#allocation7], 1 }
0x2212   :  { %2958 = vsyncpa [#allocation10], 1 }
0x2213   :  { %2959 = vsyncpa [#allocation13], 1 }
0x2214   :  { %2960 = vsyncpa [#allocation16], 1 }
0x2215   :  { %2961 = vsyncpa [#allocation19], 1 }
0x2216   :  { %2962 = vsyncpa [#allocation22], 1 }
0x2217   :  { %2963 = vsyncpa [#allocation25], 1 }
0x2218   :  { %2964 = vsyncpa [#allocation5], 1 }

</bundles_post_ra>
